<compile_context>
chip_gen: v7x
topology: tpu7x:2x2x1
jax: 0.10.0
libtpu: 0.0.40
codegen_flags: <defaults>
</compile_context>

<pallas_src>
import math

import numpy as np
import jax
import jax.numpy as jnp
from jax import lax
from jax.experimental import pallas as pl
from jax.experimental.pallas import tpu as pltpu

# --- synthetic stand-ins for the original repo's `globals` module ----------
IMAGE_CHANNELS = 3
IMAGE_HEIGHT = 48
IMAGE_WIDTH = 48
VALUENET_REGRESSOR = False          # -> output_num = 10

# --- static model geometry (matches the PyTorch module) ---------------------
K1, S1, C1 = 8, 4, 30
K2, S2, C2 = 4, 2, 35
K3, S3, C3 = 3, 1, 40

OH1 = (IMAGE_HEIGHT - K1) // S1 + 1           # 11
OW1 = (IMAGE_WIDTH - K1) // S1 + 1            # 11
OH2 = (OH1 - K2) // S2 + 1                    # 4
OW2 = (OW1 - K2) // S2 + 1                    # 4
OH3 = (OH2 - K3) // S3 + 1                    # 2
OW3 = (OW2 - K3) // S3 + 1                    # 2
# conv1 output rows/cols actually consumed downstream (last row/col is dead weight)
UH1 = (OH2 - 1) * S2 + K2                     # 10
UW1 = (OW2 - 1) * S2 + K2                     # 10
PATCH1 = K1 * K1 * IMAGE_CHANNELS             # 192
PATCH2 = K2 * K2 * C1                         # 480
PATCH3 = K3 * K3 * C2                         # 315
FC_IN = OH3 * OW3 * C3                        # 160 (== torch fc_input_size)
FC_H, FC_HP = 500, 512                        # fc1 width, lane-dense padded width
OUT_NUM = 1 if VALUENET_REGRESSOR else 10


# ---------------------------------------------------------------------------
# Fused forward kernel: conv1 GEMM -> in-VMEM im2col + ONE GEMM each for
# conv2/conv3 -> fc1 -> fc2 (+ ReLU / sigmoid).  All GEMMs are bf16 x bf16 with
# f32 accumulate.
# ---------------------------------------------------------------------------
def _fused_scoremodel_kernel(p1_ref, w1_ref, b1_ref, w2_ref, b2_ref,
                             w3_ref, b3_ref, fw1_ref, fb1_ref,
                             fw2_ref, fb2_ref, o_ref,
                             y1_ref, p2_ref, y2_ref, p3_ref, y3_ref):
    n = o_ref.shape[0]
    bf16 = jnp.bfloat16

    # conv1: one GEMM over pre-gathered patches; rows ordered (oh1, ow1, n).
    y1 = jnp.dot(p1_ref[...], w1_ref[...], preferred_element_type=jnp.float32)
    y1_ref[...] = jnp.maximum(y1 + b1_ref[...], 0.0)           # (UH1*UW1*n, C1)

    def slab(ref, pos):
        # contiguous n-row slab of an activation scratch at flat spatial pos
        return ref[pl.ds(pos * n, n), :]

    # conv2: in-VMEM im2col for ALL 16 output positions, then one GEMM.
    for oh in range(OH2):
        for ow in range(OW2):
            pos = oh * OW2 + ow
            pieces = [slab(y1_ref, (S2 * oh + ki) * UW1 + (S2 * ow + kj))
                      for ki in range(K2) for kj in range(K2)]
            p2_ref[pl.ds(pos * n, n), :] = jnp.concatenate(pieces, axis=-1)
    y2 = jnp.dot(p2_ref[...].astype(bf16), w2_ref[...],
                 preferred_element_type=jnp.float32)            # (OH2*OW2*n, C2)
    y2_ref[...] = jnp.maximum(y2 + b2_ref[...], 0.0)

    # conv3 (stride 1): same pattern on the VMEM-resident conv2 activations.
    for oh in range(OH3):
        for ow in range(OW3):
            pos = oh * OW3 + ow
            pieces = [slab(y2_ref, (oh + ki) * OW2 + (ow + kj))
                      for ki in range(K3) for kj in range(K3)]
            p3_ref[pl.ds(pos * n, n), :] = jnp.concatenate(pieces, axis=-1)
    y3 = jnp.dot(p3_ref[...].astype(bf16), w3_ref[...],
                 preferred_element_type=jnp.float32)            # (OH3*OW3*n, C3)
    y3_ref[...] = jnp.maximum(y3 + b3_ref[...], 0.0)

    # flatten in (h, w, c) order; fw1 rows were pre-permuted from torch (c, h, w).
    flat = jnp.concatenate([slab(y3_ref, pos) for pos in range(OH3 * OW3)],
                           axis=-1)                             # (n, FC_IN)

    z1 = jnp.dot(flat.astype(bf16), fw1_ref[...],
                 preferred_element_type=jnp.float32)
    z1 = jnp.maximum(z1 + fb1_ref[...], 0.0)                    # (n, FC_HP)
    z2 = jnp.dot(z1.astype(bf16), fw2_ref[...],
                 preferred_element_type=jnp.float32)
    o_ref[...] = jax.nn.sigmoid(z2 + fb2_ref[...])              # (n, OUT_NUM)


# ---------------------------------------------------------------------------
# Wrapper glue: conv1 im2col (layout-only, fused by XLA) + the single pallas_call
# ---------------------------------------------------------------------------
def _conv1_patches(x_nchw):
    """NCHW input -> conv1 im2col patches, rows ordered (oh1, ow1, n), bf16."""
    n = x_nchw.shape[0]
    x = jnp.transpose(x_nchw, (0, 2, 3, 1))                     # NHWC
    cols = []
    for i in range(K1):
        for j in range(K1):
            cols.append(x[:, i:i + S1 * (UH1 - 1) + 1:S1,
                          j:j + S1 * (UW1 - 1) + 1:S1, :])      # (n, UH1, UW1, Cin)
    p = jnp.concatenate(cols, axis=-1)                          # (n, UH1, UW1, PATCH1)
    p = jnp.transpose(p, (1, 2, 0, 3)).reshape(UH1 * UW1 * n, PATCH1)
    return p.astype(jnp.bfloat16)


def score_model_forward(x_nchw, kp):
    n = x_nchw.shape[0]
    p1 = _conv1_patches(x_nchw)
    args = (p1, kp["w1"], kp["b1"], kp["w2"], kp["b2"], kp["w3"], kp["b3"],
            kp["fw1"], kp["fb1"], kp["fw2"], kp["fb2"])

    flops = 2 * (p1.shape[0] * PATCH1 * C1
                 + n * OH2 * OW2 * PATCH2 * C2
                 + n * OH3 * OW3 * PATCH3 * C3
                 + n * FC_IN * FC_HP
                 + n * FC_HP * OUT_NUM)
    bytes_accessed = sum(int(np.prod(a.shape)) * a.dtype.itemsize for a in args)
    bytes_accessed += n * OUT_NUM * 4

    return pl.pallas_call(
        _fused_scoremodel_kernel,
        out_shape=jax.ShapeDtypeStruct((n, OUT_NUM), jnp.float32),
        in_specs=[pl.BlockSpec(memory_space=pltpu.MemorySpace.VMEM)] * len(args),
        out_specs=pl.BlockSpec(memory_space=pltpu.MemorySpace.VMEM),
        scratch_shapes=[
            pltpu.VMEM((UH1 * UW1 * n, C1), jnp.float32),        # conv1 activations
            pltpu.VMEM((OH2 * OW2 * n, PATCH2), jnp.float32),    # conv2 im2col
            pltpu.VMEM((OH2 * OW2 * n, C2), jnp.float32),        # conv2 activations
            pltpu.VMEM((OH3 * OW3 * n, PATCH3), jnp.float32),    # conv3 im2col
            pltpu.VMEM((OH3 * OW3 * n, C3), jnp.float32),        # conv3 activations
        ],
        cost_estimate=pl.CostEstimate(flops=flops,
                                      transcendentals=n * OUT_NUM,
                                      bytes_accessed=bytes_accessed),
    )(*args)


# ---------------------------------------------------------------------------
# Parameters: PyTorch-style init + one-time transform into kernel layout
# ---------------------------------------------------------------------------
def _uniform(key, shape, fan_in):
    bound = 1.0 / math.sqrt(fan_in)
    return jax.random.uniform(key, shape, jnp.float32, -bound, bound)


def init_params(key):
    ks = jax.random.split(key, 10)
    cin = IMAGE_CHANNELS
    return {
        "w1": _uniform(ks[0], (C1, cin, K1, K1), cin * K1 * K1),
        "b1": _uniform(ks[1], (C1,), cin * K1 * K1),
        "w2": _uniform(ks[2], (C2, C1, K2, K2), C1 * K2 * K2),
        "b2": _uniform(ks[3], (C2,), C1 * K2 * K2),
        "w3": _uniform(ks[4], (C3, C2, K3, K3), C2 * K3 * K3),
        "b3": _uniform(ks[5], (C3,), C2 * K3 * K3),
        # Linear weights stored as (in, out) == torch weight.T, torch flatten order
        "fw1": _uniform(ks[6], (FC_IN, FC_H), FC_IN),
        "fb1": _uniform(ks[7], (FC_H,), FC_IN),
        "fw2": _uniform(ks[8], (FC_H, OUT_NUM), FC_H),
        "fb2": _uniform(ks[9], (OUT_NUM,), FC_H),
    }


def prepare_params(params):
    """One-time layout transform: conv weights -> im2col matrices (bf16); fc1 rows
    permuted from torch (c,h,w) flatten order to the kernel's (h,w,c) order and
    zero-padded 500 -> 512 lanes; biases as (1, N) f32 rows."""
    def conv_w(w):
        cout = w.shape[0]
        return jnp.transpose(w, (2, 3, 1, 0)).reshape(-1, cout).astype(jnp.bfloat16)

    def bias(b):
        return b.reshape(1, -1).astype(jnp.float32)

    # kernel flat index (h, w, c)  ->  torch flat index c*(H*W) + h*W + w
    idx = np.array([c * (OH3 * OW3) + h * OW3 + w
                    for h in range(OH3) for w in range(OW3) for c in range(C3)])
    pad = FC_HP - FC_H
    fw1 = jnp.pad(params["fw1"][idx, :], ((0, 0), (0, pad))).astype(jnp.bfloat16)
    fb1 = jnp.pad(params["fb1"], (0, pad)).reshape(1, -1).astype(jnp.float32)
    fw2 = jnp.pad(params["fw2"], ((0, pad), (0, 0))).astype(jnp.bfloat16)

    return {
        "w1": conv_w(params["w1"]), "b1": bias(params["b1"]),
        "w2": conv_w(params["w2"]), "b2": bias(params["b2"]),
        "w3": conv_w(params["w3"]), "b3": bias(params["b3"]),
        "fw1": fw1, "fb1": fb1, "fw2": fw2, "fb2": bias(params["fb2"]),
    }


# ---------------------------------------------------------------------------
# Pure-XLA reference.  operand_dtype=bfloat16 mirrors the kernel's MXU feed
# (bf16 operands, f32 accumulation); float32 gives the exact-f32 model.
# ---------------------------------------------------------------------------
def reference_forward(x_nchw, params, operand_dtype=jnp.float32):
    cast = lambda a: a.astype(operand_dtype)

    def conv(x, w, b, s):
        y = lax.conv_general_dilated(
            cast(x), cast(w), window_strides=s, padding="VALID",
            dimension_numbers=("NCHW", "OIHW", "NCHW"),
            preferred_element_type=jnp.float32)
        return jnp.maximum(y + b.reshape(1, -1, 1, 1), 0.0)

    x = conv(x_nchw, params["w1"], params["b1"], (S1, S1))
    x = conv(x, params["w2"], params["b2"], (S2, S2))
    x = conv(x, params["w3"], params["b3"], (S3, S3))
    x = x.reshape(x.shape[0], -1)                      # torch (c, h, w) flatten
    z1 = jnp.dot(cast(x), cast(params["fw1"]), preferred_element_type=jnp.float32)
    x = jnp.maximum(z1 + params["fb1"], 0.0)
    z2 = jnp.dot(cast(x), cast(params["fw2"]), preferred_element_type=jnp.float32)
    return jax.nn.sigmoid(z2 + params["fb2"])


if __name__ == "__main__":
    key = jax.random.PRNGKey(0)
    k_param, k_x = jax.random.split(key)
    params = init_params(k_param)
    kparams = prepare_params(params)

    batch = 2
    x = jax.random.normal(
        k_x, (batch, IMAGE_CHANNELS, IMAGE_HEIGHT, IMAGE_WIDTH), jnp.float32)

    fwd = jax.jit(score_model_forward)
    out = jax.block_until_ready(fwd(x, kparams))
    assert out.shape == (batch, OUT_NUM), out.shape

    # Check against a reference that uses the same bf16 operand rounding
    # (f32 accumulation) as the kernel's MXU feed.
    ref = jax.block_until_ready(reference_forward(x, params, jnp.bfloat16))
    err = float(jnp.max(jnp.abs(out - ref)))
    assert err < 2e-3, f"mismatch vs bf16-matched reference: max err {err}"

    # Informational: distance to the full-f32 reference (bf16 operand rounding only).
    ref32 = jax.block_until_ready(reference_forward(x, params, jnp.float32))
    _f32_err = float(jnp.max(jnp.abs(out - ref32)))

    print("KERNEL_OK")
</pallas_src>

<mosaic_0001>
module attributes {stable_mosaic.version = 11 : i64} {
  func.func @_fused_scoremodel_kernel(%arg0: memref<200x192xbf16, #tpu.memory_space<vmem>>, %arg1: memref<192x30xbf16, #tpu.memory_space<vmem>>, %arg2: memref<1x30xf32, #tpu.memory_space<vmem>>, %arg3: memref<480x35xbf16, #tpu.memory_space<vmem>>, %arg4: memref<1x35xf32, #tpu.memory_space<vmem>>, %arg5: memref<315x40xbf16, #tpu.memory_space<vmem>>, %arg6: memref<1x40xf32, #tpu.memory_space<vmem>>, %arg7: memref<160x512xbf16, #tpu.memory_space<vmem>>, %arg8: memref<1x512xf32, #tpu.memory_space<vmem>>, %arg9: memref<512x10xbf16, #tpu.memory_space<vmem>>, %arg10: memref<1x10xf32, #tpu.memory_space<vmem>>, %arg11: memref<2x10xf32, #tpu.memory_space<vmem>>, %arg12: memref<200x30xf32, #tpu.memory_space<vmem>>, %arg13: memref<32x480xf32, #tpu.memory_space<vmem>>, %arg14: memref<32x35xf32, #tpu.memory_space<vmem>>, %arg15: memref<8x315xf32, #tpu.memory_space<vmem>>, %arg16: memref<8x40xf32, #tpu.memory_space<vmem>>) attributes {dimension_semantics = [], scalar_prefetch = 0 : i64, scratch_operands = 5 : i64, tpu.core_type = #tpu.core_type<tc>} {
    %c0 = arith.constant 0 : index
    %c0_0 = arith.constant 0 : index
    %0 = vector.load %arg0[%c0, %c0_0] : memref<200x192xbf16, #tpu.memory_space<vmem>>, vector<200x192xbf16>
    %c0_1 = arith.constant 0 : index
    %c0_2 = arith.constant 0 : index
    %1 = vector.load %arg1[%c0_1, %c0_2] : memref<192x30xbf16, #tpu.memory_space<vmem>>, vector<192x30xbf16>
    %cst = arith.constant dense<0.000000e+00> : vector<200x30xf32>
    %2 = tpu.matmul %0, %1, %cst {dimension_numbers = #tpu.dot_dimension_numbers<[1], [0], [0], [1], [0, 0, 1, 1], [], []>} : vector<200x192xbf16>, vector<192x30xbf16>, vector<200x30xf32> -> vector<200x30xf32>
    %c0_3 = arith.constant 0 : index
    %c0_4 = arith.constant 0 : index
    %3 = vector.load %arg2[%c0_3, %c0_4] : memref<1x30xf32, #tpu.memory_space<vmem>>, vector<1x30xf32>
    %4 = vector.broadcast %3 : vector<1x30xf32> to vector<200x30xf32>
    %5 = arith.addf %2, %4 : vector<200x30xf32>
    %cst_5 = arith.constant 0.000000e+00 : f32
    %6 = vector.broadcast %cst_5 : f32 to vector<200x30xf32>
    %7 = arith.maximumf %5, %6 : vector<200x30xf32>
    %c0_6 = arith.constant 0 : index
    %c0_7 = arith.constant 0 : index
    %8 = vector.load %arg12[%c0_6, %c0_7] : memref<200x30xf32, #tpu.memory_space<vmem>>, vector<200x30xf32>
    tpu.vector_store %arg12[%c0_6, %c0_7], %7 {strides = array<i32>} : memref<200x30xf32, #tpu.memory_space<vmem>>, vector<200x30xf32>,
    %c0_8 = arith.constant 0 : index
    %c0_9 = arith.constant 0 : index
    %9 = vector.load %arg12[%c0_8, %c0_9] : memref<200x30xf32, #tpu.memory_space<vmem>>, vector<2x30xf32>
    %c2 = arith.constant 2 : index
    %c0_10 = arith.constant 0 : index
    %10 = vector.load %arg12[%c2, %c0_10] : memref<200x30xf32, #tpu.memory_space<vmem>>, vector<2x30xf32>
    %c4 = arith.constant 4 : index
    %c0_11 = arith.constant 0 : index
    %11 = vector.load %arg12[%c4, %c0_11] : memref<200x30xf32, #tpu.memory_space<vmem>>, vector<2x30xf32>
    %c6 = arith.constant 6 : index
    %c0_12 = arith.constant 0 : index
    %12 = vector.load %arg12[%c6, %c0_12] : memref<200x30xf32, #tpu.memory_space<vmem>>, vector<2x30xf32>
    %c20 = arith.constant 20 : index
    %c0_13 = arith.constant 0 : index
    %13 = vector.load %arg12[%c20, %c0_13] : memref<200x30xf32, #tpu.memory_space<vmem>>, vector<2x30xf32>
    %c22 = arith.constant 22 : index
    %c0_14 = arith.constant 0 : index
    %14 = vector.load %arg12[%c22, %c0_14] : memref<200x30xf32, #tpu.memory_space<vmem>>, vector<2x30xf32>
    %c24 = arith.constant 24 : index
    %c0_15 = arith.constant 0 : index
    %15 = vector.load %arg12[%c24, %c0_15] : memref<200x30xf32, #tpu.memory_space<vmem>>, vector<2x30xf32>
    %c26 = arith.constant 26 : index
    %c0_16 = arith.constant 0 : index
    %16 = vector.load %arg12[%c26, %c0_16] : memref<200x30xf32, #tpu.memory_space<vmem>>, vector<2x30xf32>
    %c40 = arith.constant 40 : index
    %c0_17 = arith.constant 0 : index
    %17 = vector.load %arg12[%c40, %c0_17] : memref<200x30xf32, #tpu.memory_space<vmem>>, vector<2x30xf32>
    %c42 = arith.constant 42 : index
    %c0_18 = arith.constant 0 : index
    %18 = vector.load %arg12[%c42, %c0_18] : memref<200x30xf32, #tpu.memory_space<vmem>>, vector<2x30xf32>
    %c44 = arith.constant 44 : index
    %c0_19 = arith.constant 0 : index
    %19 = vector.load %arg12[%c44, %c0_19] : memref<200x30xf32, #tpu.memory_space<vmem>>, vector<2x30xf32>
    %c46 = arith.constant 46 : index
    %c0_20 = arith.constant 0 : index
    %20 = vector.load %arg12[%c46, %c0_20] : memref<200x30xf32, #tpu.memory_space<vmem>>, vector<2x30xf32>
    %c60 = arith.constant 60 : index
    %c0_21 = arith.constant 0 : index
    %21 = vector.load %arg12[%c60, %c0_21] : memref<200x30xf32, #tpu.memory_space<vmem>>, vector<2x30xf32>
    %c62 = arith.constant 62 : index
    %c0_22 = arith.constant 0 : index
    %22 = vector.load %arg12[%c62, %c0_22] : memref<200x30xf32, #tpu.memory_space<vmem>>, vector<2x30xf32>
    %c64 = arith.constant 64 : index
    %c0_23 = arith.constant 0 : index
    %23 = vector.load %arg12[%c64, %c0_23] : memref<200x30xf32, #tpu.memory_space<vmem>>, vector<2x30xf32>
    %c66 = arith.constant 66 : index
    %c0_24 = arith.constant 0 : index
    %24 = vector.load %arg12[%c66, %c0_24] : memref<200x30xf32, #tpu.memory_space<vmem>>, vector<2x30xf32>
    %25 = tpu.concatenate %9, %10, %11, %12, %13, %14, %15, %16, %17, %18, %19, %20, %21, %22, %23, %24 in 1 : vector<2x30xf32>, vector<2x30xf32>, vector<2x30xf32>, vector<2x30xf32>, vector<2x30xf32>, vector<2x30xf32>, vector<2x30xf32>, vector<2x30xf32>, vector<2x30xf32>, vector<2x30xf32>, vector<2x30xf32>, vector<2x30xf32>, vector<2x30xf32>, vector<2x30xf32>, vector<2x30xf32>, vector<2x30xf32> -> vector<2x480xf32>
    %c0_25 = arith.constant 0 : index
    %c0_26 = arith.constant 0 : index
    %26 = vector.load %arg13[%c0_25, %c0_26] : memref<32x480xf32, #tpu.memory_space<vmem>>, vector<2x480xf32>
    tpu.vector_store %arg13[%c0_25, %c0_26], %25 {strides = array<i32>} : memref<32x480xf32, #tpu.memory_space<vmem>>, vector<2x480xf32>,
    %c4_27 = arith.constant 4 : index
    %c0_28 = arith.constant 0 : index
    %27 = vector.load %arg12[%c4_27, %c0_28] : memref<200x30xf32, #tpu.memory_space<vmem>>, vector<2x30xf32>
    %c6_29 = arith.constant 6 : index
    %c0_30 = arith.constant 0 : index
    %28 = vector.load %arg12[%c6_29, %c0_30] : memref<200x30xf32, #tpu.memory_space<vmem>>, vector<2x30xf32>
    %c8 = arith.constant 8 : index
    %c0_31 = arith.constant 0 : index
    %29 = vector.load %arg12[%c8, %c0_31] : memref<200x30xf32, #tpu.memory_space<vmem>>, vector<2x30xf32>
    %c10 = arith.constant 10 : index
    %c0_32 = arith.constant 0 : index
    %30 = vector.load %arg12[%c10, %c0_32] : memref<200x30xf32, #tpu.memory_space<vmem>>, vector<2x30xf32>
    %c24_33 = arith.constant 24 : index
    %c0_34 = arith.constant 0 : index
    %31 = vector.load %arg12[%c24_33, %c0_34] : memref<200x30xf32, #tpu.memory_space<vmem>>, vector<2x30xf32>
    %c26_35 = arith.constant 26 : index
    %c0_36 = arith.constant 0 : index
    %32 = vector.load %arg12[%c26_35, %c0_36] : memref<200x30xf32, #tpu.memory_space<vmem>>, vector<2x30xf32>
    %c28 = arith.constant 28 : index
    %c0_37 = arith.constant 0 : index
    %33 = vector.load %arg12[%c28, %c0_37] : memref<200x30xf32, #tpu.memory_space<vmem>>, vector<2x30xf32>
    %c30 = arith.constant 30 : index
    %c0_38 = arith.constant 0 : index
    %34 = vector.load %arg12[%c30, %c0_38] : memref<200x30xf32, #tpu.memory_space<vmem>>, vector<2x30xf32>
    %c44_39 = arith.constant 44 : index
    %c0_40 = arith.constant 0 : index
    %35 = vector.load %arg12[%c44_39, %c0_40] : memref<200x30xf32, #tpu.memory_space<vmem>>, vector<2x30xf32>
    %c46_41 = arith.constant 46 : index
    %c0_42 = arith.constant 0 : index
    %36 = vector.load %arg12[%c46_41, %c0_42] : memref<200x30xf32, #tpu.memory_space<vmem>>, vector<2x30xf32>
    %c48 = arith.constant 48 : index
    %c0_43 = arith.constant 0 : index
    %37 = vector.load %arg12[%c48, %c0_43] : memref<200x30xf32, #tpu.memory_space<vmem>>, vector<2x30xf32>
    %c50 = arith.constant 50 : index
    %c0_44 = arith.constant 0 : index
    %38 = vector.load %arg12[%c50, %c0_44] : memref<200x30xf32, #tpu.memory_space<vmem>>, vector<2x30xf32>
    %c64_45 = arith.constant 64 : index
    %c0_46 = arith.constant 0 : index
    %39 = vector.load %arg12[%c64_45, %c0_46] : memref<200x30xf32, #tpu.memory_space<vmem>>, vector<2x30xf32>
    %c66_47 = arith.constant 66 : index
    %c0_48 = arith.constant 0 : index
    %40 = vector.load %arg12[%c66_47, %c0_48] : memref<200x30xf32, #tpu.memory_space<vmem>>, vector<2x30xf32>
    %c68 = arith.constant 68 : index
    %c0_49 = arith.constant 0 : index
    %41 = vector.load %arg12[%c68, %c0_49] : memref<200x30xf32, #tpu.memory_space<vmem>>, vector<2x30xf32>
    %c70 = arith.constant 70 : index
    %c0_50 = arith.constant 0 : index
    %42 = vector.load %arg12[%c70, %c0_50] : memref<200x30xf32, #tpu.memory_space<vmem>>, vector<2x30xf32>
    %43 = tpu.concatenate %27, %28, %29, %30, %31, %32, %33, %34, %35, %36, %37, %38, %39, %40, %41, %42 in 1 : vector<2x30xf32>, vector<2x30xf32>, vector<2x30xf32>, vector<2x30xf32>, vector<2x30xf32>, vector<2x30xf32>, vector<2x30xf32>, vector<2x30xf32>, vector<2x30xf32>, vector<2x30xf32>, vector<2x30xf32>, vector<2x30xf32>, vector<2x30xf32>, vector<2x30xf32>, vector<2x30xf32>, vector<2x30xf32> -> vector<2x480xf32>
    %c2_51 = arith.constant 2 : index
    %c0_52 = arith.constant 0 : index
    %44 = vector.load %arg13[%c2_51, %c0_52] : memref<32x480xf32, #tpu.memory_space<vmem>>, vector<2x480xf32>
    tpu.vector_store %arg13[%c2_51, %c0_52], %43 {strides = array<i32>} : memref<32x480xf32, #tpu.memory_space<vmem>>, vector<2x480xf32>,
    %c8_53 = arith.constant 8 : index
    %c0_54 = arith.constant 0 : index
    %45 = vector.load %arg12[%c8_53, %c0_54] : memref<200x30xf32, #tpu.memory_space<vmem>>, vector<2x30xf32>
    %c10_55 = arith.constant 10 : index
    %c0_56 = arith.constant 0 : index
    %46 = vector.load %arg12[%c10_55, %c0_56] : memref<200x30xf32, #tpu.memory_space<vmem>>, vector<2x30xf32>
    %c12 = arith.constant 12 : index
    %c0_57 = arith.constant 0 : index
    %47 = vector.load %arg12[%c12, %c0_57] : memref<200x30xf32, #tpu.memory_space<vmem>>, vector<2x30xf32>
    %c14 = arith.constant 14 : index
    %c0_58 = arith.constant 0 : index
    %48 = vector.load %arg12[%c14, %c0_58] : memref<200x30xf32, #tpu.memory_space<vmem>>, vector<2x30xf32>
    %c28_59 = arith.constant 28 : index
    %c0_60 = arith.constant 0 : index
    %49 = vector.load %arg12[%c28_59, %c0_60] : memref<200x30xf32, #tpu.memory_space<vmem>>, vector<2x30xf32>
    %c30_61 = arith.constant 30 : index
    %c0_62 = arith.constant 0 : index
    %50 = vector.load %arg12[%c30_61, %c0_62] : memref<200x30xf32, #tpu.memory_space<vmem>>, vector<2x30xf32>
    %c32 = arith.constant 32 : index
    %c0_63 = arith.constant 0 : index
    %51 = vector.load %arg12[%c32, %c0_63] : memref<200x30xf32, #tpu.memory_space<vmem>>, vector<2x30xf32>
    %c34 = arith.constant 34 : index
    %c0_64 = arith.constant 0 : index
    %52 = vector.load %arg12[%c34, %c0_64] : memref<200x30xf32, #tpu.memory_space<vmem>>, vector<2x30xf32>
    %c48_65 = arith.constant 48 : index
    %c0_66 = arith.constant 0 : index
    %53 = vector.load %arg12[%c48_65, %c0_66] : memref<200x30xf32, #tpu.memory_space<vmem>>, vector<2x30xf32>
    %c50_67 = arith.constant 50 : index
    %c0_68 = arith.constant 0 : index
    %54 = vector.load %arg12[%c50_67, %c0_68] : memref<200x30xf32, #tpu.memory_space<vmem>>, vector<2x30xf32>
    %c52 = arith.constant 52 : index
    %c0_69 = arith.constant 0 : index
    %55 = vector.load %arg12[%c52, %c0_69] : memref<200x30xf32, #tpu.memory_space<vmem>>, vector<2x30xf32>
    %c54 = arith.constant 54 : index
    %c0_70 = arith.constant 0 : index
    %56 = vector.load %arg12[%c54, %c0_70] : memref<200x30xf32, #tpu.memory_space<vmem>>, vector<2x30xf32>
    %c68_71 = arith.constant 68 : index
    %c0_72 = arith.constant 0 : index
    %57 = vector.load %arg12[%c68_71, %c0_72] : memref<200x30xf32, #tpu.memory_space<vmem>>, vector<2x30xf32>
    %c70_73 = arith.constant 70 : index
    %c0_74 = arith.constant 0 : index
    %58 = vector.load %arg12[%c70_73, %c0_74] : memref<200x30xf32, #tpu.memory_space<vmem>>, vector<2x30xf32>
    %c72 = arith.constant 72 : index
    %c0_75 = arith.constant 0 : index
    %59 = vector.load %arg12[%c72, %c0_75] : memref<200x30xf32, #tpu.memory_space<vmem>>, vector<2x30xf32>
    %c74 = arith.constant 74 : index
    %c0_76 = arith.constant 0 : index
    %60 = vector.load %arg12[%c74, %c0_76] : memref<200x30xf32, #tpu.memory_space<vmem>>, vector<2x30xf32>
    %61 = tpu.concatenate %45, %46, %47, %48, %49, %50, %51, %52, %53, %54, %55, %56, %57, %58, %59, %60 in 1 : vector<2x30xf32>, vector<2x30xf32>, vector<2x30xf32>, vector<2x30xf32>, vector<2x30xf32>, vector<2x30xf32>, vector<2x30xf32>, vector<2x30xf32>, vector<2x30xf32>, vector<2x30xf32>, vector<2x30xf32>, vector<2x30xf32>, vector<2x30xf32>, vector<2x30xf32>, vector<2x30xf32>, vector<2x30xf32> -> vector<2x480xf32>
    %c4_77 = arith.constant 4 : index
    %c0_78 = arith.constant 0 : index
    %62 = vector.load %arg13[%c4_77, %c0_78] : memref<32x480xf32, #tpu.memory_space<vmem>>, vector<2x480xf32>
    tpu.vector_store %arg13[%c4_77, %c0_78], %61 {strides = array<i32>} : memref<32x480xf32, #tpu.memory_space<vmem>>, vector<2x480xf32>,
    %c12_79 = arith.constant 12 : index
    %c0_80 = arith.constant 0 : index
    %63 = vector.load %arg12[%c12_79, %c0_80] : memref<200x30xf32, #tpu.memory_space<vmem>>, vector<2x30xf32>
    %c14_81 = arith.constant 14 : index
    %c0_82 = arith.constant 0 : index
    %64 = vector.load %arg12[%c14_81, %c0_82] : memref<200x30xf32, #tpu.memory_space<vmem>>, vector<2x30xf32>
    %c16 = arith.constant 16 : index
    %c0_83 = arith.constant 0 : index
    %65 = vector.load %arg12[%c16, %c0_83] : memref<200x30xf32, #tpu.memory_space<vmem>>, vector<2x30xf32>
    %c18 = arith.constant 18 : index
    %c0_84 = arith.constant 0 : index
    %66 = vector.load %arg12[%c18, %c0_84] : memref<200x30xf32, #tpu.memory_space<vmem>>, vector<2x30xf32>
    %c32_85 = arith.constant 32 : index
    %c0_86 = arith.constant 0 : index
    %67 = vector.load %arg12[%c32_85, %c0_86] : memref<200x30xf32, #tpu.memory_space<vmem>>, vector<2x30xf32>
    %c34_87 = arith.constant 34 : index
    %c0_88 = arith.constant 0 : index
    %68 = vector.load %arg12[%c34_87, %c0_88] : memref<200x30xf32, #tpu.memory_space<vmem>>, vector<2x30xf32>
    %c36 = arith.constant 36 : index
    %c0_89 = arith.constant 0 : index
    %69 = vector.load %arg12[%c36, %c0_89] : memref<200x30xf32, #tpu.memory_space<vmem>>, vector<2x30xf32>
    %c38 = arith.constant 38 : index
    %c0_90 = arith.constant 0 : index
    %70 = vector.load %arg12[%c38, %c0_90] : memref<200x30xf32, #tpu.memory_space<vmem>>, vector<2x30xf32>
    %c52_91 = arith.constant 52 : index
    %c0_92 = arith.constant 0 : index
    %71 = vector.load %arg12[%c52_91, %c0_92] : memref<200x30xf32, #tpu.memory_space<vmem>>, vector<2x30xf32>
    %c54_93 = arith.constant 54 : index
    %c0_94 = arith.constant 0 : index
    %72 = vector.load %arg12[%c54_93, %c0_94] : memref<200x30xf32, #tpu.memory_space<vmem>>, vector<2x30xf32>
    %c56 = arith.constant 56 : index
    %c0_95 = arith.constant 0 : index
    %73 = vector.load %arg12[%c56, %c0_95] : memref<200x30xf32, #tpu.memory_space<vmem>>, vector<2x30xf32>
    %c58 = arith.constant 58 : index
    %c0_96 = arith.constant 0 : index
    %74 = vector.load %arg12[%c58, %c0_96] : memref<200x30xf32, #tpu.memory_space<vmem>>, vector<2x30xf32>
    %c72_97 = arith.constant 72 : index
    %c0_98 = arith.constant 0 : index
    %75 = vector.load %arg12[%c72_97, %c0_98] : memref<200x30xf32, #tpu.memory_space<vmem>>, vector<2x30xf32>
    %c74_99 = arith.constant 74 : index
    %c0_100 = arith.constant 0 : index
    %76 = vector.load %arg12[%c74_99, %c0_100] : memref<200x30xf32, #tpu.memory_space<vmem>>, vector<2x30xf32>
    %c76 = arith.constant 76 : index
    %c0_101 = arith.constant 0 : index
    %77 = vector.load %arg12[%c76, %c0_101] : memref<200x30xf32, #tpu.memory_space<vmem>>, vector<2x30xf32>
    %c78 = arith.constant 78 : index
    %c0_102 = arith.constant 0 : index
    %78 = vector.load %arg12[%c78, %c0_102] : memref<200x30xf32, #tpu.memory_space<vmem>>, vector<2x30xf32>
    %79 = tpu.concatenate %63, %64, %65, %66, %67, %68, %69, %70, %71, %72, %73, %74, %75, %76, %77, %78 in 1 : vector<2x30xf32>, vector<2x30xf32>, vector<2x30xf32>, vector<2x30xf32>, vector<2x30xf32>, vector<2x30xf32>, vector<2x30xf32>, vector<2x30xf32>, vector<2x30xf32>, vector<2x30xf32>, vector<2x30xf32>, vector<2x30xf32>, vector<2x30xf32>, vector<2x30xf32>, vector<2x30xf32>, vector<2x30xf32> -> vector<2x480xf32>
    %c6_103 = arith.constant 6 : index
    %c0_104 = arith.constant 0 : index
    %80 = vector.load %arg13[%c6_103, %c0_104] : memref<32x480xf32, #tpu.memory_space<vmem>>, vector<2x480xf32>
    tpu.vector_store %arg13[%c6_103, %c0_104], %79 {strides = array<i32>} : memref<32x480xf32, #tpu.memory_space<vmem>>, vector<2x480xf32>,
    %c40_105 = arith.constant 40 : index
    %c0_106 = arith.constant 0 : index
    %81 = vector.load %arg12[%c40_105, %c0_106] : memref<200x30xf32, #tpu.memory_space<vmem>>, vector<2x30xf32>
    %c42_107 = arith.constant 42 : index
    %c0_108 = arith.constant 0 : index
    %82 = vector.load %arg12[%c42_107, %c0_108] : memref<200x30xf32, #tpu.memory_space<vmem>>, vector<2x30xf32>
    %c44_109 = arith.constant 44 : index
    %c0_110 = arith.constant 0 : index
    %83 = vector.load %arg12[%c44_109, %c0_110] : memref<200x30xf32, #tpu.memory_space<vmem>>, vector<2x30xf32>
    %c46_111 = arith.constant 46 : index
    %c0_112 = arith.constant 0 : index
    %84 = vector.load %arg12[%c46_111, %c0_112] : memref<200x30xf32, #tpu.memory_space<vmem>>, vector<2x30xf32>
    %c60_113 = arith.constant 60 : index
    %c0_114 = arith.constant 0 : index
    %85 = vector.load %arg12[%c60_113, %c0_114] : memref<200x30xf32, #tpu.memory_space<vmem>>, vector<2x30xf32>
    %c62_115 = arith.constant 62 : index
    %c0_116 = arith.constant 0 : index
    %86 = vector.load %arg12[%c62_115, %c0_116] : memref<200x30xf32, #tpu.memory_space<vmem>>, vector<2x30xf32>
    %c64_117 = arith.constant 64 : index
    %c0_118 = arith.constant 0 : index
    %87 = vector.load %arg12[%c64_117, %c0_118] : memref<200x30xf32, #tpu.memory_space<vmem>>, vector<2x30xf32>
    %c66_119 = arith.constant 66 : index
    %c0_120 = arith.constant 0 : index
    %88 = vector.load %arg12[%c66_119, %c0_120] : memref<200x30xf32, #tpu.memory_space<vmem>>, vector<2x30xf32>
    %c80 = arith.constant 80 : index
    %c0_121 = arith.constant 0 : index
    %89 = vector.load %arg12[%c80, %c0_121] : memref<200x30xf32, #tpu.memory_space<vmem>>, vector<2x30xf32>
    %c82 = arith.constant 82 : index
    %c0_122 = arith.constant 0 : index
    %90 = vector.load %arg12[%c82, %c0_122] : memref<200x30xf32, #tpu.memory_space<vmem>>, vector<2x30xf32>
    %c84 = arith.constant 84 : index
    %c0_123 = arith.constant 0 : index
    %91 = vector.load %arg12[%c84, %c0_123] : memref<200x30xf32, #tpu.memory_space<vmem>>, vector<2x30xf32>
    %c86 = arith.constant 86 : index
    %c0_124 = arith.constant 0 : index
    %92 = vector.load %arg12[%c86, %c0_124] : memref<200x30xf32, #tpu.memory_space<vmem>>, vector<2x30xf32>
    %c100 = arith.constant 100 : index
    %c0_125 = arith.constant 0 : index
    %93 = vector.load %arg12[%c100, %c0_125] : memref<200x30xf32, #tpu.memory_space<vmem>>, vector<2x30xf32>
    %c102 = arith.constant 102 : index
    %c0_126 = arith.constant 0 : index
    %94 = vector.load %arg12[%c102, %c0_126] : memref<200x30xf32, #tpu.memory_space<vmem>>, vector<2x30xf32>
    %c104 = arith.constant 104 : index
    %c0_127 = arith.constant 0 : index
    %95 = vector.load %arg12[%c104, %c0_127] : memref<200x30xf32, #tpu.memory_space<vmem>>, vector<2x30xf32>
    %c106 = arith.constant 106 : index
    %c0_128 = arith.constant 0 : index
    %96 = vector.load %arg12[%c106, %c0_128] : memref<200x30xf32, #tpu.memory_space<vmem>>, vector<2x30xf32>
    %97 = tpu.concatenate %81, %82, %83, %84, %85, %86, %87, %88, %89, %90, %91, %92, %93, %94, %95, %96 in 1 : vector<2x30xf32>, vector<2x30xf32>, vector<2x30xf32>, vector<2x30xf32>, vector<2x30xf32>, vector<2x30xf32>, vector<2x30xf32>, vector<2x30xf32>, vector<2x30xf32>, vector<2x30xf32>, vector<2x30xf32>, vector<2x30xf32>, vector<2x30xf32>, vector<2x30xf32>, vector<2x30xf32>, vector<2x30xf32> -> vector<2x480xf32>
    %c8_129 = arith.constant 8 : index
    %c0_130 = arith.constant 0 : index
    %98 = vector.load %arg13[%c8_129, %c0_130] : memref<32x480xf32, #tpu.memory_space<vmem>>, vector<2x480xf32>
    tpu.vector_store %arg13[%c8_129, %c0_130], %97 {strides = array<i32>} : memref<32x480xf32, #tpu.memory_space<vmem>>, vector<2x480xf32>,
    %c44_131 = arith.constant 44 : index
    %c0_132 = arith.constant 0 : index
    %99 = vector.load %arg12[%c44_131, %c0_132] : memref<200x30xf32, #tpu.memory_space<vmem>>, vector<2x30xf32>
    %c46_133 = arith.constant 46 : index
    %c0_134 = arith.constant 0 : index
    %100 = vector.load %arg12[%c46_133, %c0_134] : memref<200x30xf32, #tpu.memory_space<vmem>>, vector<2x30xf32>
    %c48_135 = arith.constant 48 : index
    %c0_136 = arith.constant 0 : index
    %101 = vector.load %arg12[%c48_135, %c0_136] : memref<200x30xf32, #tpu.memory_space<vmem>>, vector<2x30xf32>
    %c50_137 = arith.constant 50 : index
    %c0_138 = arith.constant 0 : index
    %102 = vector.load %arg12[%c50_137, %c0_138] : memref<200x30xf32, #tpu.memory_space<vmem>>, vector<2x30xf32>
    %c64_139 = arith.constant 64 : index
    %c0_140 = arith.constant 0 : index
    %103 = vector.load %arg12[%c64_139, %c0_140] : memref<200x30xf32, #tpu.memory_space<vmem>>, vector<2x30xf32>
    %c66_141 = arith.constant 66 : index
    %c0_142 = arith.constant 0 : index
    %104 = vector.load %arg12[%c66_141, %c0_142] : memref<200x30xf32, #tpu.memory_space<vmem>>, vector<2x30xf32>
    %c68_143 = arith.constant 68 : index
    %c0_144 = arith.constant 0 : index
    %105 = vector.load %arg12[%c68_143, %c0_144] : memref<200x30xf32, #tpu.memory_space<vmem>>, vector<2x30xf32>
    %c70_145 = arith.constant 70 : index
    %c0_146 = arith.constant 0 : index
    %106 = vector.load %arg12[%c70_145, %c0_146] : memref<200x30xf32, #tpu.memory_space<vmem>>, vector<2x30xf32>
    %c84_147 = arith.constant 84 : index
    %c0_148 = arith.constant 0 : index
    %107 = vector.load %arg12[%c84_147, %c0_148] : memref<200x30xf32, #tpu.memory_space<vmem>>, vector<2x30xf32>
    %c86_149 = arith.constant 86 : index
    %c0_150 = arith.constant 0 : index
    %108 = vector.load %arg12[%c86_149, %c0_150] : memref<200x30xf32, #tpu.memory_space<vmem>>, vector<2x30xf32>
    %c88 = arith.constant 88 : index
    %c0_151 = arith.constant 0 : index
    %109 = vector.load %arg12[%c88, %c0_151] : memref<200x30xf32, #tpu.memory_space<vmem>>, vector<2x30xf32>
    %c90 = arith.constant 90 : index
    %c0_152 = arith.constant 0 : index
    %110 = vector.load %arg12[%c90, %c0_152] : memref<200x30xf32, #tpu.memory_space<vmem>>, vector<2x30xf32>
    %c104_153 = arith.constant 104 : index
    %c0_154 = arith.constant 0 : index
    %111 = vector.load %arg12[%c104_153, %c0_154] : memref<200x30xf32, #tpu.memory_space<vmem>>, vector<2x30xf32>
    %c106_155 = arith.constant 106 : index
    %c0_156 = arith.constant 0 : index
    %112 = vector.load %arg12[%c106_155, %c0_156] : memref<200x30xf32, #tpu.memory_space<vmem>>, vector<2x30xf32>
    %c108 = arith.constant 108 : index
    %c0_157 = arith.constant 0 : index
    %113 = vector.load %arg12[%c108, %c0_157] : memref<200x30xf32, #tpu.memory_space<vmem>>, vector<2x30xf32>
    %c110 = arith.constant 110 : index
    %c0_158 = arith.constant 0 : index
    %114 = vector.load %arg12[%c110, %c0_158] : memref<200x30xf32, #tpu.memory_space<vmem>>, vector<2x30xf32>
    %115 = tpu.concatenate %99, %100, %101, %102, %103, %104, %105, %106, %107, %108, %109, %110, %111, %112, %113, %114 in 1 : vector<2x30xf32>, vector<2x30xf32>, vector<2x30xf32>, vector<2x30xf32>, vector<2x30xf32>, vector<2x30xf32>, vector<2x30xf32>, vector<2x30xf32>, vector<2x30xf32>, vector<2x30xf32>, vector<2x30xf32>, vector<2x30xf32>, vector<2x30xf32>, vector<2x30xf32>, vector<2x30xf32>, vector<2x30xf32> -> vector<2x480xf32>
    %c10_159 = arith.constant 10 : index
    %c0_160 = arith.constant 0 : index
    %116 = vector.load %arg13[%c10_159, %c0_160] : memref<32x480xf32, #tpu.memory_space<vmem>>, vector<2x480xf32>
    tpu.vector_store %arg13[%c10_159, %c0_160], %115 {strides = array<i32>} : memref<32x480xf32, #tpu.memory_space<vmem>>, vector<2x480xf32>,
    %c48_161 = arith.constant 48 : index
    %c0_162 = arith.constant 0 : index
    %117 = vector.load %arg12[%c48_161, %c0_162] : memref<200x30xf32, #tpu.memory_space<vmem>>, vector<2x30xf32>
    %c50_163 = arith.constant 50 : index
    %c0_164 = arith.constant 0 : index
    %118 = vector.load %arg12[%c50_163, %c0_164] : memref<200x30xf32, #tpu.memory_space<vmem>>, vector<2x30xf32>
    %c52_165 = arith.constant 52 : index
    %c0_166 = arith.constant 0 : index
    %119 = vector.load %arg12[%c52_165, %c0_166] : memref<200x30xf32, #tpu.memory_space<vmem>>, vector<2x30xf32>
    %c54_167 = arith.constant 54 : index
    %c0_168 = arith.constant 0 : index
    %120 = vector.load %arg12[%c54_167, %c0_168] : memref<200x30xf32, #tpu.memory_space<vmem>>, vector<2x30xf32>
    %c68_169 = arith.constant 68 : index
    %c0_170 = arith.constant 0 : index
    %121 = vector.load %arg12[%c68_169, %c0_170] : memref<200x30xf32, #tpu.memory_space<vmem>>, vector<2x30xf32>
    %c70_171 = arith.constant 70 : index
    %c0_172 = arith.constant 0 : index
    %122 = vector.load %arg12[%c70_171, %c0_172] : memref<200x30xf32, #tpu.memory_space<vmem>>, vector<2x30xf32>
    %c72_173 = arith.constant 72 : index
    %c0_174 = arith.constant 0 : index
    %123 = vector.load %arg12[%c72_173, %c0_174] : memref<200x30xf32, #tpu.memory_space<vmem>>, vector<2x30xf32>
    %c74_175 = arith.constant 74 : index
    %c0_176 = arith.constant 0 : index
    %124 = vector.load %arg12[%c74_175, %c0_176] : memref<200x30xf32, #tpu.memory_space<vmem>>, vector<2x30xf32>
    %c88_177 = arith.constant 88 : index
    %c0_178 = arith.constant 0 : index
    %125 = vector.load %arg12[%c88_177, %c0_178] : memref<200x30xf32, #tpu.memory_space<vmem>>, vector<2x30xf32>
    %c90_179 = arith.constant 90 : index
    %c0_180 = arith.constant 0 : index
    %126 = vector.load %arg12[%c90_179, %c0_180] : memref<200x30xf32, #tpu.memory_space<vmem>>, vector<2x30xf32>
    %c92 = arith.constant 92 : index
    %c0_181 = arith.constant 0 : index
    %127 = vector.load %arg12[%c92, %c0_181] : memref<200x30xf32, #tpu.memory_space<vmem>>, vector<2x30xf32>
    %c94 = arith.constant 94 : index
    %c0_182 = arith.constant 0 : index
    %128 = vector.load %arg12[%c94, %c0_182] : memref<200x30xf32, #tpu.memory_space<vmem>>, vector<2x30xf32>
    %c108_183 = arith.constant 108 : index
    %c0_184 = arith.constant 0 : index
    %129 = vector.load %arg12[%c108_183, %c0_184] : memref<200x30xf32, #tpu.memory_space<vmem>>, vector<2x30xf32>
    %c110_185 = arith.constant 110 : index
    %c0_186 = arith.constant 0 : index
    %130 = vector.load %arg12[%c110_185, %c0_186] : memref<200x30xf32, #tpu.memory_space<vmem>>, vector<2x30xf32>
    %c112 = arith.constant 112 : index
    %c0_187 = arith.constant 0 : index
    %131 = vector.load %arg12[%c112, %c0_187] : memref<200x30xf32, #tpu.memory_space<vmem>>, vector<2x30xf32>
    %c114 = arith.constant 114 : index
    %c0_188 = arith.constant 0 : index
    %132 = vector.load %arg12[%c114, %c0_188] : memref<200x30xf32, #tpu.memory_space<vmem>>, vector<2x30xf32>
    %133 = tpu.concatenate %117, %118, %119, %120, %121, %122, %123, %124, %125, %126, %127, %128, %129, %130, %131, %132 in 1 : vector<2x30xf32>, vector<2x30xf32>, vector<2x30xf32>, vector<2x30xf32>, vector<2x30xf32>, vector<2x30xf32>, vector<2x30xf32>, vector<2x30xf32>, vector<2x30xf32>, vector<2x30xf32>, vector<2x30xf32>, vector<2x30xf32>, vector<2x30xf32>, vector<2x30xf32>, vector<2x30xf32>, vector<2x30xf32> -> vector<2x480xf32>
    %c12_189 = arith.constant 12 : index
    %c0_190 = arith.constant 0 : index
    %134 = vector.load %arg13[%c12_189, %c0_190] : memref<32x480xf32, #tpu.memory_space<vmem>>, vector<2x480xf32>
    tpu.vector_store %arg13[%c12_189, %c0_190], %133 {strides = array<i32>} : memref<32x480xf32, #tpu.memory_space<vmem>>, vector<2x480xf32>,
    %c52_191 = arith.constant 52 : index
    %c0_192 = arith.constant 0 : index
    %135 = vector.load %arg12[%c52_191, %c0_192] : memref<200x30xf32, #tpu.memory_space<vmem>>, vector<2x30xf32>
    %c54_193 = arith.constant 54 : index
    %c0_194 = arith.constant 0 : index
    %136 = vector.load %arg12[%c54_193, %c0_194] : memref<200x30xf32, #tpu.memory_space<vmem>>, vector<2x30xf32>
    %c56_195 = arith.constant 56 : index
    %c0_196 = arith.constant 0 : index
    %137 = vector.load %arg12[%c56_195, %c0_196] : memref<200x30xf32, #tpu.memory_space<vmem>>, vector<2x30xf32>
    %c58_197 = arith.constant 58 : index
    %c0_198 = arith.constant 0 : index
    %138 = vector.load %arg12[%c58_197, %c0_198] : memref<200x30xf32, #tpu.memory_space<vmem>>, vector<2x30xf32>
    %c72_199 = arith.constant 72 : index
    %c0_200 = arith.constant 0 : index
    %139 = vector.load %arg12[%c72_199, %c0_200] : memref<200x30xf32, #tpu.memory_space<vmem>>, vector<2x30xf32>
    %c74_201 = arith.constant 74 : index
    %c0_202 = arith.constant 0 : index
    %140 = vector.load %arg12[%c74_201, %c0_202] : memref<200x30xf32, #tpu.memory_space<vmem>>, vector<2x30xf32>
    %c76_203 = arith.constant 76 : index
    %c0_204 = arith.constant 0 : index
    %141 = vector.load %arg12[%c76_203, %c0_204] : memref<200x30xf32, #tpu.memory_space<vmem>>, vector<2x30xf32>
    %c78_205 = arith.constant 78 : index
    %c0_206 = arith.constant 0 : index
    %142 = vector.load %arg12[%c78_205, %c0_206] : memref<200x30xf32, #tpu.memory_space<vmem>>, vector<2x30xf32>
    %c92_207 = arith.constant 92 : index
    %c0_208 = arith.constant 0 : index
    %143 = vector.load %arg12[%c92_207, %c0_208] : memref<200x30xf32, #tpu.memory_space<vmem>>, vector<2x30xf32>
    %c94_209 = arith.constant 94 : index
    %c0_210 = arith.constant 0 : index
    %144 = vector.load %arg12[%c94_209, %c0_210] : memref<200x30xf32, #tpu.memory_space<vmem>>, vector<2x30xf32>
    %c96 = arith.constant 96 : index
    %c0_211 = arith.constant 0 : index
    %145 = vector.load %arg12[%c96, %c0_211] : memref<200x30xf32, #tpu.memory_space<vmem>>, vector<2x30xf32>
    %c98 = arith.constant 98 : index
    %c0_212 = arith.constant 0 : index
    %146 = vector.load %arg12[%c98, %c0_212] : memref<200x30xf32, #tpu.memory_space<vmem>>, vector<2x30xf32>
    %c112_213 = arith.constant 112 : index
    %c0_214 = arith.constant 0 : index
    %147 = vector.load %arg12[%c112_213, %c0_214] : memref<200x30xf32, #tpu.memory_space<vmem>>, vector<2x30xf32>
    %c114_215 = arith.constant 114 : index
    %c0_216 = arith.constant 0 : index
    %148 = vector.load %arg12[%c114_215, %c0_216] : memref<200x30xf32, #tpu.memory_space<vmem>>, vector<2x30xf32>
    %c116 = arith.constant 116 : index
    %c0_217 = arith.constant 0 : index
    %149 = vector.load %arg12[%c116, %c0_217] : memref<200x30xf32, #tpu.memory_space<vmem>>, vector<2x30xf32>
    %c118 = arith.constant 118 : index
    %c0_218 = arith.constant 0 : index
    %150 = vector.load %arg12[%c118, %c0_218] : memref<200x30xf32, #tpu.memory_space<vmem>>, vector<2x30xf32>
    %151 = tpu.concatenate %135, %136, %137, %138, %139, %140, %141, %142, %143, %144, %145, %146, %147, %148, %149, %150 in 1 : vector<2x30xf32>, vector<2x30xf32>, vector<2x30xf32>, vector<2x30xf32>, vector<2x30xf32>, vector<2x30xf32>, vector<2x30xf32>, vector<2x30xf32>, vector<2x30xf32>, vector<2x30xf32>, vector<2x30xf32>, vector<2x30xf32>, vector<2x30xf32>, vector<2x30xf32>, vector<2x30xf32>, vector<2x30xf32> -> vector<2x480xf32>
    %c14_219 = arith.constant 14 : index
    %c0_220 = arith.constant 0 : index
    %152 = vector.load %arg13[%c14_219, %c0_220] : memref<32x480xf32, #tpu.memory_space<vmem>>, vector<2x480xf32>
    tpu.vector_store %arg13[%c14_219, %c0_220], %151 {strides = array<i32>} : memref<32x480xf32, #tpu.memory_space<vmem>>, vector<2x480xf32>,
    %c80_221 = arith.constant 80 : index
    %c0_222 = arith.constant 0 : index
    %153 = vector.load %arg12[%c80_221, %c0_222] : memref<200x30xf32, #tpu.memory_space<vmem>>, vector<2x30xf32>
    %c82_223 = arith.constant 82 : index
    %c0_224 = arith.constant 0 : index
    %154 = vector.load %arg12[%c82_223, %c0_224] : memref<200x30xf32, #tpu.memory_space<vmem>>, vector<2x30xf32>
    %c84_225 = arith.constant 84 : index
    %c0_226 = arith.constant 0 : index
    %155 = vector.load %arg12[%c84_225, %c0_226] : memref<200x30xf32, #tpu.memory_space<vmem>>, vector<2x30xf32>
    %c86_227 = arith.constant 86 : index
    %c0_228 = arith.constant 0 : index
    %156 = vector.load %arg12[%c86_227, %c0_228] : memref<200x30xf32, #tpu.memory_space<vmem>>, vector<2x30xf32>
    %c100_229 = arith.constant 100 : index
    %c0_230 = arith.constant 0 : index
    %157 = vector.load %arg12[%c100_229, %c0_230] : memref<200x30xf32, #tpu.memory_space<vmem>>, vector<2x30xf32>
    %c102_231 = arith.constant 102 : index
    %c0_232 = arith.constant 0 : index
    %158 = vector.load %arg12[%c102_231, %c0_232] : memref<200x30xf32, #tpu.memory_space<vmem>>, vector<2x30xf32>
    %c104_233 = arith.constant 104 : index
    %c0_234 = arith.constant 0 : index
    %159 = vector.load %arg12[%c104_233, %c0_234] : memref<200x30xf32, #tpu.memory_space<vmem>>, vector<2x30xf32>
    %c106_235 = arith.constant 106 : index
    %c0_236 = arith.constant 0 : index
    %160 = vector.load %arg12[%c106_235, %c0_236] : memref<200x30xf32, #tpu.memory_space<vmem>>, vector<2x30xf32>
    %c120 = arith.constant 120 : index
    %c0_237 = arith.constant 0 : index
    %161 = vector.load %arg12[%c120, %c0_237] : memref<200x30xf32, #tpu.memory_space<vmem>>, vector<2x30xf32>
    %c122 = arith.constant 122 : index
    %c0_238 = arith.constant 0 : index
    %162 = vector.load %arg12[%c122, %c0_238] : memref<200x30xf32, #tpu.memory_space<vmem>>, vector<2x30xf32>
    %c124 = arith.constant 124 : index
    %c0_239 = arith.constant 0 : index
    %163 = vector.load %arg12[%c124, %c0_239] : memref<200x30xf32, #tpu.memory_space<vmem>>, vector<2x30xf32>
    %c126 = arith.constant 126 : index
    %c0_240 = arith.constant 0 : index
    %164 = vector.load %arg12[%c126, %c0_240] : memref<200x30xf32, #tpu.memory_space<vmem>>, vector<2x30xf32>
    %c140 = arith.constant 140 : index
    %c0_241 = arith.constant 0 : index
    %165 = vector.load %arg12[%c140, %c0_241] : memref<200x30xf32, #tpu.memory_space<vmem>>, vector<2x30xf32>
    %c142 = arith.constant 142 : index
    %c0_242 = arith.constant 0 : index
    %166 = vector.load %arg12[%c142, %c0_242] : memref<200x30xf32, #tpu.memory_space<vmem>>, vector<2x30xf32>
    %c144 = arith.constant 144 : index
    %c0_243 = arith.constant 0 : index
    %167 = vector.load %arg12[%c144, %c0_243] : memref<200x30xf32, #tpu.memory_space<vmem>>, vector<2x30xf32>
    %c146 = arith.constant 146 : index
    %c0_244 = arith.constant 0 : index
    %168 = vector.load %arg12[%c146, %c0_244] : memref<200x30xf32, #tpu.memory_space<vmem>>, vector<2x30xf32>
    %169 = tpu.concatenate %153, %154, %155, %156, %157, %158, %159, %160, %161, %162, %163, %164, %165, %166, %167, %168 in 1 : vector<2x30xf32>, vector<2x30xf32>, vector<2x30xf32>, vector<2x30xf32>, vector<2x30xf32>, vector<2x30xf32>, vector<2x30xf32>, vector<2x30xf32>, vector<2x30xf32>, vector<2x30xf32>, vector<2x30xf32>, vector<2x30xf32>, vector<2x30xf32>, vector<2x30xf32>, vector<2x30xf32>, vector<2x30xf32> -> vector<2x480xf32>
    %c16_245 = arith.constant 16 : index
    %c0_246 = arith.constant 0 : index
    %170 = vector.load %arg13[%c16_245, %c0_246] : memref<32x480xf32, #tpu.memory_space<vmem>>, vector<2x480xf32>
    tpu.vector_store %arg13[%c16_245, %c0_246], %169 {strides = array<i32>} : memref<32x480xf32, #tpu.memory_space<vmem>>, vector<2x480xf32>,
    %c84_247 = arith.constant 84 : index
    %c0_248 = arith.constant 0 : index
    %171 = vector.load %arg12[%c84_247, %c0_248] : memref<200x30xf32, #tpu.memory_space<vmem>>, vector<2x30xf32>
    %c86_249 = arith.constant 86 : index
    %c0_250 = arith.constant 0 : index
    %172 = vector.load %arg12[%c86_249, %c0_250] : memref<200x30xf32, #tpu.memory_space<vmem>>, vector<2x30xf32>
    %c88_251 = arith.constant 88 : index
    %c0_252 = arith.constant 0 : index
    %173 = vector.load %arg12[%c88_251, %c0_252] : memref<200x30xf32, #tpu.memory_space<vmem>>, vector<2x30xf32>
    %c90_253 = arith.constant 90 : index
    %c0_254 = arith.constant 0 : index
    %174 = vector.load %arg12[%c90_253, %c0_254] : memref<200x30xf32, #tpu.memory_space<vmem>>, vector<2x30xf32>
    %c104_255 = arith.constant 104 : index
    %c0_256 = arith.constant 0 : index
    %175 = vector.load %arg12[%c104_255, %c0_256] : memref<200x30xf32, #tpu.memory_space<vmem>>, vector<2x30xf32>
    %c106_257 = arith.constant 106 : index
    %c0_258 = arith.constant 0 : index
    %176 = vector.load %arg12[%c106_257, %c0_258] : memref<200x30xf32, #tpu.memory_space<vmem>>, vector<2x30xf32>
    %c108_259 = arith.constant 108 : index
    %c0_260 = arith.constant 0 : index
    %177 = vector.load %arg12[%c108_259, %c0_260] : memref<200x30xf32, #tpu.memory_space<vmem>>, vector<2x30xf32>
    %c110_261 = arith.constant 110 : index
    %c0_262 = arith.constant 0 : index
    %178 = vector.load %arg12[%c110_261, %c0_262] : memref<200x30xf32, #tpu.memory_space<vmem>>, vector<2x30xf32>
    %c124_263 = arith.constant 124 : index
    %c0_264 = arith.constant 0 : index
    %179 = vector.load %arg12[%c124_263, %c0_264] : memref<200x30xf32, #tpu.memory_space<vmem>>, vector<2x30xf32>
    %c126_265 = arith.constant 126 : index
    %c0_266 = arith.constant 0 : index
    %180 = vector.load %arg12[%c126_265, %c0_266] : memref<200x30xf32, #tpu.memory_space<vmem>>, vector<2x30xf32>
    %c128 = arith.constant 128 : index
    %c0_267 = arith.constant 0 : index
    %181 = vector.load %arg12[%c128, %c0_267] : memref<200x30xf32, #tpu.memory_space<vmem>>, vector<2x30xf32>
    %c130 = arith.constant 130 : index
    %c0_268 = arith.constant 0 : index
    %182 = vector.load %arg12[%c130, %c0_268] : memref<200x30xf32, #tpu.memory_space<vmem>>, vector<2x30xf32>
    %c144_269 = arith.constant 144 : index
    %c0_270 = arith.constant 0 : index
    %183 = vector.load %arg12[%c144_269, %c0_270] : memref<200x30xf32, #tpu.memory_space<vmem>>, vector<2x30xf32>
    %c146_271 = arith.constant 146 : index
    %c0_272 = arith.constant 0 : index
    %184 = vector.load %arg12[%c146_271, %c0_272] : memref<200x30xf32, #tpu.memory_space<vmem>>, vector<2x30xf32>
    %c148 = arith.constant 148 : index
    %c0_273 = arith.constant 0 : index
    %185 = vector.load %arg12[%c148, %c0_273] : memref<200x30xf32, #tpu.memory_space<vmem>>, vector<2x30xf32>
    %c150 = arith.constant 150 : index
    %c0_274 = arith.constant 0 : index
    %186 = vector.load %arg12[%c150, %c0_274] : memref<200x30xf32, #tpu.memory_space<vmem>>, vector<2x30xf32>
    %187 = tpu.concatenate %171, %172, %173, %174, %175, %176, %177, %178, %179, %180, %181, %182, %183, %184, %185, %186 in 1 : vector<2x30xf32>, vector<2x30xf32>, vector<2x30xf32>, vector<2x30xf32>, vector<2x30xf32>, vector<2x30xf32>, vector<2x30xf32>, vector<2x30xf32>, vector<2x30xf32>, vector<2x30xf32>, vector<2x30xf32>, vector<2x30xf32>, vector<2x30xf32>, vector<2x30xf32>, vector<2x30xf32>, vector<2x30xf32> -> vector<2x480xf32>
    %c18_275 = arith.constant 18 : index
    %c0_276 = arith.constant 0 : index
    %188 = vector.load %arg13[%c18_275, %c0_276] : memref<32x480xf32, #tpu.memory_space<vmem>>, vector<2x480xf32>
    tpu.vector_store %arg13[%c18_275, %c0_276], %187 {strides = array<i32>} : memref<32x480xf32, #tpu.memory_space<vmem>>, vector<2x480xf32>,
    %c88_277 = arith.constant 88 : index
    %c0_278 = arith.constant 0 : index
    %189 = vector.load %arg12[%c88_277, %c0_278] : memref<200x30xf32, #tpu.memory_space<vmem>>, vector<2x30xf32>
    %c90_279 = arith.constant 90 : index
    %c0_280 = arith.constant 0 : index
    %190 = vector.load %arg12[%c90_279, %c0_280] : memref<200x30xf32, #tpu.memory_space<vmem>>, vector<2x30xf32>
    %c92_281 = arith.constant 92 : index
    %c0_282 = arith.constant 0 : index
    %191 = vector.load %arg12[%c92_281, %c0_282] : memref<200x30xf32, #tpu.memory_space<vmem>>, vector<2x30xf32>
    %c94_283 = arith.constant 94 : index
    %c0_284 = arith.constant 0 : index
    %192 = vector.load %arg12[%c94_283, %c0_284] : memref<200x30xf32, #tpu.memory_space<vmem>>, vector<2x30xf32>
    %c108_285 = arith.constant 108 : index
    %c0_286 = arith.constant 0 : index
    %193 = vector.load %arg12[%c108_285, %c0_286] : memref<200x30xf32, #tpu.memory_space<vmem>>, vector<2x30xf32>
    %c110_287 = arith.constant 110 : index
    %c0_288 = arith.constant 0 : index
    %194 = vector.load %arg12[%c110_287, %c0_288] : memref<200x30xf32, #tpu.memory_space<vmem>>, vector<2x30xf32>
    %c112_289 = arith.constant 112 : index
    %c0_290 = arith.constant 0 : index
    %195 = vector.load %arg12[%c112_289, %c0_290] : memref<200x30xf32, #tpu.memory_space<vmem>>, vector<2x30xf32>
    %c114_291 = arith.constant 114 : index
    %c0_292 = arith.constant 0 : index
    %196 = vector.load %arg12[%c114_291, %c0_292] : memref<200x30xf32, #tpu.memory_space<vmem>>, vector<2x30xf32>
    %c128_293 = arith.constant 128 : index
    %c0_294 = arith.constant 0 : index
    %197 = vector.load %arg12[%c128_293, %c0_294] : memref<200x30xf32, #tpu.memory_space<vmem>>, vector<2x30xf32>
    %c130_295 = arith.constant 130 : index
    %c0_296 = arith.constant 0 : index
    %198 = vector.load %arg12[%c130_295, %c0_296] : memref<200x30xf32, #tpu.memory_space<vmem>>, vector<2x30xf32>
    %c132 = arith.constant 132 : index
    %c0_297 = arith.constant 0 : index
    %199 = vector.load %arg12[%c132, %c0_297] : memref<200x30xf32, #tpu.memory_space<vmem>>, vector<2x30xf32>
    %c134 = arith.constant 134 : index
    %c0_298 = arith.constant 0 : index
    %200 = vector.load %arg12[%c134, %c0_298] : memref<200x30xf32, #tpu.memory_space<vmem>>, vector<2x30xf32>
    %c148_299 = arith.constant 148 : index
    %c0_300 = arith.constant 0 : index
    %201 = vector.load %arg12[%c148_299, %c0_300] : memref<200x30xf32, #tpu.memory_space<vmem>>, vector<2x30xf32>
    %c150_301 = arith.constant 150 : index
    %c0_302 = arith.constant 0 : index
    %202 = vector.load %arg12[%c150_301, %c0_302] : memref<200x30xf32, #tpu.memory_space<vmem>>, vector<2x30xf32>
    %c152 = arith.constant 152 : index
    %c0_303 = arith.constant 0 : index
    %203 = vector.load %arg12[%c152, %c0_303] : memref<200x30xf32, #tpu.memory_space<vmem>>, vector<2x30xf32>
    %c154 = arith.constant 154 : index
    %c0_304 = arith.constant 0 : index
    %204 = vector.load %arg12[%c154, %c0_304] : memref<200x30xf32, #tpu.memory_space<vmem>>, vector<2x30xf32>
    %205 = tpu.concatenate %189, %190, %191, %192, %193, %194, %195, %196, %197, %198, %199, %200, %201, %202, %203, %204 in 1 : vector<2x30xf32>, vector<2x30xf32>, vector<2x30xf32>, vector<2x30xf32>, vector<2x30xf32>, vector<2x30xf32>, vector<2x30xf32>, vector<2x30xf32>, vector<2x30xf32>, vector<2x30xf32>, vector<2x30xf32>, vector<2x30xf32>, vector<2x30xf32>, vector<2x30xf32>, vector<2x30xf32>, vector<2x30xf32> -> vector<2x480xf32>
    %c20_305 = arith.constant 20 : index
    %c0_306 = arith.constant 0 : index
    %206 = vector.load %arg13[%c20_305, %c0_306] : memref<32x480xf32, #tpu.memory_space<vmem>>, vector<2x480xf32>
    tpu.vector_store %arg13[%c20_305, %c0_306], %205 {strides = array<i32>} : memref<32x480xf32, #tpu.memory_space<vmem>>, vector<2x480xf32>,
    %c92_307 = arith.constant 92 : index
    %c0_308 = arith.constant 0 : index
    %207 = vector.load %arg12[%c92_307, %c0_308] : memref<200x30xf32, #tpu.memory_space<vmem>>, vector<2x30xf32>
    %c94_309 = arith.constant 94 : index
    %c0_310 = arith.constant 0 : index
    %208 = vector.load %arg12[%c94_309, %c0_310] : memref<200x30xf32, #tpu.memory_space<vmem>>, vector<2x30xf32>
    %c96_311 = arith.constant 96 : index
    %c0_312 = arith.constant 0 : index
    %209 = vector.load %arg12[%c96_311, %c0_312] : memref<200x30xf32, #tpu.memory_space<vmem>>, vector<2x30xf32>
    %c98_313 = arith.constant 98 : index
    %c0_314 = arith.constant 0 : index
    %210 = vector.load %arg12[%c98_313, %c0_314] : memref<200x30xf32, #tpu.memory_space<vmem>>, vector<2x30xf32>
    %c112_315 = arith.constant 112 : index
    %c0_316 = arith.constant 0 : index
    %211 = vector.load %arg12[%c112_315, %c0_316] : memref<200x30xf32, #tpu.memory_space<vmem>>, vector<2x30xf32>
    %c114_317 = arith.constant 114 : index
    %c0_318 = arith.constant 0 : index
    %212 = vector.load %arg12[%c114_317, %c0_318] : memref<200x30xf32, #tpu.memory_space<vmem>>, vector<2x30xf32>
    %c116_319 = arith.constant 116 : index
    %c0_320 = arith.constant 0 : index
    %213 = vector.load %arg12[%c116_319, %c0_320] : memref<200x30xf32, #tpu.memory_space<vmem>>, vector<2x30xf32>
    %c118_321 = arith.constant 118 : index
    %c0_322 = arith.constant 0 : index
    %214 = vector.load %arg12[%c118_321, %c0_322] : memref<200x30xf32, #tpu.memory_space<vmem>>, vector<2x30xf32>
    %c132_323 = arith.constant 132 : index
    %c0_324 = arith.constant 0 : index
    %215 = vector.load %arg12[%c132_323, %c0_324] : memref<200x30xf32, #tpu.memory_space<vmem>>, vector<2x30xf32>
    %c134_325 = arith.constant 134 : index
    %c0_326 = arith.constant 0 : index
    %216 = vector.load %arg12[%c134_325, %c0_326] : memref<200x30xf32, #tpu.memory_space<vmem>>, vector<2x30xf32>
    %c136 = arith.constant 136 : index
    %c0_327 = arith.constant 0 : index
    %217 = vector.load %arg12[%c136, %c0_327] : memref<200x30xf32, #tpu.memory_space<vmem>>, vector<2x30xf32>
    %c138 = arith.constant 138 : index
    %c0_328 = arith.constant 0 : index
    %218 = vector.load %arg12[%c138, %c0_328] : memref<200x30xf32, #tpu.memory_space<vmem>>, vector<2x30xf32>
    %c152_329 = arith.constant 152 : index
    %c0_330 = arith.constant 0 : index
    %219 = vector.load %arg12[%c152_329, %c0_330] : memref<200x30xf32, #tpu.memory_space<vmem>>, vector<2x30xf32>
    %c154_331 = arith.constant 154 : index
    %c0_332 = arith.constant 0 : index
    %220 = vector.load %arg12[%c154_331, %c0_332] : memref<200x30xf32, #tpu.memory_space<vmem>>, vector<2x30xf32>
    %c156 = arith.constant 156 : index
    %c0_333 = arith.constant 0 : index
    %221 = vector.load %arg12[%c156, %c0_333] : memref<200x30xf32, #tpu.memory_space<vmem>>, vector<2x30xf32>
    %c158 = arith.constant 158 : index
    %c0_334 = arith.constant 0 : index
    %222 = vector.load %arg12[%c158, %c0_334] : memref<200x30xf32, #tpu.memory_space<vmem>>, vector<2x30xf32>
    %223 = tpu.concatenate %207, %208, %209, %210, %211, %212, %213, %214, %215, %216, %217, %218, %219, %220, %221, %222 in 1 : vector<2x30xf32>, vector<2x30xf32>, vector<2x30xf32>, vector<2x30xf32>, vector<2x30xf32>, vector<2x30xf32>, vector<2x30xf32>, vector<2x30xf32>, vector<2x30xf32>, vector<2x30xf32>, vector<2x30xf32>, vector<2x30xf32>, vector<2x30xf32>, vector<2x30xf32>, vector<2x30xf32>, vector<2x30xf32> -> vector<2x480xf32>
    %c22_335 = arith.constant 22 : index
    %c0_336 = arith.constant 0 : index
    %224 = vector.load %arg13[%c22_335, %c0_336] : memref<32x480xf32, #tpu.memory_space<vmem>>, vector<2x480xf32>
    tpu.vector_store %arg13[%c22_335, %c0_336], %223 {strides = array<i32>} : memref<32x480xf32, #tpu.memory_space<vmem>>, vector<2x480xf32>,
    %c120_337 = arith.constant 120 : index
    %c0_338 = arith.constant 0 : index
    %225 = vector.load %arg12[%c120_337, %c0_338] : memref<200x30xf32, #tpu.memory_space<vmem>>, vector<2x30xf32>
    %c122_339 = arith.constant 122 : index
    %c0_340 = arith.constant 0 : index
    %226 = vector.load %arg12[%c122_339, %c0_340] : memref<200x30xf32, #tpu.memory_space<vmem>>, vector<2x30xf32>
    %c124_341 = arith.constant 124 : index
    %c0_342 = arith.constant 0 : index
    %227 = vector.load %arg12[%c124_341, %c0_342] : memref<200x30xf32, #tpu.memory_space<vmem>>, vector<2x30xf32>
    %c126_343 = arith.constant 126 : index
    %c0_344 = arith.constant 0 : index
    %228 = vector.load %arg12[%c126_343, %c0_344] : memref<200x30xf32, #tpu.memory_space<vmem>>, vector<2x30xf32>
    %c140_345 = arith.constant 140 : index
    %c0_346 = arith.constant 0 : index
    %229 = vector.load %arg12[%c140_345, %c0_346] : memref<200x30xf32, #tpu.memory_space<vmem>>, vector<2x30xf32>
    %c142_347 = arith.constant 142 : index
    %c0_348 = arith.constant 0 : index
    %230 = vector.load %arg12[%c142_347, %c0_348] : memref<200x30xf32, #tpu.memory_space<vmem>>, vector<2x30xf32>
    %c144_349 = arith.constant 144 : index
    %c0_350 = arith.constant 0 : index
    %231 = vector.load %arg12[%c144_349, %c0_350] : memref<200x30xf32, #tpu.memory_space<vmem>>, vector<2x30xf32>
    %c146_351 = arith.constant 146 : index
    %c0_352 = arith.constant 0 : index
    %232 = vector.load %arg12[%c146_351, %c0_352] : memref<200x30xf32, #tpu.memory_space<vmem>>, vector<2x30xf32>
    %c160 = arith.constant 160 : index
    %c0_353 = arith.constant 0 : index
    %233 = vector.load %arg12[%c160, %c0_353] : memref<200x30xf32, #tpu.memory_space<vmem>>, vector<2x30xf32>
    %c162 = arith.constant 162 : index
    %c0_354 = arith.constant 0 : index
    %234 = vector.load %arg12[%c162, %c0_354] : memref<200x30xf32, #tpu.memory_space<vmem>>, vector<2x30xf32>
    %c164 = arith.constant 164 : index
    %c0_355 = arith.constant 0 : index
    %235 = vector.load %arg12[%c164, %c0_355] : memref<200x30xf32, #tpu.memory_space<vmem>>, vector<2x30xf32>
    %c166 = arith.constant 166 : index
    %c0_356 = arith.constant 0 : index
    %236 = vector.load %arg12[%c166, %c0_356] : memref<200x30xf32, #tpu.memory_space<vmem>>, vector<2x30xf32>
    %c180 = arith.constant 180 : index
    %c0_357 = arith.constant 0 : index
    %237 = vector.load %arg12[%c180, %c0_357] : memref<200x30xf32, #tpu.memory_space<vmem>>, vector<2x30xf32>
    %c182 = arith.constant 182 : index
    %c0_358 = arith.constant 0 : index
    %238 = vector.load %arg12[%c182, %c0_358] : memref<200x30xf32, #tpu.memory_space<vmem>>, vector<2x30xf32>
    %c184 = arith.constant 184 : index
    %c0_359 = arith.constant 0 : index
    %239 = vector.load %arg12[%c184, %c0_359] : memref<200x30xf32, #tpu.memory_space<vmem>>, vector<2x30xf32>
    %c186 = arith.constant 186 : index
    %c0_360 = arith.constant 0 : index
    %240 = vector.load %arg12[%c186, %c0_360] : memref<200x30xf32, #tpu.memory_space<vmem>>, vector<2x30xf32>
    %241 = tpu.concatenate %225, %226, %227, %228, %229, %230, %231, %232, %233, %234, %235, %236, %237, %238, %239, %240 in 1 : vector<2x30xf32>, vector<2x30xf32>, vector<2x30xf32>, vector<2x30xf32>, vector<2x30xf32>, vector<2x30xf32>, vector<2x30xf32>, vector<2x30xf32>, vector<2x30xf32>, vector<2x30xf32>, vector<2x30xf32>, vector<2x30xf32>, vector<2x30xf32>, vector<2x30xf32>, vector<2x30xf32>, vector<2x30xf32> -> vector<2x480xf32>
    %c24_361 = arith.constant 24 : index
    %c0_362 = arith.constant 0 : index
    %242 = vector.load %arg13[%c24_361, %c0_362] : memref<32x480xf32, #tpu.memory_space<vmem>>, vector<2x480xf32>
    tpu.vector_store %arg13[%c24_361, %c0_362], %241 {strides = array<i32>} : memref<32x480xf32, #tpu.memory_space<vmem>>, vector<2x480xf32>,
    %c124_363 = arith.constant 124 : index
    %c0_364 = arith.constant 0 : index
    %243 = vector.load %arg12[%c124_363, %c0_364] : memref<200x30xf32, #tpu.memory_space<vmem>>, vector<2x30xf32>
    %c126_365 = arith.constant 126 : index
    %c0_366 = arith.constant 0 : index
    %244 = vector.load %arg12[%c126_365, %c0_366] : memref<200x30xf32, #tpu.memory_space<vmem>>, vector<2x30xf32>
    %c128_367 = arith.constant 128 : index
    %c0_368 = arith.constant 0 : index
    %245 = vector.load %arg12[%c128_367, %c0_368] : memref<200x30xf32, #tpu.memory_space<vmem>>, vector<2x30xf32>
    %c130_369 = arith.constant 130 : index
    %c0_370 = arith.constant 0 : index
    %246 = vector.load %arg12[%c130_369, %c0_370] : memref<200x30xf32, #tpu.memory_space<vmem>>, vector<2x30xf32>
    %c144_371 = arith.constant 144 : index
    %c0_372 = arith.constant 0 : index
    %247 = vector.load %arg12[%c144_371, %c0_372] : memref<200x30xf32, #tpu.memory_space<vmem>>, vector<2x30xf32>
    %c146_373 = arith.constant 146 : index
    %c0_374 = arith.constant 0 : index
    %248 = vector.load %arg12[%c146_373, %c0_374] : memref<200x30xf32, #tpu.memory_space<vmem>>, vector<2x30xf32>
    %c148_375 = arith.constant 148 : index
    %c0_376 = arith.constant 0 : index
    %249 = vector.load %arg12[%c148_375, %c0_376] : memref<200x30xf32, #tpu.memory_space<vmem>>, vector<2x30xf32>
    %c150_377 = arith.constant 150 : index
    %c0_378 = arith.constant 0 : index
    %250 = vector.load %arg12[%c150_377, %c0_378] : memref<200x30xf32, #tpu.memory_space<vmem>>, vector<2x30xf32>
    %c164_379 = arith.constant 164 : index
    %c0_380 = arith.constant 0 : index
    %251 = vector.load %arg12[%c164_379, %c0_380] : memref<200x30xf32, #tpu.memory_space<vmem>>, vector<2x30xf32>
    %c166_381 = arith.constant 166 : index
    %c0_382 = arith.constant 0 : index
    %252 = vector.load %arg12[%c166_381, %c0_382] : memref<200x30xf32, #tpu.memory_space<vmem>>, vector<2x30xf32>
    %c168 = arith.constant 168 : index
    %c0_383 = arith.constant 0 : index
    %253 = vector.load %arg12[%c168, %c0_383] : memref<200x30xf32, #tpu.memory_space<vmem>>, vector<2x30xf32>
    %c170 = arith.constant 170 : index
    %c0_384 = arith.constant 0 : index
    %254 = vector.load %arg12[%c170, %c0_384] : memref<200x30xf32, #tpu.memory_space<vmem>>, vector<2x30xf32>
    %c184_385 = arith.constant 184 : index
    %c0_386 = arith.constant 0 : index
    %255 = vector.load %arg12[%c184_385, %c0_386] : memref<200x30xf32, #tpu.memory_space<vmem>>, vector<2x30xf32>
    %c186_387 = arith.constant 186 : index
    %c0_388 = arith.constant 0 : index
    %256 = vector.load %arg12[%c186_387, %c0_388] : memref<200x30xf32, #tpu.memory_space<vmem>>, vector<2x30xf32>
    %c188 = arith.constant 188 : index
    %c0_389 = arith.constant 0 : index
    %257 = vector.load %arg12[%c188, %c0_389] : memref<200x30xf32, #tpu.memory_space<vmem>>, vector<2x30xf32>
    %c190 = arith.constant 190 : index
    %c0_390 = arith.constant 0 : index
    %258 = vector.load %arg12[%c190, %c0_390] : memref<200x30xf32, #tpu.memory_space<vmem>>, vector<2x30xf32>
    %259 = tpu.concatenate %243, %244, %245, %246, %247, %248, %249, %250, %251, %252, %253, %254, %255, %256, %257, %258 in 1 : vector<2x30xf32>, vector<2x30xf32>, vector<2x30xf32>, vector<2x30xf32>, vector<2x30xf32>, vector<2x30xf32>, vector<2x30xf32>, vector<2x30xf32>, vector<2x30xf32>, vector<2x30xf32>, vector<2x30xf32>, vector<2x30xf32>, vector<2x30xf32>, vector<2x30xf32>, vector<2x30xf32>, vector<2x30xf32> -> vector<2x480xf32>
    %c26_391 = arith.constant 26 : index
    %c0_392 = arith.constant 0 : index
    %260 = vector.load %arg13[%c26_391, %c0_392] : memref<32x480xf32, #tpu.memory_space<vmem>>, vector<2x480xf32>
    tpu.vector_store %arg13[%c26_391, %c0_392], %259 {strides = array<i32>} : memref<32x480xf32, #tpu.memory_space<vmem>>, vector<2x480xf32>,
    %c128_393 = arith.constant 128 : index
    %c0_394 = arith.constant 0 : index
    %261 = vector.load %arg12[%c128_393, %c0_394] : memref<200x30xf32, #tpu.memory_space<vmem>>, vector<2x30xf32>
    %c130_395 = arith.constant 130 : index
    %c0_396 = arith.constant 0 : index
    %262 = vector.load %arg12[%c130_395, %c0_396] : memref<200x30xf32, #tpu.memory_space<vmem>>, vector<2x30xf32>
    %c132_397 = arith.constant 132 : index
    %c0_398 = arith.constant 0 : index
    %263 = vector.load %arg12[%c132_397, %c0_398] : memref<200x30xf32, #tpu.memory_space<vmem>>, vector<2x30xf32>
    %c134_399 = arith.constant 134 : index
    %c0_400 = arith.constant 0 : index
    %264 = vector.load %arg12[%c134_399, %c0_400] : memref<200x30xf32, #tpu.memory_space<vmem>>, vector<2x30xf32>
    %c148_401 = arith.constant 148 : index
    %c0_402 = arith.constant 0 : index
    %265 = vector.load %arg12[%c148_401, %c0_402] : memref<200x30xf32, #tpu.memory_space<vmem>>, vector<2x30xf32>
    %c150_403 = arith.constant 150 : index
    %c0_404 = arith.constant 0 : index
    %266 = vector.load %arg12[%c150_403, %c0_404] : memref<200x30xf32, #tpu.memory_space<vmem>>, vector<2x30xf32>
    %c152_405 = arith.constant 152 : index
    %c0_406 = arith.constant 0 : index
    %267 = vector.load %arg12[%c152_405, %c0_406] : memref<200x30xf32, #tpu.memory_space<vmem>>, vector<2x30xf32>
    %c154_407 = arith.constant 154 : index
    %c0_408 = arith.constant 0 : index
    %268 = vector.load %arg12[%c154_407, %c0_408] : memref<200x30xf32, #tpu.memory_space<vmem>>, vector<2x30xf32>
    %c168_409 = arith.constant 168 : index
    %c0_410 = arith.constant 0 : index
    %269 = vector.load %arg12[%c168_409, %c0_410] : memref<200x30xf32, #tpu.memory_space<vmem>>, vector<2x30xf32>
    %c170_411 = arith.constant 170 : index
    %c0_412 = arith.constant 0 : index
    %270 = vector.load %arg12[%c170_411, %c0_412] : memref<200x30xf32, #tpu.memory_space<vmem>>, vector<2x30xf32>
    %c172 = arith.constant 172 : index
    %c0_413 = arith.constant 0 : index
    %271 = vector.load %arg12[%c172, %c0_413] : memref<200x30xf32, #tpu.memory_space<vmem>>, vector<2x30xf32>
    %c174 = arith.constant 174 : index
    %c0_414 = arith.constant 0 : index
    %272 = vector.load %arg12[%c174, %c0_414] : memref<200x30xf32, #tpu.memory_space<vmem>>, vector<2x30xf32>
    %c188_415 = arith.constant 188 : index
    %c0_416 = arith.constant 0 : index
    %273 = vector.load %arg12[%c188_415, %c0_416] : memref<200x30xf32, #tpu.memory_space<vmem>>, vector<2x30xf32>
    %c190_417 = arith.constant 190 : index
    %c0_418 = arith.constant 0 : index
    %274 = vector.load %arg12[%c190_417, %c0_418] : memref<200x30xf32, #tpu.memory_space<vmem>>, vector<2x30xf32>
    %c192 = arith.constant 192 : index
    %c0_419 = arith.constant 0 : index
    %275 = vector.load %arg12[%c192, %c0_419] : memref<200x30xf32, #tpu.memory_space<vmem>>, vector<2x30xf32>
    %c194 = arith.constant 194 : index
    %c0_420 = arith.constant 0 : index
    %276 = vector.load %arg12[%c194, %c0_420] : memref<200x30xf32, #tpu.memory_space<vmem>>, vector<2x30xf32>
    %277 = tpu.concatenate %261, %262, %263, %264, %265, %266, %267, %268, %269, %270, %271, %272, %273, %274, %275, %276 in 1 : vector<2x30xf32>, vector<2x30xf32>, vector<2x30xf32>, vector<2x30xf32>, vector<2x30xf32>, vector<2x30xf32>, vector<2x30xf32>, vector<2x30xf32>, vector<2x30xf32>, vector<2x30xf32>, vector<2x30xf32>, vector<2x30xf32>, vector<2x30xf32>, vector<2x30xf32>, vector<2x30xf32>, vector<2x30xf32> -> vector<2x480xf32>
    %c28_421 = arith.constant 28 : index
    %c0_422 = arith.constant 0 : index
    %278 = vector.load %arg13[%c28_421, %c0_422] : memref<32x480xf32, #tpu.memory_space<vmem>>, vector<2x480xf32>
    tpu.vector_store %arg13[%c28_421, %c0_422], %277 {strides = array<i32>} : memref<32x480xf32, #tpu.memory_space<vmem>>, vector<2x480xf32>,
    %c132_423 = arith.constant 132 : index
    %c0_424 = arith.constant 0 : index
    %279 = vector.load %arg12[%c132_423, %c0_424] : memref<200x30xf32, #tpu.memory_space<vmem>>, vector<2x30xf32>
    %c134_425 = arith.constant 134 : index
    %c0_426 = arith.constant 0 : index
    %280 = vector.load %arg12[%c134_425, %c0_426] : memref<200x30xf32, #tpu.memory_space<vmem>>, vector<2x30xf32>
    %c136_427 = arith.constant 136 : index
    %c0_428 = arith.constant 0 : index
    %281 = vector.load %arg12[%c136_427, %c0_428] : memref<200x30xf32, #tpu.memory_space<vmem>>, vector<2x30xf32>
    %c138_429 = arith.constant 138 : index
    %c0_430 = arith.constant 0 : index
    %282 = vector.load %arg12[%c138_429, %c0_430] : memref<200x30xf32, #tpu.memory_space<vmem>>, vector<2x30xf32>
    %c152_431 = arith.constant 152 : index
    %c0_432 = arith.constant 0 : index
    %283 = vector.load %arg12[%c152_431, %c0_432] : memref<200x30xf32, #tpu.memory_space<vmem>>, vector<2x30xf32>
    %c154_433 = arith.constant 154 : index
    %c0_434 = arith.constant 0 : index
    %284 = vector.load %arg12[%c154_433, %c0_434] : memref<200x30xf32, #tpu.memory_space<vmem>>, vector<2x30xf32>
    %c156_435 = arith.constant 156 : index
    %c0_436 = arith.constant 0 : index
    %285 = vector.load %arg12[%c156_435, %c0_436] : memref<200x30xf32, #tpu.memory_space<vmem>>, vector<2x30xf32>
    %c158_437 = arith.constant 158 : index
    %c0_438 = arith.constant 0 : index
    %286 = vector.load %arg12[%c158_437, %c0_438] : memref<200x30xf32, #tpu.memory_space<vmem>>, vector<2x30xf32>
    %c172_439 = arith.constant 172 : index
    %c0_440 = arith.constant 0 : index
    %287 = vector.load %arg12[%c172_439, %c0_440] : memref<200x30xf32, #tpu.memory_space<vmem>>, vector<2x30xf32>
    %c174_441 = arith.constant 174 : index
    %c0_442 = arith.constant 0 : index
    %288 = vector.load %arg12[%c174_441, %c0_442] : memref<200x30xf32, #tpu.memory_space<vmem>>, vector<2x30xf32>
    %c176 = arith.constant 176 : index
    %c0_443 = arith.constant 0 : index
    %289 = vector.load %arg12[%c176, %c0_443] : memref<200x30xf32, #tpu.memory_space<vmem>>, vector<2x30xf32>
    %c178 = arith.constant 178 : index
    %c0_444 = arith.constant 0 : index
    %290 = vector.load %arg12[%c178, %c0_444] : memref<200x30xf32, #tpu.memory_space<vmem>>, vector<2x30xf32>
    %c192_445 = arith.constant 192 : index
    %c0_446 = arith.constant 0 : index
    %291 = vector.load %arg12[%c192_445, %c0_446] : memref<200x30xf32, #tpu.memory_space<vmem>>, vector<2x30xf32>
    %c194_447 = arith.constant 194 : index
    %c0_448 = arith.constant 0 : index
    %292 = vector.load %arg12[%c194_447, %c0_448] : memref<200x30xf32, #tpu.memory_space<vmem>>, vector<2x30xf32>
    %c196 = arith.constant 196 : index
    %c0_449 = arith.constant 0 : index
    %293 = vector.load %arg12[%c196, %c0_449] : memref<200x30xf32, #tpu.memory_space<vmem>>, vector<2x30xf32>
    %c198 = arith.constant 198 : index
    %c0_450 = arith.constant 0 : index
    %294 = vector.load %arg12[%c198, %c0_450] : memref<200x30xf32, #tpu.memory_space<vmem>>, vector<2x30xf32>
    %295 = tpu.concatenate %279, %280, %281, %282, %283, %284, %285, %286, %287, %288, %289, %290, %291, %292, %293, %294 in 1 : vector<2x30xf32>, vector<2x30xf32>, vector<2x30xf32>, vector<2x30xf32>, vector<2x30xf32>, vector<2x30xf32>, vector<2x30xf32>, vector<2x30xf32>, vector<2x30xf32>, vector<2x30xf32>, vector<2x30xf32>, vector<2x30xf32>, vector<2x30xf32>, vector<2x30xf32>, vector<2x30xf32>, vector<2x30xf32> -> vector<2x480xf32>
    %c30_451 = arith.constant 30 : index
    %c0_452 = arith.constant 0 : index
    %296 = vector.load %arg13[%c30_451, %c0_452] : memref<32x480xf32, #tpu.memory_space<vmem>>, vector<2x480xf32>
    tpu.vector_store %arg13[%c30_451, %c0_452], %295 {strides = array<i32>} : memref<32x480xf32, #tpu.memory_space<vmem>>, vector<2x480xf32>,
    %c0_453 = arith.constant 0 : index
    %c0_454 = arith.constant 0 : index
    %297 = vector.load %arg13[%c0_453, %c0_454] : memref<32x480xf32, #tpu.memory_space<vmem>>, vector<32x480xf32>
    %298 = arith.truncf %297 : vector<32x480xf32> to vector<32x480xbf16>
    %c0_455 = arith.constant 0 : index
    %c0_456 = arith.constant 0 : index
    %299 = vector.load %arg3[%c0_455, %c0_456] : memref<480x35xbf16, #tpu.memory_space<vmem>>, vector<480x35xbf16>
    %cst_457 = arith.constant dense<0.000000e+00> : vector<32x35xf32>
    %300 = tpu.matmul %298, %299, %cst_457 {dimension_numbers = #tpu.dot_dimension_numbers<[1], [0], [0], [1], [0, 0, 1, 1], [], []>} : vector<32x480xbf16>, vector<480x35xbf16>, vector<32x35xf32> -> vector<32x35xf32>
    %c0_458 = arith.constant 0 : index
    %c0_459 = arith.constant 0 : index
    %301 = vector.load %arg4[%c0_458, %c0_459] : memref<1x35xf32, #tpu.memory_space<vmem>>, vector<1x35xf32>
    %302 = vector.broadcast %301 : vector<1x35xf32> to vector<32x35xf32>
    %303 = arith.addf %300, %302 : vector<32x35xf32>
    %cst_460 = arith.constant 0.000000e+00 : f32
    %304 = vector.broadcast %cst_460 : f32 to vector<32x35xf32>
    %305 = arith.maximumf %303, %304 : vector<32x35xf32>
    %c0_461 = arith.constant 0 : index
    %c0_462 = arith.constant 0 : index
    %306 = vector.load %arg14[%c0_461, %c0_462] : memref<32x35xf32, #tpu.memory_space<vmem>>, vector<32x35xf32>
    tpu.vector_store %arg14[%c0_461, %c0_462], %305 {strides = array<i32>} : memref<32x35xf32, #tpu.memory_space<vmem>>, vector<32x35xf32>,
    %c0_463 = arith.constant 0 : index
    %c0_464 = arith.constant 0 : index
    %307 = vector.load %arg14[%c0_463, %c0_464] : memref<32x35xf32, #tpu.memory_space<vmem>>, vector<2x35xf32>
    %c2_465 = arith.constant 2 : index
    %c0_466 = arith.constant 0 : index
    %308 = vector.load %arg14[%c2_465, %c0_466] : memref<32x35xf32, #tpu.memory_space<vmem>>, vector<2x35xf32>
    %c4_467 = arith.constant 4 : index
    %c0_468 = arith.constant 0 : index
    %309 = vector.load %arg14[%c4_467, %c0_468] : memref<32x35xf32, #tpu.memory_space<vmem>>, vector<2x35xf32>
    %c8_469 = arith.constant 8 : index
    %c0_470 = arith.constant 0 : index
    %310 = vector.load %arg14[%c8_469, %c0_470] : memref<32x35xf32, #tpu.memory_space<vmem>>, vector<2x35xf32>
    %c10_471 = arith.constant 10 : index
    %c0_472 = arith.constant 0 : index
    %311 = vector.load %arg14[%c10_471, %c0_472] : memref<32x35xf32, #tpu.memory_space<vmem>>, vector<2x35xf32>
    %c12_473 = arith.constant 12 : index
    %c0_474 = arith.constant 0 : index
    %312 = vector.load %arg14[%c12_473, %c0_474] : memref<32x35xf32, #tpu.memory_space<vmem>>, vector<2x35xf32>
    %c16_475 = arith.constant 16 : index
    %c0_476 = arith.constant 0 : index
    %313 = vector.load %arg14[%c16_475, %c0_476] : memref<32x35xf32, #tpu.memory_space<vmem>>, vector<2x35xf32>
    %c18_477 = arith.constant 18 : index
    %c0_478 = arith.constant 0 : index
    %314 = vector.load %arg14[%c18_477, %c0_478] : memref<32x35xf32, #tpu.memory_space<vmem>>, vector<2x35xf32>
    %c20_479 = arith.constant 20 : index
    %c0_480 = arith.constant 0 : index
    %315 = vector.load %arg14[%c20_479, %c0_480] : memref<32x35xf32, #tpu.memory_space<vmem>>, vector<2x35xf32>
    %316 = tpu.concatenate %307, %308, %309, %310, %311, %312, %313, %314, %315 in 1 : vector<2x35xf32>, vector<2x35xf32>, vector<2x35xf32>, vector<2x35xf32>, vector<2x35xf32>, vector<2x35xf32>, vector<2x35xf32>, vector<2x35xf32>, vector<2x35xf32> -> vector<2x315xf32>
    %c0_481 = arith.constant 0 : index
    %c0_482 = arith.constant 0 : index
    %317 = vector.load %arg15[%c0_481, %c0_482] : memref<8x315xf32, #tpu.memory_space<vmem>>, vector<2x315xf32>
    tpu.vector_store %arg15[%c0_481, %c0_482], %316 {strides = array<i32>} : memref<8x315xf32, #tpu.memory_space<vmem>>, vector<2x315xf32>,
    %c2_483 = arith.constant 2 : index
    %c0_484 = arith.constant 0 : index
    %318 = vector.load %arg14[%c2_483, %c0_484] : memref<32x35xf32, #tpu.memory_space<vmem>>, vector<2x35xf32>
    %c4_485 = arith.constant 4 : index
    %c0_486 = arith.constant 0 : index
    %319 = vector.load %arg14[%c4_485, %c0_486] : memref<32x35xf32, #tpu.memory_space<vmem>>, vector<2x35xf32>
    %c6_487 = arith.constant 6 : index
    %c0_488 = arith.constant 0 : index
    %320 = vector.load %arg14[%c6_487, %c0_488] : memref<32x35xf32, #tpu.memory_space<vmem>>, vector<2x35xf32>
    %c10_489 = arith.constant 10 : index
    %c0_490 = arith.constant 0 : index
    %321 = vector.load %arg14[%c10_489, %c0_490] : memref<32x35xf32, #tpu.memory_space<vmem>>, vector<2x35xf32>
    %c12_491 = arith.constant 12 : index
    %c0_492 = arith.constant 0 : index
    %322 = vector.load %arg14[%c12_491, %c0_492] : memref<32x35xf32, #tpu.memory_space<vmem>>, vector<2x35xf32>
    %c14_493 = arith.constant 14 : index
    %c0_494 = arith.constant 0 : index
    %323 = vector.load %arg14[%c14_493, %c0_494] : memref<32x35xf32, #tpu.memory_space<vmem>>, vector<2x35xf32>
    %c18_495 = arith.constant 18 : index
    %c0_496 = arith.constant 0 : index
    %324 = vector.load %arg14[%c18_495, %c0_496] : memref<32x35xf32, #tpu.memory_space<vmem>>, vector<2x35xf32>
    %c20_497 = arith.constant 20 : index
    %c0_498 = arith.constant 0 : index
    %325 = vector.load %arg14[%c20_497, %c0_498] : memref<32x35xf32, #tpu.memory_space<vmem>>, vector<2x35xf32>
    %c22_499 = arith.constant 22 : index
    %c0_500 = arith.constant 0 : index
    %326 = vector.load %arg14[%c22_499, %c0_500] : memref<32x35xf32, #tpu.memory_space<vmem>>, vector<2x35xf32>
    %327 = tpu.concatenate %318, %319, %320, %321, %322, %323, %324, %325, %326 in 1 : vector<2x35xf32>, vector<2x35xf32>, vector<2x35xf32>, vector<2x35xf32>, vector<2x35xf32>, vector<2x35xf32>, vector<2x35xf32>, vector<2x35xf32>, vector<2x35xf32> -> vector<2x315xf32>
    %c2_501 = arith.constant 2 : index
    %c0_502 = arith.constant 0 : index
    %328 = vector.load %arg15[%c2_501, %c0_502] : memref<8x315xf32, #tpu.memory_space<vmem>>, vector<2x315xf32>
    tpu.vector_store %arg15[%c2_501, %c0_502], %327 {strides = array<i32>} : memref<8x315xf32, #tpu.memory_space<vmem>>, vector<2x315xf32>,
    %c8_503 = arith.constant 8 : index
    %c0_504 = arith.constant 0 : index
    %329 = vector.load %arg14[%c8_503, %c0_504] : memref<32x35xf32, #tpu.memory_space<vmem>>, vector<2x35xf32>
    %c10_505 = arith.constant 10 : index
    %c0_506 = arith.constant 0 : index
    %330 = vector.load %arg14[%c10_505, %c0_506] : memref<32x35xf32, #tpu.memory_space<vmem>>, vector<2x35xf32>
    %c12_507 = arith.constant 12 : index
    %c0_508 = arith.constant 0 : index
    %331 = vector.load %arg14[%c12_507, %c0_508] : memref<32x35xf32, #tpu.memory_space<vmem>>, vector<2x35xf32>
    %c16_509 = arith.constant 16 : index
    %c0_510 = arith.constant 0 : index
    %332 = vector.load %arg14[%c16_509, %c0_510] : memref<32x35xf32, #tpu.memory_space<vmem>>, vector<2x35xf32>
    %c18_511 = arith.constant 18 : index
    %c0_512 = arith.constant 0 : index
    %333 = vector.load %arg14[%c18_511, %c0_512] : memref<32x35xf32, #tpu.memory_space<vmem>>, vector<2x35xf32>
    %c20_513 = arith.constant 20 : index
    %c0_514 = arith.constant 0 : index
    %334 = vector.load %arg14[%c20_513, %c0_514] : memref<32x35xf32, #tpu.memory_space<vmem>>, vector<2x35xf32>
    %c24_515 = arith.constant 24 : index
    %c0_516 = arith.constant 0 : index
    %335 = vector.load %arg14[%c24_515, %c0_516] : memref<32x35xf32, #tpu.memory_space<vmem>>, vector<2x35xf32>
    %c26_517 = arith.constant 26 : index
    %c0_518 = arith.constant 0 : index
    %336 = vector.load %arg14[%c26_517, %c0_518] : memref<32x35xf32, #tpu.memory_space<vmem>>, vector<2x35xf32>
    %c28_519 = arith.constant 28 : index
    %c0_520 = arith.constant 0 : index
    %337 = vector.load %arg14[%c28_519, %c0_520] : memref<32x35xf32, #tpu.memory_space<vmem>>, vector<2x35xf32>
    %338 = tpu.concatenate %329, %330, %331, %332, %333, %334, %335, %336, %337 in 1 : vector<2x35xf32>, vector<2x35xf32>, vector<2x35xf32>, vector<2x35xf32>, vector<2x35xf32>, vector<2x35xf32>, vector<2x35xf32>, vector<2x35xf32>, vector<2x35xf32> -> vector<2x315xf32>
    %c4_521 = arith.constant 4 : index
    %c0_522 = arith.constant 0 : index
    %339 = vector.load %arg15[%c4_521, %c0_522] : memref<8x315xf32, #tpu.memory_space<vmem>>, vector<2x315xf32>
    tpu.vector_store %arg15[%c4_521, %c0_522], %338 {strides = array<i32>} : memref<8x315xf32, #tpu.memory_space<vmem>>, vector<2x315xf32>,
    %c10_523 = arith.constant 10 : index
    %c0_524 = arith.constant 0 : index
    %340 = vector.load %arg14[%c10_523, %c0_524] : memref<32x35xf32, #tpu.memory_space<vmem>>, vector<2x35xf32>
    %c12_525 = arith.constant 12 : index
    %c0_526 = arith.constant 0 : index
    %341 = vector.load %arg14[%c12_525, %c0_526] : memref<32x35xf32, #tpu.memory_space<vmem>>, vector<2x35xf32>
    %c14_527 = arith.constant 14 : index
    %c0_528 = arith.constant 0 : index
    %342 = vector.load %arg14[%c14_527, %c0_528] : memref<32x35xf32, #tpu.memory_space<vmem>>, vector<2x35xf32>
    %c18_529 = arith.constant 18 : index
    %c0_530 = arith.constant 0 : index
    %343 = vector.load %arg14[%c18_529, %c0_530] : memref<32x35xf32, #tpu.memory_space<vmem>>, vector<2x35xf32>
    %c20_531 = arith.constant 20 : index
    %c0_532 = arith.constant 0 : index
    %344 = vector.load %arg14[%c20_531, %c0_532] : memref<32x35xf32, #tpu.memory_space<vmem>>, vector<2x35xf32>
    %c22_533 = arith.constant 22 : index
    %c0_534 = arith.constant 0 : index
    %345 = vector.load %arg14[%c22_533, %c0_534] : memref<32x35xf32, #tpu.memory_space<vmem>>, vector<2x35xf32>
    %c26_535 = arith.constant 26 : index
    %c0_536 = arith.constant 0 : index
    %346 = vector.load %arg14[%c26_535, %c0_536] : memref<32x35xf32, #tpu.memory_space<vmem>>, vector<2x35xf32>
    %c28_537 = arith.constant 28 : index
    %c0_538 = arith.constant 0 : index
    %347 = vector.load %arg14[%c28_537, %c0_538] : memref<32x35xf32, #tpu.memory_space<vmem>>, vector<2x35xf32>
    %c30_539 = arith.constant 30 : index
    %c0_540 = arith.constant 0 : index
    %348 = vector.load %arg14[%c30_539, %c0_540] : memref<32x35xf32, #tpu.memory_space<vmem>>, vector<2x35xf32>
    %349 = tpu.concatenate %340, %341, %342, %343, %344, %345, %346, %347, %348 in 1 : vector<2x35xf32>, vector<2x35xf32>, vector<2x35xf32>, vector<2x35xf32>, vector<2x35xf32>, vector<2x35xf32>, vector<2x35xf32>, vector<2x35xf32>, vector<2x35xf32> -> vector<2x315xf32>
    %c6_541 = arith.constant 6 : index
    %c0_542 = arith.constant 0 : index
    %350 = vector.load %arg15[%c6_541, %c0_542] : memref<8x315xf32, #tpu.memory_space<vmem>>, vector<2x315xf32>
    tpu.vector_store %arg15[%c6_541, %c0_542], %349 {strides = array<i32>} : memref<8x315xf32, #tpu.memory_space<vmem>>, vector<2x315xf32>,
    %c0_543 = arith.constant 0 : index
    %c0_544 = arith.constant 0 : index
    %351 = vector.load %arg15[%c0_543, %c0_544] : memref<8x315xf32, #tpu.memory_space<vmem>>, vector<8x315xf32>
    %352 = arith.truncf %351 : vector<8x315xf32> to vector<8x315xbf16>
    %c0_545 = arith.constant 0 : index
    %c0_546 = arith.constant 0 : index
    %353 = vector.load %arg5[%c0_545, %c0_546] : memref<315x40xbf16, #tpu.memory_space<vmem>>, vector<315x40xbf16>
    %cst_547 = arith.constant dense<0.000000e+00> : vector<8x40xf32>
    %354 = tpu.matmul %352, %353, %cst_547 {dimension_numbers = #tpu.dot_dimension_numbers<[1], [0], [0], [1], [0, 0, 1, 1], [], []>} : vector<8x315xbf16>, vector<315x40xbf16>, vector<8x40xf32> -> vector<8x40xf32>
    %c0_548 = arith.constant 0 : index
    %c0_549 = arith.constant 0 : index
    %355 = vector.load %arg6[%c0_548, %c0_549] : memref<1x40xf32, #tpu.memory_space<vmem>>, vector<1x40xf32>
    %356 = vector.broadcast %355 : vector<1x40xf32> to vector<8x40xf32>
    %357 = arith.addf %354, %356 : vector<8x40xf32>
    %cst_550 = arith.constant 0.000000e+00 : f32
    %358 = vector.broadcast %cst_550 : f32 to vector<8x40xf32>
    %359 = arith.maximumf %357, %358 : vector<8x40xf32>
    %c0_551 = arith.constant 0 : index
    %c0_552 = arith.constant 0 : index
    %360 = vector.load %arg16[%c0_551, %c0_552] : memref<8x40xf32, #tpu.memory_space<vmem>>, vector<8x40xf32>
    tpu.vector_store %arg16[%c0_551, %c0_552], %359 {strides = array<i32>} : memref<8x40xf32, #tpu.memory_space<vmem>>, vector<8x40xf32>,
    %c0_553 = arith.constant 0 : index
    %c0_554 = arith.constant 0 : index
    %361 = vector.load %arg16[%c0_553, %c0_554] : memref<8x40xf32, #tpu.memory_space<vmem>>, vector<2x40xf32>
    %c2_555 = arith.constant 2 : index
    %c0_556 = arith.constant 0 : index
    %362 = vector.load %arg16[%c2_555, %c0_556] : memref<8x40xf32, #tpu.memory_space<vmem>>, vector<2x40xf32>
    %c4_557 = arith.constant 4 : index
    %c0_558 = arith.constant 0 : index
    %363 = vector.load %arg16[%c4_557, %c0_558] : memref<8x40xf32, #tpu.memory_space<vmem>>, vector<2x40xf32>
    %c6_559 = arith.constant 6 : index
    %c0_560 = arith.constant 0 : index
    %364 = vector.load %arg16[%c6_559, %c0_560] : memref<8x40xf32, #tpu.memory_space<vmem>>, vector<2x40xf32>
    %365 = tpu.concatenate %361, %362, %363, %364 in 1 : vector<2x40xf32>, vector<2x40xf32>, vector<2x40xf32>, vector<2x40xf32> -> vector<2x160xf32>
    %366 = arith.truncf %365 : vector<2x160xf32> to vector<2x160xbf16>
    %c0_561 = arith.constant 0 : index
    %c0_562 = arith.constant 0 : index
    %367 = vector.load %arg7[%c0_561, %c0_562] : memref<160x512xbf16, #tpu.memory_space<vmem>>, vector<160x512xbf16>
    %cst_563 = arith.constant dense<0.000000e+00> : vector<2x512xf32>
    %368 = tpu.matmul %366, %367, %cst_563 {dimension_numbers = #tpu.dot_dimension_numbers<[1], [0], [0], [1], [0, 0, 1, 1], [], []>} : vector<2x160xbf16>, vector<160x512xbf16>, vector<2x512xf32> -> vector<2x512xf32>
    %c0_564 = arith.constant 0 : index
    %c0_565 = arith.constant 0 : index
    %369 = vector.load %arg8[%c0_564, %c0_565] : memref<1x512xf32, #tpu.memory_space<vmem>>, vector<1x512xf32>
    %370 = vector.broadcast %369 : vector<1x512xf32> to vector<2x512xf32>
    %371 = arith.addf %368, %370 : vector<2x512xf32>
    %cst_566 = arith.constant 0.000000e+00 : f32
    %372 = vector.broadcast %cst_566 : f32 to vector<2x512xf32>
    %373 = arith.maximumf %371, %372 : vector<2x512xf32>
    %374 = arith.truncf %373 : vector<2x512xf32> to vector<2x512xbf16>
    %c0_567 = arith.constant 0 : index
    %c0_568 = arith.constant 0 : index
    %375 = vector.load %arg9[%c0_567, %c0_568] : memref<512x10xbf16, #tpu.memory_space<vmem>>, vector<512x10xbf16>
    %cst_569 = arith.constant dense<0.000000e+00> : vector<2x10xf32>
    %376 = tpu.matmul %374, %375, %cst_569 {dimension_numbers = #tpu.dot_dimension_numbers<[1], [0], [0], [1], [0, 0, 1, 1], [], []>} : vector<2x512xbf16>, vector<512x10xbf16>, vector<2x10xf32> -> vector<2x10xf32>
    %c0_570 = arith.constant 0 : index
    %c0_571 = arith.constant 0 : index
    %377 = vector.load %arg10[%c0_570, %c0_571] : memref<1x10xf32, #tpu.memory_space<vmem>>, vector<1x10xf32>
    %378 = vector.broadcast %377 : vector<1x10xf32> to vector<2x10xf32>
    %379 = arith.addf %376, %378 : vector<2x10xf32>
    %380 = arith.negf %379 : vector<2x10xf32>
    %381 = math.exp %380 : vector<2x10xf32>
    %cst_572 = arith.constant 1.000000e+00 : f32
    %382 = vector.broadcast %cst_572 : f32 to vector<2x10xf32>
    %383 = arith.addf %382, %381 : vector<2x10xf32>
    %384 = arith.divf %382, %383 : vector<2x10xf32>
    %c0_573 = arith.constant 0 : index
    %c0_574 = arith.constant 0 : index
    %385 = vector.load %arg11[%c0_573, %c0_574] : memref<2x10xf32, #tpu.memory_space<vmem>>, vector<2x10xf32>
    tpu.vector_store %arg11[%c0_573, %c0_574], %384 {strides = array<i32>} : memref<2x10xf32, #tpu.memory_space<vmem>>, vector<2x10xf32>,
    return
  }
}

</mosaic_0001>

<bundles_post_ra>
// kernel: score_model_forward.1
= control target key start
LH: loop header
LB: loop body
LE: loop exit
PB: predicated region body
PF: predicated region fallthrough
CT: control target
= control target key end

     0   :  { %v4373_v1 = vmov 0   ;;  %vm282_vm0 = vcmask 523264   ;;  %s6129_s0 = inlined_call_operand.vmem [shape: bf16[200,192], index: 0, kind: input, shape index: {}]   ;;  %s6130_s1 = inlined_call_operand.vmem [shape: bf16[192,30], index: 1, kind: input, shape index: {}]   ;;  %s6131_s2 = inlined_call_operand.vmem [shape: f32[1,30], index: 2, kind: input, shape index: {}]   ;;  %s6132_s3 = inlined_call_operand.vmem [shape: bf16[480,35], index: 3, kind: input, shape index: {}]   ;;  %s6133_s4 = inlined_call_operand.vmem [shape: f32[1,35], index: 4, kind: input, shape index: {}]   ;;  %s6134_s5 = inlined_call_operand.vmem [shape: bf16[315,40], index: 5, kind: input, shape index: {}]   ;;  %s6135_s6 = inlined_call_operand.vmem [shape: f32[1,40], index: 6, kind: input, shape index: {}]   ;;  %s6136_s7 = inlined_call_operand.vmem [shape: bf16[160,512], index: 7, kind: input, shape index: {}]   ;;  %s6137_s8 = inlined_call_operand.vmem [shape: f32[1,512], index: 8, kind: input, shape index: {}]   ;;  %s6138_s9 = inlined_call_operand.vmem [shape: bf16[512,10], index: 9, kind: input, shape index: {}]   ;;  %s6139_s10 = inlined_call_operand.vmem [shape: f32[1,10], index: 10, kind: input, shape index: {}]   ;;  %s6140_s11 = inlined_call_operand.hbm [shape: f32[2,10], index: 11, kind: output, shape index: {}]  }
   0x1   :  { %v4153_v0 = vld [vmem:[%s6130_s1] sm:$0xff]   ;;  %322 = vmatprep.subr.bf16.mxu0 %v4373_v1  ;;  %v4154_v2 = vld [vmem:[%s6130_s1 + $0x8] sm:$0xff]   ;;  %v4155_v3 = vld [vmem:[%s6130_s1 + $0x10] sm:$0xff]  }
   0x2   :  { %323 = vmatpush1.bf16.msra.mxu0 %v4153_v0  ;;  %v4156_v4 = vld [vmem:[%s6130_s1 + $0x18] sm:$0xff]   ;;  %v4167_v5 = vld [vmem:[%s6129_s0 + $0x4] ss:$8 sps:$4 sm:$0xff]   ;;  %v4159_v8 = vld [vmem:[%s6130_s1 + $0x30] sm:$0xff]  }
   0x3   :  { %324 = vmatprep.subr.bf16.mxu0 %v4373_v1  ;;  %v4157_v6 = vld [vmem:[%s6130_s1 + $0x20] sm:$0xff]   ;;  %3869 = vmatprep.mubr.msk.bf16.mxu0 %vm282_vm0, %v4167_v5  ;;  %v4158_v7 = vld [vmem:[%s6130_s1 + $0x28] sm:$0xff]   ;;  %v4160_v9 = vld [vmem:[%s6130_s1 + $0x38] sm:$0xff]  }
   0x4   :  { %v4161_v10 = vld [vmem:[%s6130_s1 + $0x40] sm:$0xff]   ;;  %v4162_v11 = vld [vmem:[%s6130_s1 + $0x48] sm:$0xff]   ;;  %v4163_v12 = vld [vmem:[%s6130_s1 + $0x50] sm:$0xff]  }
   0x5   :  { %v4164_v13 = vld [vmem:[%s6130_s1 + $0x58] sm:$0xff]   ;;  %v4165_v14 = vld [vmem:[%s6129_s0] ss:$8 sps:$4 sm:$0xff]   ;;  %v4171_v17 = vld [vmem:[%s6129_s0 + $0x24] ss:$8 sps:$4 sm:$0xff]  }
   0x6   :  { %325 = vmatpush1.bf16.msra.mxu0 %v4154_v2  ;;  %v4168_v15 = vld [vmem:[%s6129_s0 + $0x14] ss:$8 sps:$4 sm:$0xff]   ;;  %v4170_v16 = vld [vmem:[%s6129_s0 + $0x10] ss:$8 sps:$4 sm:$0xff]   ;;  %v4173_v18 = vld [vmem:[%s6129_s0 + $0x20] ss:$8 sps:$4 sm:$0xff]  }
   0x7   :  { %326 = vmatprep.subr.bf16.mxu0 %v4373_v1  ;;  %v4174_v19 = vld [vmem:[%s6129_s0 + $0x34] ss:$8 sps:$4 sm:$0xff]   ;;  %v4176_v20 = vld [vmem:[%s6129_s0 + $0x30] ss:$8 sps:$4 sm:$0xff]   ;;  %v4177_v21 = vld [vmem:[%s6129_s0 + $0x44] ss:$8 sps:$4 sm:$0xff]  }
   0x8   :  { %v4179_v22 = vld [vmem:[%s6129_s0 + $0x40] ss:$8 sps:$4 sm:$0xff]   ;;  %v4180_v23 = vld [vmem:[%s6129_s0 + $0x54] ss:$8 sps:$4 sm:$0xff]   ;;  %v4182_v24 = vld [vmem:[%s6129_s0 + $0x50] ss:$8 sps:$4 sm:$0xff]  }
   0x9   :  { %v4183_v25 = vld [vmem:[%s6129_s0 + $0x64] ss:$8 sps:$4 sm:$0xff]   ;;  %v4185_v26 = vld [vmem:[%s6129_s0 + $0x60] ss:$8 sps:$4 sm:$0xff]  }
   0xa   :  { %327 = vmatpush1.bf16.msra.mxu0 %v4155_v3 }
   0xb   :  { %328 = vmatprep.subr.bf16.mxu0 %v4373_v1 }
   0xe   :  { %329 = vmatpush1.bf16.msra.mxu0 %v4156_v4 }
   0xf   :  { %330 = vmatprep.subr.bf16.mxu0 %v4373_v1 }
  0x12   :  { %331 = vmatpush1.bf16.msra.mxu0 %v4157_v6 }
  0x13   :  { %332 = vmatprep.subr.bf16.mxu0 %v4373_v1 }
  0x16   :  { %333 = vmatpush1.bf16.msra.mxu0 %v4158_v7 }
  0x17   :  { %334 = vmatprep.subr.bf16.mxu0 %v4373_v1 }
  0x1a   :  { %335 = vmatpush1.bf16.msra.mxu0 %v4159_v8 }
  0x1b   :  { %336 = vmatprep.subr.bf16.mxu0 %v4373_v1 }
  0x1e   :  { %337 = vmatpush1.bf16.msra.mxu0 %v4160_v9 }
  0x1f   :  { %338 = vmatprep.subr.bf16.mxu0 %v4373_v1 }
  0x22   :  { %339 = vmatpush1.bf16.msra.mxu0 %v4161_v10 }
  0x23   :  { %340 = vmatprep.subr.bf16.mxu0 %v4373_v1 }
  0x26   :  { %341 = vmatpush1.bf16.msra.mxu0 %v4162_v11 }
  0x27   :  { %342 = vmatprep.subr.bf16.mxu0 %v4373_v1 }
  0x2a   :  { %343 = vmatpush1.bf16.msra.mxu0 %v4163_v12 }
  0x2b   :  { %344 = vmatprep.subr.bf16.mxu0 %v4373_v1 }
  0x2e   :  { %345 = vmatpush1.bf16.msra.mxu0 %v4164_v13 }
  0x31   :  { %355 = vmatmul.mubr.bf16.vlgmr.msra.gmra.mrb[0].mxu0 %v4165_v14 }
  0x32   :  { %3870 = vmatprep.mubr.msk.bf16.mxu0 %vm282_vm0, %v4168_v15 }
  0x39   :  { %363 = vmatmul.mubr.bf16.gmra.mrb[4].mxu0 %v4170_v16 }
  0x3a   :  { %3871 = vmatprep.mubr.msk.bf16.mxu0 %vm282_vm0, %v4171_v17 }
  0x41   :  { %371 = vmatmul.mubr.bf16.gmra.mrb[8].mxu0 %v4173_v18 }
  0x42   :  { %3872 = vmatprep.mubr.msk.bf16.mxu0 %vm282_vm0, %v4174_v19 }
  0x49   :  { %379 = vmatmul.mubr.bf16.gmra.mrb[12].mxu0 %v4176_v20 }
  0x4a   :  { %3873 = vmatprep.mubr.msk.bf16.mxu0 %vm282_vm0, %v4177_v21 }
  0x51   :  { %387 = vmatmul.mubr.bf16.gmra.mrb[16].mxu0 %v4179_v22 }
  0x52   :  { %3874 = vmatprep.mubr.msk.bf16.mxu0 %vm282_vm0, %v4180_v23 }
  0x59   :  { %395 = vmatmul.mubr.bf16.gmra.mrb[20].mxu0 %v4182_v24 }
  0x5a   :  { %3875 = vmatprep.mubr.msk.bf16.mxu0 %vm282_vm0, %v4183_v25 }
  0x5b   :  { %16 = vsyncpa [#allocation8], 0  ;;  %v4186_v27 = vld [vmem:[%s6129_s0 + $0x74] ss:$8 sps:$4 sm:$0xff]   ;;  %v4188_v28 = vld [vmem:[%s6129_s0 + $0x70] ss:$8 sps:$4 sm:$0xff]  }
  0x5c   :  { %v4189_v29 = vld [vmem:[%s6129_s0 + $0x84] ss:$8 sps:$4 sm:$0xff]   ;;  %v4191_v30 = vld [vmem:[%s6129_s0 + $0x80] ss:$8 sps:$4 sm:$0xff]   ;;  %v4192_v31 = vld [vmem:[%s6129_s0 + $0x94] ss:$8 sps:$4 sm:$0xff]  }
  0x5d   :  { %v4194_v32 = vld [vmem:[%s6129_s0 + $0x90] ss:$8 sps:$4 sm:$0xff]   ;;  %v4583_v33 = vld [vmem:[%s6131_s2] ss:$0 sm:$0xff]  ;;  %vm483_vm1 = vcmask 244736   ;;  %s4374_s28 = smov 30  }
  0x5e   :  { %v4195_v43 = vld [vmem:[%s6129_s0 + $0xa4] ss:$8 sps:$4 sm:$0xff]   ;;  %v4197_v46 = vld [vmem:[%s6129_s0 + $0xa0] ss:$8 sps:$4 sm:$0xff]   ;;  %s4375_s29 = smov 22   ;;  %s4376_s1 = smov 60  }
  0x5f   :  { %s4377_s30 = smov 120   ;;  %s4378_s12 = smov 90   ;;  %vm586_vm2 = vcmask 490496   ;;  %vm590_vm3 = vcmask 982016   ;;  %vm588_vm4 = vcmask 736256   ;;  %vm592_vm5 = vcmask 179200  }
  0x60   :  { %s4379_s13 = smov 52   ;;  %s4380_s14 = smov 82   ;;  %vm594_vm6 = vcmask 424960   ;;  %vm596_vm7 = vcmask 670720   ;;  %vm598_vm8 = vcmask 916480   ;;  %vm602_vm9 = vcmask 359424  }
  0x61   :  { %403 = vmatmul.mubr.bf16.gmra.mrb[24].mxu0 %v4185_v26  ;;  %s4382_s21 = smov 14   ;;  %s4383_s22 = smov 74   ;;  %vm600_vm10 = vcmask 113664   ;;  %vm604_vm11 = vcmask 605184   ;;  %vm6144_vm12 = vcmask 850944   ;;  %vm6142_vm13 = vcmask 48128  }
  0x62   :  { %3876 = vmatprep.mubr.msk.bf16.mxu0 %vm282_vm0, %v4186_v27  ;;  %s4384_s23 = smov 104   ;;  %s4385_s24 = smov 44   ;;  %vm610_vm14 = vcmask 293888   ;;  %vm612_vm15 = vcmask 539648  }
  0x63   :  { %s4386_s25 = smov 6   ;;  %s4387_s26 = smov 36  }
  0x64   :  { %s4388_s15 = smov 66  }
  0x69   :  { %411 = vmatmul.mubr.bf16.gmra.mrb[28].mxu0 %v4188_v28 }
  0x6a   :  { %3877 = vmatprep.mubr.msk.bf16.mxu0 %vm282_vm0, %v4189_v29 }
  0x71   :  { %419 = vmatmul.mubr.bf16.gmra.mrb[32].mxu0 %v4191_v30 }
  0x72   :  { %3878 = vmatprep.mubr.msk.bf16.mxu0 %vm282_vm0, %v4192_v31 }
  0x79   :  { %427 = vmatmul.mubr.bf16.gmra.mrb[36].mxu0 %v4194_v32 }
  0x7a   :  { %3879 = vmatprep.mubr.msk.bf16.mxu0 %vm282_vm0, %v4195_v43  ;;  %v4200_v43 = vld [vmem:[%s6129_s0 + $0xb0] ss:$8 sps:$4 sm:$0xff]  }
  0x81   :  { %435 = vmatmul.mubr.bf16.gmra.mrb[40].mxu0 %v4197_v46 }
 0x104   :  { %v356_v34 = vpop.f32.mrb[0].mxu0 }
 0x105   :  { %v357_v35 = vadd.f32 %v4583_v33, %v356_v34  ;;  %v358_v36 = vpop.f32.mrb[1].mxu0 }
 0x106   :  { %v359_v37 = vpop.f32.mrb[2].mxu0 }
 0x107   :  { %v458_v38 = vmax.f32 %v357_v35, 0.0  ;;  %v360_v39 = vadd.f32 %v4583_v33, %v359_v37  ;;  %v361_v40 = vpop.f32.mrb[3].mxu0 }
 0x109   :  { %484 = vst.msk [vmem:[#allocation2] sm:$0xff] %vm483_vm1, %v458_v38  ;;  %v459_v41 = vmax.f32 %v360_v39, 0.0 }
 0x10b   :  { %485 = vst.msk [vmem:[#allocation2 + $0x8] sm:$0xff] %vm483_vm1, %v459_v41 }
 0x10c   :  { %v364_v42 = vpop.f32.mrb[4].mxu0 }
 0x10d   :  { %v365_v44 = vadd.f32 %v4583_v33, %v364_v42  ;;  %v366_v45 = vpop.f32.mrb[5].mxu0  ;;  %v4198_v42 = vld [vmem:[%s6129_s0 + $0xb4] ss:$8 sps:$4 sm:$0xff]  }
 0x10e   :  { %v367_v47 = vpop.f32.mrb[6].mxu0  ;;  %3880 = vmatprep.mubr.msk.bf16.mxu0 %vm282_vm0, %v4198_v42 }
 0x10f   :  { %v460_v48 = vmax.f32 %v365_v44, 0.0  ;;  %v368_v49 = vadd.f32 %v4583_v33, %v367_v47  ;;  %v369_v50 = vpop.f32.mrb[7].mxu0  ;;  %443 = vmatmul.mubr.bf16.gmra.mrb[44].mxu0 %v4200_v43 }
 0x110   :  { %v620_v51 = vld [vmem:[#allocation2 + $0x6] sm:$0x3]  ;;  %v510_v53 = vld [vmem:[#allocation2 + $0x2] sm:$0x3]  ;;  %v511_v62 = vld [vmem:[#allocation2 + $0x4] sm:$0x3] }
 0x111   :  { %486 = vst.msk [vmem:[#allocation2 + $0x10] sm:$0xff] %vm483_vm1, %v460_v48  ;;  %v461_v52 = vmax.f32 %v368_v49, 0.0  ;;  %636 = vrot.lane.b32.xlu0 %v620_v51, %s4374_s28  ;;  %v512_v2 = vld [vmem:[#allocation2 + $0x6] sm:$0x3] }
 0x112   :  { %v728_v11 = vld [vmem:[#allocation2 + $0xa] sm:$0x3]  ;;  %v836_v14 = vld [vmem:[#allocation2 + $0xe] sm:$0x3]  ;;  %v621_v23 = vld [vmem:[#allocation2 + $0x8] sm:$0x3] }
 0x113   :  { %487 = vst.msk [vmem:[#allocation2 + $0x18] sm:$0xff] %vm483_vm1, %v461_v52  ;;  %v729_v26 = vld [vmem:[#allocation2 + $0xc] sm:$0x3]  ;;  %v622_v29 = vld [vmem:[#allocation2 + $0xa] sm:$0x3]  ;;  %v64_v48 = vld [vmem:[%s6129_s0 + $0xc0] sm:$0xff] }
 0x114   :  { %v372_v54 = vpop.f32.mrb[8].mxu0  ;;  %v730_v32 = vld [vmem:[#allocation2 + $0xe] sm:$0x3]  ;;  %v3856_v49 = vcombine.high %v64_v48, %v64_v48  ;;  %v3855_v51 = vcombine.low %v64_v48, %v64_v48  ;;  %s4381_s0 = smov 112  }
 0x115   :  { %526 = vrot.lane.b32.xlu0 %v510_v53, %s4374_s28  ;;  %v373_v55 = vadd.f32 %v4583_v33, %v372_v54  ;;  %v374_v56 = vpop.f32.mrb[9].mxu0 }
 0x116   :  { %v375_v57 = vpop.f32.mrb[10].mxu0  ;;  %3881 = vmatprep.mubr.msk.bf16.mxu0 %vm282_vm0, %v3856_v49  ;;  %vm6141_vm0 = vcmask 781314  }
 0x117   :  { %v462_v58 = vmax.f32 %v373_v55, 0.0  ;;  %v376_v59 = vadd.f32 %v4583_v33, %v375_v57  ;;  %v377_v60 = vpop.f32.mrb[11].mxu0  ;;  %451 = vmatmul.mubr.bf16.gmra.mrb[48].mxu0 %v3855_v51 }
 0x118   :  { %v514_v61 = vld [vmem:[#allocation2 + $0x16] sm:$0x3]  ;;  %v513_v39 = vld [vmem:[#allocation2 + $0x14] sm:$0x3]  ;;  %v837_v45 = vld [vmem:[#allocation2 + $0x10] sm:$0x3] }
 0x119   :  { %542 = vrot.lane.b32.xlu1 %v514_v61, %s4375_s29  ;;  %530 = vrot.lane.b32.xlu0 %v511_v62, %s4376_s1  ;;  %488 = vst.msk [vmem:[#allocation2 + $0x20] sm:$0xff] %vm483_vm1, %v462_v58  ;;  %v463_v63 = vmax.f32 %v376_v59, 0.0  ;;  %v838_v47 = vld [vmem:[#allocation2 + $0x12] sm:$0x3] }
 0x11a   :  { %v731_v0 = vld [vmem:[#allocation2 + $0x1c] sm:$0x3]  ;;  %v732_v10 = vld [vmem:[#allocation2 + $0x1e] sm:$0x3]  ;;  %v515_v25 = vld [vmem:[#allocation2 + $0x18] sm:$0x3] }
 0x11b   :  { %489 = vst.msk [vmem:[#allocation2 + $0x28] sm:$0xff] %vm483_vm1, %v463_v63  ;;  %v625_v13 = vld [vmem:[#allocation2 + $0x1c] sm:$0x3]  ;;  %v626_v22 = vld [vmem:[#allocation2 + $0x1e] sm:$0x3] }
 0x11c   :  { %v380_v3 = vpop.f32.mrb[12].mxu0  ;;  %v516_v28 = vld [vmem:[#allocation2 + $0x1a] sm:$0x3]  ;;  %v623_v53 = vld [vmem:[#allocation2 + $0x18] sm:$0x3] }
 0x11d   :  { %756 = vrot.lane.b32.xlu1 %v731_v0, %s4377_s30  ;;  %534 = vrot.lane.b32.xlu0 %v512_v2, %s4378_s12  ;;  %v381_v4 = vadd.f32 %v4583_v33, %v380_v3  ;;  %v382_v5 = vpop.f32.mrb[13].mxu0  ;;  %v624_v61 = vld [vmem:[#allocation2 + $0x1a] sm:$0x3] }
 0x11e   :  { %v383_v6 = vpop.f32.mrb[14].mxu0 }
 0x11f   :  { %v464_v7 = vmax.f32 %v381_v4, 0.0  ;;  %v384_v8 = vadd.f32 %v4583_v33, %v383_v6  ;;  %v385_v9 = vpop.f32.mrb[15].mxu0 }
 0x120   :  { %v840_v31 = vld [vmem:[#allocation2 + $0x22] sm:$0x3]  ;;  %v733_v40 = vld [vmem:[#allocation2 + $0x20] sm:$0x3]  ;;  %v841_v44 = vld [vmem:[#allocation2 + $0x24] sm:$0x3] }
 0x121   :  { %760 = vrot.lane.b32.xlu1 %v732_v10, %s4375_s29  ;;  %744 = vrot.lane.b32.xlu0 %v728_v11, %s4374_s28  ;;  %490 = vst.msk [vmem:[#allocation2 + $0x30] sm:$0xff] %vm483_vm1, %v464_v7  ;;  %v465_v12 = vmax.f32 %v384_v8, 0.0  ;;  %v734_v46 = vld [vmem:[#allocation2 + $0x22] sm:$0x3]  ;;  %v842_v52 = vld [vmem:[#allocation2 + $0x26] sm:$0x3] }
 0x122   :  { %v627_v60 = vld [vmem:[#allocation2 + $0x2c] sm:$0x3]  ;;  %v517_v63 = vld [vmem:[#allocation2 + $0x28] sm:$0x3]  ;;  %v839_v0 = vld [vmem:[#allocation2 + $0x20] sm:$0x3] }
 0x123   :  { %491 = vst.msk [vmem:[#allocation2 + $0x38] sm:$0xff] %vm483_vm1, %v465_v12  ;;  %v1039_v3 = vld [vmem:[#allocation2 + $0x2e] sm:$0x3]  ;;  %v944_v5 = vld [vmem:[#allocation2 + $0x2a] sm:$0x3] }
 0x124   :  { %v388_v15 = vpop.f32.mrb[16].mxu0  ;;  %v945_v7 = vld [vmem:[#allocation2 + $0x2c] sm:$0x3]  ;;  %v946_v9 = vld [vmem:[#allocation2 + $0x2e] sm:$0x3] }
 0x125   :  { %656 = vrot.lane.b32.xlu1 %v625_v13, %s4379_s13  ;;  %852 = vrot.lane.b32.xlu0 %v836_v14, %s4374_s28  ;;  %v389_v16 = vadd.f32 %v4583_v33, %v388_v15  ;;  %v390_v17 = vpop.f32.mrb[17].mxu0  ;;  %v628_v11 = vld [vmem:[#allocation2 + $0x2e] sm:$0x3]  ;;  %v518_v13 = vld [vmem:[#allocation2 + $0x2a] sm:$0x3] }
 0x126   :  { %v391_v18 = vpop.f32.mrb[18].mxu0 }
 0x127   :  { %v466_v19 = vmax.f32 %v389_v16, 0.0  ;;  %v392_v20 = vadd.f32 %v4583_v33, %v391_v18  ;;  %v393_v21 = vpop.f32.mrb[19].mxu0 }
 0x128   :  { %v735_v2 = vld [vmem:[#allocation2 + $0x30] sm:$0x3]  ;;  %v843_v4 = vld [vmem:[#allocation2 + $0x34] sm:$0x3]  ;;  %v736_v6 = vld [vmem:[#allocation2 + $0x32] sm:$0x3] }
 0x129   :  { %660 = vrot.lane.b32.xlu1 %v626_v22, %s4380_s14  ;;  %640 = vrot.lane.b32.xlu0 %v621_v23, %s4376_s1  ;;  %492 = vst.msk [vmem:[#allocation2 + $0x40] sm:$0xff] %vm483_vm1, %v466_v19  ;;  %v467_v24 = vmax.f32 %v392_v20, 0.0  ;;  %v630_v8 = vld [vmem:[#allocation2 + $0x32] sm:$0x3]  ;;  %v738_v10 = vld [vmem:[#allocation2 + $0x36] sm:$0x3] }
 0x12a   :  { %v948_v12 = vld [vmem:[#allocation2 + $0x3e] sm:$0x3]  ;;  %v521_v14 = vld [vmem:[#allocation2 + $0x3c] sm:$0x3]  ;;  %v1146_v15 = vld [vmem:[#allocation2 + $0x32] sm:$0x3] }
 0x12b   :  { %493 = vst.msk [vmem:[#allocation2 + $0x48] sm:$0xff] %vm483_vm1, %v467_v24  ;;  %v846_v16 = vld [vmem:[#allocation2 + $0x3a] sm:$0x3]  ;;  %v1253_v17 = vld [vmem:[#allocation2 + $0x36] sm:$0x3] }
 0x12c   :  { %v396_v27 = vpop.f32.mrb[20].mxu0  ;;  %v1040_v19 = vld [vmem:[#allocation2 + $0x30] sm:$0x3]  ;;  %v1147_v24 = vld [vmem:[#allocation2 + $0x34] sm:$0x3] }
 0x12d   :  { %546 = vrot.lane.b32.xlu1 %v515_v25, %s4379_s13  ;;  %748 = vrot.lane.b32.xlu0 %v729_v26, %s4376_s1  ;;  %v397_v30 = vadd.f32 %v4583_v33, %v396_v27  ;;  %v398_v35 = vpop.f32.mrb[21].mxu0  ;;  %v737_v42 = vld [vmem:[#allocation2 + $0x34] sm:$0x3] }
 0x12e   :  { %v399_v36 = vpop.f32.mrb[22].mxu0 }
 0x12f   :  { %v468_v34 = vmax.f32 %v397_v30, 0.0  ;;  %v400_v37 = vadd.f32 %v4583_v33, %v399_v36  ;;  %v401_v38 = vpop.f32.mrb[23].mxu0  ;;  %v844_v36 = vld [vmem:[#allocation2 + $0x36] sm:$0x3] }
 0x130   :  { %v1043_v18 = vld [vmem:[#allocation2 + $0x42] sm:$0x3]  ;;  %v1150_v23 = vld [vmem:[#allocation2 + $0x46] sm:$0x3]  ;;  %v1044_v30 = vld [vmem:[#allocation2 + $0x44] sm:$0x3] }
 0x131   :  { %550 = vrot.lane.b32.xlu1 %v516_v28, %s4380_s14  ;;  %644 = vrot.lane.b32.xlu0 %v622_v29, %s4378_s12  ;;  %494 = vst.msk [vmem:[#allocation2 + $0x50] sm:$0xff] %vm483_vm1, %v468_v34  ;;  %v469_v41 = vmax.f32 %v400_v37, 0.0  ;;  %v1148_v34 = vld [vmem:[#allocation2 + $0x36] sm:$0x3]  ;;  %v949_v35 = vld [vmem:[#allocation2 + $0x40] sm:$0x3] }
 0x132   :  { %v950_v38 = vld [vmem:[#allocation2 + $0x42] sm:$0x3]  ;;  %v633_v49 = vld [vmem:[#allocation2 + $0x44] sm:$0x3] }
 0x133   :  { %495 = vst.msk [vmem:[#allocation2 + $0x58] sm:$0xff] %vm483_vm1, %v469_v41  ;;  %v631_v41 = vld [vmem:[#allocation2 + $0x40] sm:$0x3] }
 0x134   :  { %v404_v50 = vpop.f32.mrb[24].mxu0 }
 0x135   :  { %868 = vrot.lane.b32.xlu1 %v840_v31, %s4375_s29  ;;  %752 = vrot.lane.b32.xlu0 %v730_v32, %s4378_s12  ;;  %v405_v54 = vadd.f32 %v4583_v33, %v404_v50  ;;  %v406_v55 = vpop.f32.mrb[25].mxu0  ;;  %v1041_v31 = vld [vmem:[#allocation2 + $0x32] sm:$0x3]  ;;  %v1045_v32 = vld [vmem:[#allocation2 + $0x46] sm:$0x3] }
 0x136   :  { %v407_v56 = vpop.f32.mrb[26].mxu0  ;;  %v1254_v50 = vld [vmem:[#allocation2 + $0x38] sm:$0x3] }
 0x137   :  { %v470_v57 = vmax.f32 %v405_v54, 0.0  ;;  %v408_v58 = vadd.f32 %v4583_v33, %v407_v56  ;;  %v409_v59 = vpop.f32.mrb[27].mxu0  ;;  %v1255_v54 = vld [vmem:[#allocation2 + $0x3a] sm:$0x3] }
 0x139   :  { %764 = vrot.lane.b32.xlu1 %v733_v40, %s4379_s13  ;;  %538 = vrot.lane.b32.xlu0 %v513_v39, %s4377_s30  ;;  %496 = vst.msk [vmem:[#allocation2 + $0x60] sm:$0xff] %vm483_vm1, %v470_v57  ;;  %v471_v62 = vmax.f32 %v408_v58, 0.0  ;;  %v629_v39 = vld [vmem:[#allocation2 + $0x30] sm:$0x3]  ;;  %v1151_v57 = vld [vmem:[#allocation2 + $0x48] sm:$0x3] }
 0x13a   :  { %v845_v58 = vld [vmem:[#allocation2 + $0x38] sm:$0x3] }
 0x13b   :  { %497 = vst.msk [vmem:[#allocation2 + $0x68] sm:$0xff] %vm483_vm1, %v471_v62  ;;  %v522_v62 = vld [vmem:[#allocation2 + $0x3e] sm:$0x3] }
 0x13c   :  { %v412_v20 = vpop.f32.mrb[28].mxu0 }
 0x13d   :  { %872 = vrot.lane.b32.xlu1 %v841_v44, %s4379_s13  ;;  %856 = vrot.lane.b32.xlu0 %v837_v45, %s4376_s1  ;;  %v413_v21 = vadd.f32 %v4583_v33, %v412_v20  ;;  %v414_v22 = vpop.f32.mrb[29].mxu0  ;;  %v740_v45 = vld [vmem:[#allocation2 + $0x46] sm:$0x3] }
 0x13e   :  { %v415_v25 = vpop.f32.mrb[30].mxu0  ;;  %v632_v22 = vld [vmem:[#allocation2 + $0x42] sm:$0x3] }
 0x13f   :  { %v472_v26 = vmax.f32 %v413_v21, 0.0  ;;  %v416_v27 = vadd.f32 %v4583_v33, %v415_v25  ;;  %v417_v28 = vpop.f32.mrb[31].mxu0  ;;  %v847_v21 = vld [vmem:[#allocation2 + $0x48] sm:$0x3] }
 0x141   :  { %768 = vrot.lane.b32.xlu1 %v734_v46, %s4380_s14  ;;  %860 = vrot.lane.b32.xlu0 %v838_v47, %s4378_s12  ;;  %498 = vst.msk [vmem:[#allocation2 + $0x70] sm:$0xff] %vm483_vm1, %v472_v26  ;;  %v473_v29 = vmax.f32 %v416_v27, 0.0  ;;  %v947_v46 = vld [vmem:[#allocation2 + $0x3c] sm:$0x3] }
 0x143   :  { %499 = vst.msk [vmem:[#allocation2 + $0x78] sm:$0xff] %vm483_vm1, %v473_v29 }
 0x145   :  { %876 = vrot.lane.b32.xlu1 %v842_v52, %s4380_s14  ;;  %648 = vrot.lane.b32.xlu0 %v623_v53, %s4377_s30  ;;  %v1257_v53 = vld [vmem:[#allocation2 + $0x4a] sm:$0x3] }
 0x149   :  { %664 = vrot.lane.b32.xlu1 %v627_v60, %s4381_s0  ;;  %652 = vrot.lane.b32.xlu0 %v624_v61, %s4375_s29  ;;  %v1258_v61 = vld [vmem:[#allocation2 + $0x4c] sm:$0x3] }
 0x14d   :  { %554 = vrot.lane.b32.xlu1 %v517_v63, %s4381_s0  ;;  %864 = vrot.lane.b32.xlu0 %v839_v0, %s4377_s30 }
 0x151   :  { %772 = vrot.lane.b32.xlu1 %v735_v2, %s4381_s0  ;;  %1055 = vrot.lane.b32.xlu0 %v1039_v3, %s4374_s28  ;;  %v1152_v2 = vld [vmem:[#allocation2 + $0x4a] sm:$0x3]  ;;  %v1042_v3 = vld [vmem:[#allocation2 + $0x40] sm:$0x3] }
 0x155   :  { %880 = vrot.lane.b32.xlu1 %v843_v4, %s4381_s0  ;;  %960 = vrot.lane.b32.xlu0 %v944_v5, %s4374_s28 }
 0x159   :  { %776 = vrot.lane.b32.xlu1 %v736_v6, %s4382_s21  ;;  %964 = vrot.lane.b32.xlu0 %v945_v7, %s4376_s1  ;;  %v1259_v6 = vld [vmem:[#allocation2 + $0x4e] sm:$0x3]  ;;  %v1149_v7 = vld [vmem:[#allocation2 + $0x44] sm:$0x3] }
 0x15d   :  { %676 = vrot.lane.b32.xlu1 %v630_v8, %s4383_s22  ;;  %968 = vrot.lane.b32.xlu0 %v946_v9, %s4378_s12  ;;  %v420_v8 = vpop.f32.mrb[32].mxu0  ;;  %v727_v9 = vld [vmem:[#allocation2 + $0x8] sm:$0x3] }
 0x161   :  { %784 = vrot.lane.b32.xlu1 %v738_v10, %s4383_s22  ;;  %668 = vrot.lane.b32.xlu0 %v628_v11, %s4382_s21  ;;  %v421_v10 = vadd.f32 %v4583_v33, %v420_v8  ;;  %v422_v11 = vpop.f32.mrb[33].mxu0 }
 0x165   :  { %976 = vrot.lane.b32.xlu1 %v948_v12, %s4375_s29  ;;  %558 = vrot.lane.b32.xlu0 %v518_v13, %s4382_s21  ;;  %v423_v13 = vpop.f32.mrb[34].mxu0 }
 0x169   :  { %570 = vrot.lane.b32.xlu1 %v521_v14, %s4384_s23  ;;  %1162 = vrot.lane.b32.xlu0 %v1146_v15, %s4374_s28  ;;  %v509_v14 = vld [vmem:[#allocation2] sm:$0x3] }
 0x16d   :  { %892 = vrot.lane.b32.xlu1 %v846_v16, %s4383_s22  ;;  %1269 = vrot.lane.b32.xlu0 %v1253_v17, %s4374_s28 }
 0x171   :  { %1071 = vrot.lane.b32.xlu1 %v1043_v18, %s4375_s29  ;;  %1059 = vrot.lane.b32.xlu0 %v1040_v19, %s4376_s1  ;;  %v474_v18 = vmax.f32 %v421_v10, 0.0  ;;  %v424_v19 = vadd.f32 %v4583_v33, %v423_v13  ;;  %v951_v13 = vld [vmem:[#allocation2 + $0x50] sm:$0x3] }
 0x173   :  { %500 = vst.msk [vmem:[#allocation2 + $0x80] sm:$0xff] %vm483_vm1, %v474_v18  ;;  %v475_v26 = vmax.f32 %v424_v19, 0.0 }
 0x175   :  { %1178 = vrot.lane.b32.xlu1 %v1150_v23, %s4375_s29  ;;  %1166 = vrot.lane.b32.xlu0 %v1147_v24, %s4376_s1  ;;  %v425_v23 = vpop.f32.mrb[35].mxu0  ;;  %501 = vst.msk [vmem:[#allocation2 + $0x88] sm:$0xff] %vm483_vm1, %v475_v26 }
 0x176   :  { %v1047_v23 = vld [vmem:[#allocation2 + $0x56] sm:$0x3] }
 0x179   :  { %1075 = vrot.lane.b32.xlu1 %v1044_v30, %s4379_s13  ;;  %1063 = vrot.lane.b32.xlu0 %v1041_v31, %s4378_s12 }
 0x17d   :  { %1079 = vrot.lane.b32.xlu1 %v1045_v32, %s4380_s14  ;;  %1170 = vrot.lane.b32.xlu0 %v1148_v34, %s4378_s12  ;;  %v4202_v32 = vld [vmem:[%s6132_s3 + $0x40] sm:$0xff]  }
 0x17e   :  { %v4203_v34 = vld [vmem:[%s6132_s3] sm:$0xff]   ;;  %4013 = vmatprep.subr.bf16.mxu1 %v4202_v32  ;;  %v4212_v32 = vld [vmem:[%s6132_s3 + $0x68] sm:$0xff]  }
 0x17f   :  { %4014 = vmatpush3.bf16.msra.mxu1 %v4203_v34 }
 0x181   :  { %980 = vrot.lane.b32.xlu1 %v949_v35, %s4379_s13  ;;  %884 = vrot.lane.b32.xlu0 %v844_v36, %s4382_s21  ;;  %v741_v36 = vld [vmem:[#allocation2 + $0x48] sm:$0x3] }
 0x183   :  { %v4691_v37 = vpop.permute.xlu0 %636 }
 0x185   :  { %984 = vrot.lane.b32.xlu1 %v950_v38, %s4380_s14  ;;  %672 = vrot.lane.b32.xlu0 %v629_v39, %s4385_s24  ;;  %v739_v38 = vld [vmem:[#allocation2 + $0x44] sm:$0x3]  ;;  %v4204_v39 = vld [vmem:[%s6132_s3 + $0x48] sm:$0xff]  }
 0x186   :  { %4015 = vmatprep.subr.bf16.mxu1 %v4204_v39  ;;  %v850_v39 = vld [vmem:[#allocation2 + $0x4e] sm:$0x3] }
 0x187   :  { %v4695_v40 = vpop.permute.xlu0 %526 }
 0x188   :  { %v585_v24 = vsel %vm483_vm1, %v509_v14, %v4695_v40  ;;  %v428_v40 = vpop.f32.mrb[36].mxu0  ;;  %v848_v14 = vld [vmem:[#allocation2 + $0x4a] sm:$0x3] }
 0x189   :  { %680 = vrot.lane.b32.xlu1 %v631_v41, %s4384_s23  ;;  %780 = vrot.lane.b32.xlu0 %v737_v42, %s4385_s24 }
 0x18b   :  { %v4699_v43 = vpop.permute.xlu1 %542  ;;  %v4701_v44 = vpop.permute.xlu0 %530 }
 0x18c   :  { %v587_v27 = vsel %vm586_vm2, %v585_v24, %v4701_v44  ;;  %v429_v44 = vadd.f32 %v4583_v33, %v428_v40  ;;  %v742_v24 = vld [vmem:[#allocation2 + $0x4a] sm:$0x3] }
 0x18d   :  { %792 = vrot.lane.b32.xlu1 %v740_v45, %s4386_s25  ;;  %972 = vrot.lane.b32.xlu0 %v947_v46, %s4377_s30  ;;  %v4205_v45 = vld [vmem:[%s6132_s3 + $0x8] sm:$0xff]  }
 0x18e   :  { %v849_v46 = vld [vmem:[#allocation2 + $0x4c] sm:$0x3]  ;;  %4016 = vmatpush3.bf16.msra.mxu1 %v4205_v45 }
 0x18f   :  { %v4705_v47 = vpop.permute.xlu1 %756  ;;  %v4707_v48 = vpop.permute.xlu0 %534 }
 0x190   :  { %v589_v29 = vsel %vm588_vm4, %v587_v27, %v4707_v48  ;;  %v634_v48 = vld [vmem:[#allocation2 + $0x46] sm:$0x3] }
 0x191   :  { %688 = vrot.lane.b32.xlu1 %v633_v49, %s4387_s26  ;;  %1273 = vrot.lane.b32.xlu0 %v1254_v50, %s4376_s1  ;;  %v430_v49 = vpop.f32.mrb[37].mxu0  ;;  %v476_v50 = vmax.f32 %v429_v44, 0.0  ;;  %v4214_v44 = vld [vmem:[%s6132_s3 + $0x70] sm:$0xff]  }
 0x192   :  { %v1153_v49 = vld [vmem:[#allocation2 + $0x58] sm:$0x3] }
 0x193   :  { %v4711_v51 = vpop.permute.xlu1 %760  ;;  %v745_v52 = vpop.permute.xlu0 %744  ;;  %502 = vst.msk [vmem:[#allocation2 + $0x90] sm:$0xff] %vm483_vm1, %v476_v50  ;;  %v1455_v50 = vld [vmem:[#allocation2 + $0x56] sm:$0x3] }
 0x194   :  { %v803_v12 = vsel %vm483_vm1, %v727_v9, %v745_v52  ;;  %v431_v52 = vpop.f32.mrb[38].mxu0 }
 0x195   :  { %1285 = vrot.lane.b32.xlu1 %v1257_v53, %s4375_s29  ;;  %1277 = vrot.lane.b32.xlu0 %v1255_v54, %s4378_s12  ;;  %v1046_v53 = vld [vmem:[#allocation2 + $0x54] sm:$0x3]  ;;  %v432_v54 = vadd.f32 %v4583_v33, %v431_v52 }
 0x197   :  { %v4715_v55 = vpop.permute.xlu1 %656  ;;  %v4717_v56 = vpop.permute.xlu0 %852 }
 0x199   :  { %1182 = vrot.lane.b32.xlu1 %v1151_v57, %s4379_s13  ;;  %888 = vrot.lane.b32.xlu0 %v845_v58, %s4385_s24  ;;  %v433_v57 = vpop.f32.mrb[39].mxu0 }
 0x19b   :  { %v4721_v59 = vpop.permute.xlu1 %660  ;;  %v4723_v60 = vpop.permute.xlu0 %640 }
 0x19d   :  { %1289 = vrot.lane.b32.xlu1 %v1258_v61, %s4379_s13  ;;  %574 = vrot.lane.b32.xlu0 %v522_v62, %s4386_s25  ;;  %v4206_v62 = vld [vmem:[%s6132_s3 + $0x50] sm:$0xff]  }
 0x19e   :  { %4017 = vmatprep.subr.bf16.mxu1 %v4206_v62  ;;  %v1260_v62 = vld [vmem:[#allocation2 + $0x5c] sm:$0x3] }
 0x19f   :  { %v4727_v63 = vpop.permute.xlu1 %546  ;;  %v749_v0 = vpop.permute.xlu0 %748 }
 0x1a0   :  { %v804_v15 = vsel %vm586_vm2, %v803_v12, %v749_v0  ;;  %v4207_v0 = vld [vmem:[%s6132_s3 + $0x10] sm:$0xff]   ;;  %v4209_v12 = vld [vmem:[%s6132_s3 + $0x18] sm:$0xff]  }
 0x1a1   :  { %1186 = vrot.lane.b32.xlu1 %v1152_v2, %s4380_s14  ;;  %1067 = vrot.lane.b32.xlu0 %v1042_v3, %s4377_s30  ;;  %v619_v2 = vld [vmem:[#allocation2 + $0x4] sm:$0x3]  ;;  %v1256_v3 = vld [vmem:[#allocation2 + $0x48] sm:$0x3] }
 0x1a2   :  { %4018 = vmatpush3.bf16.msra.mxu1 %v4207_v0  ;;  %v1360_v0 = vld [vmem:[#allocation2 + $0x52] sm:$0x3] }
 0x1a3   :  { %v4731_v4 = vpop.permute.xlu1 %550  ;;  %v4733_v5 = vpop.permute.xlu0 %644 }
 0x1a5   :  { %1293 = vrot.lane.b32.xlu1 %v1259_v6, %s4380_s14  ;;  %1174 = vrot.lane.b32.xlu0 %v1149_v7, %s4377_s30  ;;  %v477_v6 = vmax.f32 %v432_v54, 0.0  ;;  %v695_v7 = vsel %vm483_vm1, %v619_v2, %v4691_v37  ;;  %v4208_v37 = vld [vmem:[%s6132_s3 + $0x58] sm:$0xff]  }
 0x1a6   :  { %v696_v8 = vsel %vm586_vm2, %v695_v7, %v4723_v60  ;;  %4019 = vmatprep.subr.bf16.mxu1 %v4208_v37  ;;  %v1261_v7 = vld [vmem:[#allocation2 + $0x5e] sm:$0x3]  ;;  %v1362_v37 = vld [vmem:[#allocation2 + $0x56] sm:$0x3] }
 0x1a7   :  { %v4740_v16 = vpop.permute.xlu1 %868  ;;  %v753_v17 = vpop.permute.xlu0 %752  ;;  %503 = vst.msk [vmem:[#allocation2 + $0x98] sm:$0xff] %vm483_vm1, %v477_v6  ;;  %v697_v9 = vsel %vm588_vm4, %v696_v8, %v4733_v5  ;;  %4020 = vmatpush3.bf16.msra.mxu1 %v4209_v12  ;;  %v1361_v8 = vld [vmem:[#allocation2 + $0x54] sm:$0x3] }
 0x1a8   :  { %v805_v20 = vsel %vm588_vm4, %v804_v15, %v753_v17  ;;  %v835_v17 = vld [vmem:[#allocation2 + $0xc] sm:$0x3] }
 0x1a9   :  { %v806_v25 = vsel %vm590_vm3, %v805_v20, %v4705_v47  ;;  %896 = vrot.lane.b32.xlu1 %v847_v21, %s4384_s23  ;;  %684 = vrot.lane.b32.xlu0 %v632_v22, %s4386_s25  ;;  %v4210_v20 = vld [vmem:[%s6132_s3 + $0x60] sm:$0xff]  }
 0x1aa   :  { %v822_v28 = vrot.slane %v806_v25, 4  ;;  %v911_v25 = vsel %vm483_vm1, %v835_v17, %v4717_v56  ;;  %4021 = vmatprep.subr.bf16.mxu1 %v4210_v20  ;;  %v1459_v17 = vld [vmem:[#allocation2 + $0x6a] sm:$0x3] }
 0x1ab   :  { %v4755_v30 = vpop.permute.xlu1 %764  ;;  %v539_v31 = vpop.permute.xlu0 %538 }
 0x1ac   :  { %830 = vst [vmem:[#allocation3] sm:$0x30] %v822_v28  ;;  %v591_v35 = vsel %vm590_vm3, %v589_v29, %v539_v31  ;;  %v593_v5 = vsel %vm592_vm5, %v539_v31, %v4699_v43  ;;  %v4211_v43 = vld [vmem:[%s6132_s3 + $0x20] sm:$0xff]  }
 0x1ad   :  { %614 = vst [vmem:[#allocation3] sm:$0x3] %v591_v35  ;;  %796 = vrot.lane.b32.xlu1 %v741_v36, %s4387_s26  ;;  %788 = vrot.lane.b32.xlu0 %v739_v38, %s4384_s23  ;;  %v595_v21 = vsel %vm594_vm6, %v593_v5, %v4727_v63  ;;  %v952_v38 = vld [vmem:[#allocation2 + $0x52] sm:$0x3] }
 0x1ae   :  { %4022 = vmatpush3.bf16.msra.mxu1 %v4211_v43 }
 0x1af   :  { %v4770_v41 = vpop.permute.xlu1 %872  ;;  %v4772_v42 = vpop.permute.xlu0 %856  ;;  %4023 = vmatprep.subr.bf16.mxu1 %v4212_v32 }
 0x1b0   :  { %v912_v27 = vsel %vm586_vm2, %v911_v25, %v4772_v42  ;;  %v1460_v25 = vld [vmem:[#allocation2 + $0x6c] sm:$0x3] }
 0x1b1   :  { %904 = vrot.lane.b32.xlu1 %v849_v46, %s4387_s26  ;;  %692 = vrot.lane.b32.xlu0 %v634_v48, %s4388_s15  ;;  %v4215_v46 = vld [vmem:[%s6132_s3 + $0x30] sm:$0xff]  }
 0x1b3   :  { %v4781_v58 = vpop.permute.xlu1 %768  ;;  %v861_v61 = vpop.permute.xlu0 %860 }
 0x1b4   :  { %v913_v28 = vsel %vm588_vm4, %v912_v27, %v861_v61  ;;  %v436_v27 = vpop.f32.mrb[40].mxu0 }
 0x1b5   :  { %1083 = vrot.lane.b32.xlu1 %v1046_v53, %s4381_s0  ;;  %1281 = vrot.lane.b32.xlu0 %v1256_v3, %s4377_s30  ;;  %v4216_v53 = vld [vmem:[%s6132_s3 + $0x78] sm:$0xff]   ;;  %v438_v32 = vpop.f32.mrb[41].mxu0 }
 0x1b7   :  { %v4799_v10 = vpop.permute.xlu1 %876  ;;  %v649_v11 = vpop.permute.xlu0 %648 }
 0x1b8   :  { %v698_v60 = vsel %vm590_vm3, %v697_v9, %v649_v11  ;;  %v1364_v9 = vld [vmem:[#allocation2 + $0x66] sm:$0x3] }
 0x1b9   :  { %v714_v15 = vrot.slane %v698_v60, 6  ;;  %988 = vrot.lane.b32.xlu1 %v951_v13, %s4381_s0  ;;  %900 = vrot.lane.b32.xlu0 %v848_v14, %s4386_s25  ;;  %v956_v13 = vld [vmem:[#allocation2 + $0x66] sm:$0x3]  ;;  %v1562_v14 = vld [vmem:[#allocation2 + $0x5a] sm:$0x3] }
 0x1bb   :  { %722 = vst [vmem:[#allocation3] sm:$0xc] %v714_v15  ;;  %v4812_v18 = vpop.permute.xlu1 %664  ;;  %v653_v19 = vpop.permute.xlu0 %652 }
 0x1bc   :  { %v699_v22 = vsel %vm592_vm5, %v649_v11, %v653_v19  ;;  %v1669_v19 = vld [vmem:[#allocation2 + $0x5e] sm:$0x3] }
 0x1bd   :  { %v700_v26 = vsel %vm594_vm6, %v699_v22, %v4715_v55  ;;  %1087 = vrot.lane.b32.xlu1 %v1047_v23, %s4382_s21  ;;  %800 = vrot.lane.b32.xlu0 %v742_v24, %s4388_s15  ;;  %v597_v55 = vsel %vm596_vm7, %v595_v21, %v4731_v4  ;;  %v807_v4 = vsel %vm592_vm5, %v4705_v47, %v4711_v51  ;;  %v1566_v21 = vld [vmem:[#allocation2 + $0x6e] sm:$0x3]  ;;  %v1456_v22 = vld [vmem:[#allocation2 + $0x58] sm:$0x3] }
 0x1be   :  { %v701_v63 = vsel %vm596_vm7, %v700_v26, %v4721_v59  ;;  %v4213_v59 = vld [vmem:[%s6132_s3 + $0x28] sm:$0xff]   ;;  %v808_v45 = vsel %vm594_vm6, %v807_v4, %v4755_v30  ;;  %v1563_v26 = vld [vmem:[#allocation2 + $0x5c] sm:$0x3] }
 0x1bf   :  { %v702_v29 = vsel %vm598_vm8, %v701_v63, %v4812_v18  ;;  %v4836_v56 = vpop.permute.xlu1 %554  ;;  %v865_v31 = vpop.permute.xlu0 %864  ;;  %v809_v47 = vsel %vm596_vm7, %v808_v45, %v4781_v58  ;;  %4024 = vmatpush3.bf16.msra.mxu1 %v4213_v59  ;;  %v4217_v58 = vld [vmem:[%s6132_s3 + $0x38] sm:$0xff]   ;;  %v1365_v4 = vld [vmem:[#allocation2 + $0x68] sm:$0x3] }
 0x1c0   :  { %v715_v34 = vrot.slane %v702_v29, 6  ;;  %v599_v35 = vsel %vm598_vm8, %v597_v55, %v4836_v56  ;;  %v914_v36 = vsel %vm590_vm3, %v913_v28, %v865_v31  ;;  %v915_v40 = vsel %vm592_vm5, %v865_v31, %v4740_v16  ;;  %4025 = vmatprep.subr.bf16.mxu1 %v4214_v44  ;;  %v1461_v55 = vld [vmem:[#allocation2 + $0x6e] sm:$0x3]  ;;  %v1457_v31 = vld [vmem:[#allocation2 + $0x5a] sm:$0x3] }
 0x1c1   :  { %615 = vst [vmem:[#allocation3 + $0x8] sm:$0x3] %v599_v35  ;;  %v930_v42 = vrot.slane %v914_v36, 2  ;;  %992 = vrot.lane.b32.xlu1 %v952_v38, %s4382_s21  ;;  %908 = vrot.lane.b32.xlu0 %v850_v39, %s4388_s15  ;;  %v916_v48 = vsel %vm594_vm6, %v915_v40, %v4770_v41  ;;  %v437_v29 = vadd.f32 %v4583_v33, %v436_v27  ;;  %v1564_v40 = vld [vmem:[#allocation2 + $0x5e] sm:$0x3] }
 0x1c2   :  { %723 = vst [vmem:[#allocation3 + $0x8] sm:$0xc] %v715_v34  ;;  %v917_v41 = vsel %vm596_vm7, %v916_v48, %v4799_v10  ;;  %v439_v34 = vpop.f32.mrb[42].mxu0  ;;  %v1363_v27 = vld [vmem:[#allocation2 + $0x64] sm:$0x3] }
 0x1c3   :  { %938 = vst [vmem:[#allocation3] sm:$0xc0] %v930_v42  ;;  %v4863_v51 = vpop.permute.xlu1 %772  ;;  %v4865_v16 = vpop.permute.xlu0 %1055  ;;  %4026 = vmatpush3.bf16.msra.mxu1 %v4215_v46  ;;  %v478_v59 = vmax.f32 %v437_v29, 0.0  ;;  %v440_v35 = vadd.f32 %v4583_v33, %v439_v34  ;;  %v1366_v33 = vld [vmem:[#allocation2 + $0x6a] sm:$0x3] }
 0x1c4   :  { %v810_v30 = vsel %vm598_vm8, %v809_v47, %v4863_v51  ;;  %4027 = vmatprep.subr.bf16.mxu1 %v4216_v53  ;;  %v441_v36 = vpop.f32.mrb[43].mxu0  ;;  %v1154_v47 = vld [vmem:[#allocation2 + $0x5a] sm:$0x3]  ;;  %v1157_v53 = vld [vmem:[#allocation2 + $0x6c] sm:$0x3] }
 0x1c5   :  { %v823_v52 = vrot.slane %v810_v30, 4  ;;  %1190 = vrot.lane.b32.xlu1 %v1153_v49, %s4381_s0  ;;  %1471 = vrot.lane.b32.xlu0 %v1455_v50, %s4374_s28  ;;  %504 = vst.msk [vmem:[#allocation2 + $0xa0] sm:$0xff] %vm483_vm1, %v478_v59  ;;  %v479_v42 = vmax.f32 %v440_v35, 0.0  ;;  %v1051_v30 = vld [vmem:[#allocation2 + $0x6a] sm:$0x3] }
 0x1c6   :  { %v1048_v49 = vld [vmem:[#allocation2 + $0x58] sm:$0x3]  ;;  %v1674_v59 = vld [vmem:[#allocation2 + $0x74] sm:$0x3]  ;;  %v1671_v34 = vld [vmem:[#allocation2 + $0x62] sm:$0x3] }
 0x1c7   :  { %831 = vst [vmem:[#allocation3 + $0x8] sm:$0x30] %v823_v52  ;;  %v4879_v54 = vpop.permute.xlu1 %880  ;;  %v4883_v57 = vpop.permute.xlu0 %960  ;;  %4028 = vmatpush3.bf16.msra.mxu1 %v4217_v58  ;;  %505 = vst.msk [vmem:[#allocation2 + $0xa8] sm:$0xff] %vm483_vm1, %v479_v42 }
 0x1c8   :  { %v918_v61 = vsel %vm598_vm8, %v917_v41, %v4879_v54  ;;  %2518 = vmatprep.subr.bf16.mxu1 %v4373_v1  ;;  %v1155_v41 = vld [vmem:[#allocation2 + $0x5c] sm:$0x3] }
 0x1c9   :  { %v931_v2 = vrot.slane %v918_v61, 2  ;;  %1297 = vrot.lane.b32.xlu1 %v1260_v62, %s4381_s0  ;;  %1376 = vrot.lane.b32.xlu0 %v1360_v0, %s4374_s28 }
 0x1cb   :  { %939 = vst [vmem:[#allocation3 + $0x8] sm:$0xc0] %v931_v2  ;;  %v4892_v3 = vpop.permute.xlu1 %776  ;;  %v4894_v6 = vpop.permute.xlu0 %964  ;;  %v1052_v2 = vld [vmem:[#allocation2 + $0x6c] sm:$0x3] }
 0x1cd   :  { %1301 = vrot.lane.b32.xlu1 %v1261_v7, %s4382_s21  ;;  %1380 = vrot.lane.b32.xlu0 %v1361_v8, %s4376_s1  ;;  %v1049_v7 = vld [vmem:[#allocation2 + $0x5a] sm:$0x3] }
 0x1cf   :  { %v4899_v10 = vpop.permute.xlu1 %676  ;;  %v4901_v11 = vpop.permute.xlu0 %968 }
 0x1d1   :  { %1392 = vrot.lane.b32.xlu1 %v1364_v9, %s4375_s29  ;;  %1384 = vrot.lane.b32.xlu0 %v1362_v37, %s4378_s12 }
 0x1d3   :  { %v4905_v12 = vpop.permute.xlu1 %784  ;;  %v4907_v60 = vpop.permute.xlu0 %668 }
 0x1d4   :  { %v703_v58 = vsel %vm600_vm10, %v4812_v18, %v4907_v60  ;;  %v943_v18 = vld [vmem:[#allocation2 + $0x28] sm:$0x3] }
 0x1d5   :  { %1008 = vrot.lane.b32.xlu1 %v956_v13, %s4386_s25  ;;  %1578 = vrot.lane.b32.xlu0 %v1562_v14, %s4374_s28  ;;  %v1053_v13 = vld [vmem:[#allocation2 + $0x6e] sm:$0x3]  ;;  %v1156_v14 = vld [vmem:[#allocation2 + $0x5e] sm:$0x3] }
 0x1d7   :  { %v4911_v5 = vpop.permute.xlu1 %976  ;;  %v4913_v15 = vpop.permute.xlu0 %558 }
 0x1d9   :  { %1487 = vrot.lane.b32.xlu1 %v1459_v17, %s4375_s29  ;;  %1685 = vrot.lane.b32.xlu0 %v1669_v19, %s4374_s28  ;;  %v1019_v17 = vsel %vm483_vm1, %v943_v18, %v4883_v57 }
 0x1db   :  { %v4917_v20 = vpop.permute.xlu1 %570  ;;  %v4919_v43 = vpop.permute.xlu0 %1162 }
 0x1dd   :  { %1594 = vrot.lane.b32.xlu1 %v1566_v21, %s4375_s29  ;;  %1475 = vrot.lane.b32.xlu0 %v1456_v22, %s4376_s1  ;;  %v1673_v21 = vld [vmem:[#allocation2 + $0x72] sm:$0x3] }
 0x1df   :  { %v4923_v23 = vpop.permute.xlu1 %892  ;;  %v4925_v24 = vpop.permute.xlu0 %1269 }
 0x1e1   :  { %1491 = vrot.lane.b32.xlu1 %v1460_v25, %s4379_s13  ;;  %1582 = vrot.lane.b32.xlu0 %v1563_v26, %s4376_s1 }
 0x1e2   :  { %v444_v42 = vpop.f32.mrb[44].mxu0 }
 0x1e3   :  { %v4929_v63 = vpop.permute.xlu1 %1071  ;;  %v4931_v28 = vpop.permute.xlu0 %1059 }
 0x1e5   :  { %1495 = vrot.lane.b32.xlu1 %v1461_v55, %s4380_s14  ;;  %1479 = vrot.lane.b32.xlu0 %v1457_v31, %s4378_s12  ;;  %v1567_v55 = vld [vmem:[#allocation2 + $0x70] sm:$0x3] }
 0x1e7   :  { %v4937_v38 = vpop.permute.xlu1 %1178  ;;  %v4939_v39 = vpop.permute.xlu0 %1166 }
 0x1e9   :  { %1396 = vrot.lane.b32.xlu1 %v1365_v4, %s4379_s13  ;;  %1586 = vrot.lane.b32.xlu0 %v1564_v40, %s4378_s12  ;;  %v1568_v4 = vld [vmem:[#allocation2 + $0x72] sm:$0x3]  ;;  %v1262_v40 = vld [vmem:[#allocation2 + $0x60] sm:$0x3] }
 0x1eb   :  { %v4945_v44 = vpop.permute.xlu1 %1075  ;;  %v4947_v45 = vpop.permute.xlu0 %1063 }
 0x1ed   :  { %1400 = vrot.lane.b32.xlu1 %v1366_v33, %s4380_s14  ;;  %1194 = vrot.lane.b32.xlu0 %v1154_v47, %s4382_s21  ;;  %v1038_v33 = vld [vmem:[#allocation2 + $0x2c] sm:$0x3] }
 0x1ef   :  { %v4951_v46 = vpop.permute.xlu1 %1079  ;;  %v4953_v48 = vpop.permute.xlu0 %1170 }
 0x1f1   :  { %1103 = vrot.lane.b32.xlu1 %v1051_v30, %s4386_s25  ;;  %1091 = vrot.lane.b32.xlu0 %v1048_v49, %s4385_s24  ;;  %v4348_v49 = vld [vmem:[%s6131_s2] ss:$0 sm:$0xff] }
 0x1f3   :  { %v4957_v50 = vpop.permute.xlu1 %980  ;;  %v4959_v52 = vpop.permute.xlu0 %884 }
 0x1f5   :  { %1206 = vrot.lane.b32.xlu1 %v1157_v53, %s4384_s23  ;;  %1198 = vrot.lane.b32.xlu0 %v1155_v41, %s4385_s24  ;;  %v445_v53 = vadd.f32 %v4348_v49, %v444_v42  ;;  %v1675_v41 = vld [vmem:[#allocation2 + $0x76] sm:$0x3] }
 0x1f7   :  { %v4966_v61 = vpop.permute.xlu1 %984  ;;  %v673_v62 = vpop.permute.xlu0 %672 }
 0x1f8   :  { %v704_v0 = vsel %vm602_vm9, %v703_v58, %v673_v62  ;;  %v955_v58 = vld [vmem:[#allocation2 + $0x64] sm:$0x3]  ;;  %v446_v62 = vpop.f32.mrb[45].mxu0 }
 0x1f9   :  { %1107 = vrot.lane.b32.xlu1 %v1052_v2, %s4387_s26  ;;  %1095 = vrot.lane.b32.xlu0 %v1049_v7, %s4383_s22  ;;  %v705_v8 = vsel %vm604_vm11, %v704_v0, %v4899_v10  ;;  %v1020_v10 = vsel %vm586_vm2, %v1019_v17, %v4894_v6  ;;  %v1114_v0 = vsel %vm483_vm1, %v1038_v33, %v4865_v16  ;;  %v480_v2 = vmax.f32 %v445_v53, 0.0  ;;  %v447_v7 = vpop.f32.mrb[46].mxu0  ;;  %v1266_v62 = vld [vmem:[#allocation2 + $0x74] sm:$0x3] }
 0x1fa   :  { %v1021_v22 = vsel %vm588_vm4, %v1020_v10, %v4901_v11  ;;  %v1670_v11 = vld [vmem:[#allocation2 + $0x60] sm:$0x3]  ;;  %v448_v18 = vadd.f32 %v4348_v49, %v447_v7  ;;  %v1265_v10 = vld [vmem:[#allocation2 + $0x72] sm:$0x3] }
 0x1fb   :  { %v4973_v9 = vpop.permute.xlu1 %680  ;;  %v4975_v37 = vpop.permute.xlu0 %780  ;;  %506 = vst.msk [vmem:[#allocation2 + $0xb0] sm:$0xff] %vm483_vm1, %v480_v2 }
 0x1fc   :  { %v706_v60 = vsel %vm6144_vm12, %v705_v8, %v4973_v9  ;;  %v1115_v8 = vsel %vm586_vm2, %v1114_v0, %v4931_v28 }
 0x1fd   :  { %v716_v19 = vrot.slane %v706_v60, 6  ;;  %1111 = vrot.lane.b32.xlu1 %v1053_v13, %s4388_s15  ;;  %1202 = vrot.lane.b32.xlu0 %v1156_v14, %s4383_s22  ;;  %v449_v60 = vpop.f32.mrb[47].mxu0  ;;  %v1145_v13 = vld [vmem:[#allocation2 + $0x30] sm:$0x3]  ;;  %v1116_v14 = vsel %vm588_vm4, %v1115_v8, %v4947_v45 }
 0x1fe   :  { %v1160_v60 = vld [vmem:[#allocation2 + $0x72] sm:$0x3] }
 0x1ff   :  { %724 = vst [vmem:[#allocation3 + $0x10] sm:$0xc] %v716_v19  ;;  %v4987_v25 = vpop.permute.xlu1 %792  ;;  %v4989_v26 = vpop.permute.xlu0 %972 }
 0x200   :  { %v1022_v57 = vsel %vm590_vm3, %v1021_v22, %v4989_v26  ;;  %v481_v22 = vmax.f32 %v448_v18, 0.0 }
 0x201   :  { %1034 = vst [vmem:[#allocation3 + $0x20] sm:$0x3] %v1022_v57  ;;  %1701 = vrot.lane.b32.xlu1 %v1673_v21, %s4375_s29  ;;  %1388 = vrot.lane.b32.xlu0 %v1363_v27, %s4377_s30  ;;  %v1263_v21 = vld [vmem:[#allocation2 + $0x62] sm:$0x3]  ;;  %v1221_v57 = vsel %vm483_vm1, %v1145_v13, %v4919_v43  ;;  %v1050_v13 = vld [vmem:[#allocation2 + $0x68] sm:$0x3] }
 0x202   :  { %v1222_v45 = vsel %vm586_vm2, %v1221_v57, %v4939_v39  ;;  %507 = vst.msk [vmem:[#allocation2 + $0xb8] sm:$0xff] %vm483_vm1, %v481_v22  ;;  %v1159_v39 = vld [vmem:[#allocation2 + $0x70] sm:$0x3] }
 0x203   :  { %v4995_v29 = vpop.permute.xlu1 %688  ;;  %v4997_v6 = vpop.permute.xlu0 %1273  ;;  %v1223_v27 = vsel %vm588_vm4, %v1222_v45, %v4953_v48  ;;  %v1023_v45 = vsel %vm592_vm5, %v4989_v26, %v4911_v5 }
 0x204   :  { %v452_v48 = vpop.f32.mrb[48].mxu0  ;;  %v1024_v5 = vsel %vm594_vm6, %v1023_v45, %v4957_v50 }
 0x205   :  { %1598 = vrot.lane.b32.xlu1 %v1567_v55, %s4379_s13  ;;  %1689 = vrot.lane.b32.xlu0 %v1670_v11, %s4376_s1  ;;  %v919_v55 = vsel %vm600_vm10, %v4879_v54, %v4959_v52  ;;  %v453_v42 = vadd.f32 %v4348_v49, %v452_v48  ;;  %v454_v54 = vpop.f32.mrb[49].mxu0  ;;  %v811_v52 = vsel %vm600_vm10, %v4863_v51, %v4892_v3  ;;  %v1565_v49 = vld [vmem:[#allocation2 + $0x6c] sm:$0x3] }
 0x206   :  { %v455_v2 = vpop.f32.mrb[50].mxu0  ;;  %v1025_v50 = vsel %vm596_vm7, %v1024_v5, %v4966_v61  ;;  %v1367_v54 = vld [vmem:[#allocation2 + $0x78] sm:$0x3] }
 0x207   :  { %v5001_v31 = vpop.permute.xlu1 %1285  ;;  %v5003_v32 = vpop.permute.xlu0 %1277  ;;  %v482_v0 = vmax.f32 %v453_v42, 0.0 }
 0x208   :  { %v456_v51 = vpop.f32.mrb[51].mxu0 }
 0x209   :  { %1705 = vrot.lane.b32.xlu1 %v1674_v59, %s4379_s13  ;;  %1693 = vrot.lane.b32.xlu0 %v1671_v34, %s4378_s12  ;;  %508 = vst.msk [vmem:[#allocation2 + $0xc0] sm:$0xff] %vm483_vm1, %v482_v0 }
 0x20b   :  { %v5007_v35 = vpop.permute.xlu1 %1182  ;;  %v889_v36 = vpop.permute.xlu0 %888 }
 0x20c   :  { %v920_v59 = vsel %vm602_vm9, %v919_v55, %v889_v36 }
 0x20d   :  { %1602 = vrot.lane.b32.xlu1 %v1568_v4, %s4380_s14  ;;  %1305 = vrot.lane.b32.xlu0 %v1262_v40, %s4385_s24  ;;  %v1458_v4 = vld [vmem:[#allocation2 + $0x68] sm:$0x3]  ;;  %v921_v36 = vsel %vm604_vm11, %v920_v59, %v4923_v23 }
 0x20f   :  { %v5011_v47 = vpop.permute.xlu1 %1289  ;;  %v5013_v30 = vpop.permute.xlu0 %574 }
 0x211   :  { %1709 = vrot.lane.b32.xlu1 %v1675_v41, %s4380_s14  ;;  %1004 = vrot.lane.b32.xlu0 %v955_v58, %s4384_s23  ;;  %v812_v41 = vsel %vm602_vm9, %v811_v52, %v4975_v37  ;;  %v1264_v52 = vld [vmem:[#allocation2 + $0x70] sm:$0x3] }
 0x212   :  { %v813_v3 = vsel %vm604_vm11, %v812_v41, %v4905_v12  ;;  %v1252_v12 = vld [vmem:[#allocation2 + $0x34] sm:$0x3] }
 0x213   :  { %v5026_v17 = vpop.permute.xlu1 %1186  ;;  %v1068_v19 = vpop.permute.xlu0 %1067 }
 0x214   :  { %v1117_v16 = vsel %vm590_vm3, %v1116_v14, %v1068_v19  ;;  %v1118_v14 = vsel %vm592_vm5, %v1068_v19, %v4929_v63  ;;  %v1267_v63 = vld [vmem:[#allocation2 + $0x76] sm:$0x3]  ;;  %v1158_v19 = vld [vmem:[#allocation2 + $0x6e] sm:$0x3] }
 0x215   :  { %v1133_v28 = vrot.slane %v1117_v16, 6  ;;  %1317 = vrot.lane.b32.xlu1 %v1265_v10, %s4386_s25  ;;  %1309 = vrot.lane.b32.xlu0 %v1263_v21, %s4383_s22  ;;  %v1119_v22 = vsel %vm594_vm6, %v1118_v14, %v4945_v44  ;;  %v1777_v14 = vld [vmem:[#allocation2 + $0x7c] sm:$0x3] }
 0x217   :  { %1141 = vst [vmem:[#allocation3 + $0x20] sm:$0xc] %v1133_v28  ;;  %v5042_v11 = vpop.permute.xlu1 %1293  ;;  %v5044_v43 = vpop.permute.xlu0 %1174  ;;  %v1328_v28 = vsel %vm483_vm1, %v1252_v12, %v4925_v24  ;;  %v1120_v24 = vsel %vm596_vm7, %v1119_v22, %v4951_v46  ;;  %v1875_v12 = vld [vmem:[#allocation2 + $0x92] sm:$0x3] }
 0x218   :  { %v1224_v34 = vsel %vm590_vm3, %v1223_v27, %v5044_v43  ;;  %v1329_v44 = vsel %vm586_vm2, %v1328_v28, %v4997_v6  ;;  %v1462_v6 = vld [vmem:[#allocation2 + $0x7c] sm:$0x3]  ;;  %v1978_v28 = vld [vmem:[#allocation2 + $0x82] sm:$0x3] }
 0x219   :  { %v1240_v40 = vrot.slane %v1224_v34, 4  ;;  %1214 = vrot.lane.b32.xlu1 %v1159_v39, %s4387_s26  ;;  %1483 = vrot.lane.b32.xlu0 %v1458_v4, %s4377_s30  ;;  %v1672_v39 = vld [vmem:[#allocation2 + $0x70] sm:$0x3] }
 0x21b   :  { %1248 = vst [vmem:[#allocation3 + $0x20] sm:$0x30] %v1240_v40  ;;  %v5056_v33 = vpop.permute.xlu1 %896  ;;  %v685_v53 = vpop.permute.xlu0 %684 }
 0x21c   :  { %v922_v58 = vsel %vm6144_vm12, %v921_v36, %v5056_v33  ;;  %v707_v8 = vsel %vm6142_vm13, %v4973_v9, %v685_v53  ;;  %v1569_v36 = vld [vmem:[#allocation2 + $0x80] sm:$0x3] }
 0x21d   :  { %v932_v7 = vrot.slane %v922_v58, 2  ;;  %1321 = vrot.lane.b32.xlu1 %v1266_v62, %s4387_s26  ;;  %1590 = vrot.lane.b32.xlu0 %v1565_v49, %s4377_s30  ;;  %v708_v9 = vsel %vm610_vm14, %v707_v8, %v4995_v29  ;;  %v1330_v29 = vsel %vm588_vm4, %v1329_v44, %v5003_v32  ;;  %v1871_v62 = vld [vmem:[#allocation2 + $0x7e] sm:$0x3]  ;;  %v1225_v49 = vsel %vm592_vm5, %v5044_v43, %v4937_v38  ;;  %v1776_v38 = vld [vmem:[#allocation2 + $0x7a] sm:$0x3] }
 0x21e   :  { %v1226_v51 = vsel %vm594_vm6, %v1225_v49, %v5007_v35  ;;  %v2085_v44 = vld [vmem:[#allocation2 + $0x86] sm:$0x3] }
 0x21f   :  { %940 = vst [vmem:[#allocation3 + $0x10] sm:$0xc0] %v932_v7  ;;  %v797_v23 = vpop.permute.xlu1 %796  ;;  %v789_v37 = vpop.permute.xlu0 %788  ;;  %v1227_v35 = vsel %vm596_vm7, %v1226_v51, %v5026_v17  ;;  %v1980_v49 = vld [vmem:[#allocation2 + $0x86] sm:$0x3]  ;;  %v957_v51 = vld [vmem:[#allocation2 + $0x68] sm:$0x3] }
 0x220   :  { %v814_v18 = vsel %vm6144_vm12, %v813_v3, %v789_v37  ;;  %v815_v48 = vsel %vm6142_vm13, %v789_v37, %v4987_v25 }
 0x221   :  { %v824_v16 = vrot.slane %v814_v18, 4  ;;  %1218 = vrot.lane.b32.xlu1 %v1160_v60, %s4388_s15  ;;  %1099 = vrot.lane.b32.xlu0 %v1050_v13, %s4384_s23  ;;  %v816_v41 = vsel %vm610_vm14, %v815_v48, %v797_v23  ;;  %v1676_v23 = vld [vmem:[#allocation2 + $0x84] sm:$0x3]  ;;  %v1780_v13 = vld [vmem:[#allocation2 + $0x8e] sm:$0x3] }
 0x222   :  { %v1781_v48 = vld [vmem:[#allocation2 + $0x90] sm:$0x3] }
 0x223   :  { %832 = vst [vmem:[#allocation3 + $0x10] sm:$0x30] %v824_v16  ;;  %v905_v10 = vpop.permute.xlu1 %904  ;;  %v693_v21 = vpop.permute.xlu0 %692 }
 0x224   :  { %v709_v57 = vsel %vm612_vm15, %v708_v9, %v693_v21  ;;  %v1778_v21 = vld [vmem:[#allocation2 + $0x7e] sm:$0x3] }
 0x225   :  { %v717_v27 = vrot.slane %v709_v57, 6  ;;  %1325 = vrot.lane.b32.xlu1 %v1267_v63, %s4388_s15  ;;  %1210 = vrot.lane.b32.xlu0 %v1158_v19, %s4386_s25  ;;  %v1982_v19 = vld [vmem:[#allocation2 + $0x96] sm:$0x3] }
 0x227   :  { %726 = vst.msk [vmem:[#allocation3 + $0x18] sm:$0xc] %vm6141_vm0, %v717_v27  ;;  %v5091_v55 = vpop.permute.xlu1 %1083  ;;  %v1282_v59 = vpop.permute.xlu0 %1281  ;;  %vm833_vm0 = vcmask 783364   ;;  %v1876_v27 = vld [vmem:[#allocation2 + $0x94] sm:$0x3] }
 0x228   :  { %v1121_v26 = vsel %vm598_vm8, %v1120_v24, %v5091_v55  ;;  %v1331_v34 = vsel %vm590_vm3, %v1330_v29, %v1282_v59  ;;  %v1332_v43 = vsel %vm592_vm5, %v1282_v59, %v5001_v31  ;;  %v2192_v29 = vld [vmem:[#allocation3 + $0x8] sm:$0xff] }
 0x229   :  { %v1134_v4 = vrot.slane %v1121_v26, 6  ;;  %v1347_v32 = vrot.slane %v1331_v34, 2  ;;  %1499 = vrot.lane.b32.xlu1 %v1462_v6, %s4381_s0  ;;  %1697 = vrot.lane.b32.xlu0 %v1672_v39, %s4377_s30  ;;  %v1333_v60 = vsel %vm594_vm6, %v1332_v43, %v5011_v47  ;;  %v1877_v6 = vld [vmem:[#allocation2 + $0x96] sm:$0x3]  ;;  %v1872_v39 = vld [vmem:[#allocation2 + $0x80] sm:$0x3] }
 0x22a   :  { %v1334_v17 = vsel %vm596_vm7, %v1333_v60, %v5042_v11  ;;  %v4221_v60 = vld [vmem:[%s6132_s3 + $0x98] sm:$0xff]  }
 0x22b   :  { %1142 = vst [vmem:[#allocation3 + $0x28] sm:$0xc] %v1134_v4  ;;  %1355 = vst [vmem:[#allocation3 + $0x20] sm:$0xc0] %v1347_v32  ;;  %v5102_v46 = vpop.permute.xlu1 %988  ;;  %v901_v40 = vpop.permute.xlu0 %900  ;;  %v2191_v4 = vld [vmem:[#allocation3] sm:$0xff] }
 0x22c   :  { %v1026_v42 = vsel %vm598_vm8, %v1025_v50, %v5102_v46  ;;  %v923_v58 = vsel %vm6142_vm13, %v5056_v33, %v901_v40  ;;  %vm6143_vm13 = vcmask 785414  }
 0x22d   :  { %1035 = vst [vmem:[#allocation3 + $0x28] sm:$0x3] %v1026_v42  ;;  %1404 = vrot.lane.b32.xlu1 %v1367_v54, %s4381_s0  ;;  %1313 = vrot.lane.b32.xlu0 %v1264_v52, %s4384_s23  ;;  %v924_v7 = vsel %vm610_vm14, %v923_v58, %v905_v10  ;;  %v1979_v42 = vld [vmem:[#allocation2 + $0x84] sm:$0x3] }
 0x22f   :  { %v5112_v53 = vpop.permute.xlu1 %1087  ;;  %v801_v61 = vpop.permute.xlu0 %800 }
 0x230   :  { %v817_v25 = vsel %vm612_vm15, %v816_v41, %v801_v61  ;;  %v1873_v41 = vld [vmem:[#allocation2 + $0x82] sm:$0x3] }
 0x231   :  { %v825_v0 = vrot.slane %v817_v25, 4  ;;  %1606 = vrot.lane.b32.xlu1 %v1569_v36, %s4381_s0  ;;  %1887 = vrot.lane.b32.xlu0 %v1871_v62, %s4374_s28  ;;  %v1782_v36 = vld [vmem:[#allocation2 + $0x92] sm:$0x3]  ;;  %v4218_v61 = vld [vmem:[%s6132_s3 + $0x80] sm:$0xff]  }
 0x232   :  { %v2195_v59 = vld [vmem:[#allocation3 + $0x20] sm:$0xff]  ;;  %v523_v62 = vld [vmem:[#allocation2 + $0x40] sm:$0x3] }
 0x233   :  { %834 = vst.msk [vmem:[#allocation3 + $0x18] sm:$0x30] %vm833_vm0, %v825_v0  ;;  %v5124_v2 = vpop.permute.xlu1 %992  ;;  %v909_v33 = vpop.permute.xlu0 %908  ;;  %v2207_v32 = vpack.c.bf16 %v2195_v59, %v2191_v4  ;;  %v4219_v0 = vld [vmem:[%s6132_s3 + $0x88] sm:$0xff]   ;;  %v4225_v4 = vld [vmem:[%s6132_s3 + $0xb8] sm:$0xff]  }
 0x234   :  { %v925_v3 = vsel %vm612_vm15, %v924_v7, %v909_v33 }
 0x235   :  { %v933_v37 = vrot.slane %v925_v3, 2  ;;  %1713 = vrot.lane.b32.xlu1 %v1676_v23, %s4381_s0  ;;  %1792 = vrot.lane.b32.xlu0 %v1776_v38, %s4374_s28  ;;  %v1779_v3 = vld [vmem:[#allocation2 + $0x8c] sm:$0x3]  ;;  %v4220_v23 = vld [vmem:[%s6132_s3 + $0x90] sm:$0xff]  }
 0x237   :  { %942 = vst.msk [vmem:[#allocation3 + $0x18] sm:$0xc0] %vm6143_vm13, %v933_v37  ;;  %v5135_v8 = vpop.permute.xlu1 %1190  ;;  %v5139_v18 = vpop.permute.xlu0 %1471  ;;  %v2089_v37 = vld [vmem:[#allocation2 + $0x9a] sm:$0x3]  ;;  %vm6145_vm13 = vcmask 48128  }
 0x238   :  { %v1228_v31 = vsel %vm598_vm8, %v1227_v35, %v5135_v8  ;;  %v2086_v35 = vld [vmem:[#allocation2 + $0x88] sm:$0x3] }
 0x239   :  { %v1241_v16 = vrot.slane %v1228_v31, 4  ;;  %1808 = vrot.lane.b32.xlu1 %v1780_v13, %s4375_s29  ;;  %1796 = vrot.lane.b32.xlu0 %v1777_v14, %s4376_s1  ;;  %v1983_v14 = vld [vmem:[#allocation2 + $0x98] sm:$0x3] }
 0x23b   :  { %1249 = vst [vmem:[#allocation3 + $0x28] sm:$0x30] %v1241_v16  ;;  %v5147_v10 = vpop.permute.xlu1 %1297  ;;  %v5151_v9 = vpop.permute.xlu0 %1376  ;;  %v2087_v16 = vld [vmem:[#allocation2 + $0x8a] sm:$0x3] }
 0x23c   :  { %v1335_v47 = vsel %vm598_vm8, %v1334_v17, %v5147_v10 }
 0x23d   :  { %v1348_v22 = vrot.slane %v1335_v47, 2  ;;  %1903 = vrot.lane.b32.xlu1 %v1875_v12, %s4375_s29  ;;  %1800 = vrot.lane.b32.xlu0 %v1778_v21, %s4378_s12  ;;  %v4222_v12 = vld [vmem:[%s6132_s3 + $0xa0] sm:$0xff]   ;;  %v2090_v21 = vld [vmem:[#allocation2 + $0x9c] sm:$0x3] }
 0x23f   :  { %1356 = vst [vmem:[#allocation3 + $0x28] sm:$0xc0] %v1348_v22  ;;  %v5157_v57 = vpop.permute.xlu1 %1301  ;;  %v5159_v63 = vpop.permute.xlu0 %1380  ;;  %v1874_v22 = vld [vmem:[#allocation2 + $0x90] sm:$0x3] }
 0x241   :  { %2010 = vrot.lane.b32.xlu1 %v1982_v19, %s4375_s29  ;;  %1994 = vrot.lane.b32.xlu0 %v1978_v28, %s4374_s28  ;;  %v4223_v19 = vld [vmem:[%s6132_s3 + $0xa8] sm:$0xff]  }
 0x243   :  { %v5163_v11 = vpop.permute.xlu1 %1392  ;;  %v5165_v45 = vpop.permute.xlu0 %1384 }
 0x245   :  { %1907 = vrot.lane.b32.xlu1 %v1876_v27, %s4379_s13  ;;  %2101 = vrot.lane.b32.xlu0 %v2085_v44, %s4374_s28  ;;  %v1984_v44 = vld [vmem:[#allocation2 + $0x9a] sm:$0x3] }
 0x246   :  { %v2196_v24 = vld [vmem:[#allocation3 + $0x28] sm:$0xff] }
 0x247   :  { %v5169_v5 = vpop.permute.xlu1 %1008  ;;  %v5171_v26 = vpop.permute.xlu0 %1578  ;;  %v2208_v34 = vpack.c.bf16 %v2196_v24, %v2192_v29  ;;  %v1981_v29 = vld [vmem:[#allocation2 + $0x94] sm:$0x3] }
 0x248   :  { %v4224_v24 = vld [vmem:[%s6132_s3 + $0xb0] sm:$0xff]  }
 0x249   :  { %1911 = vrot.lane.b32.xlu1 %v1877_v6, %s4380_s14  ;;  %1891 = vrot.lane.b32.xlu0 %v1872_v39, %s4376_s1  ;;  %v2091_v6 = vld [vmem:[#allocation2 + $0x9e] sm:$0x3]  ;;  %v2088_v39 = vld [vmem:[#allocation2 + $0x98] sm:$0x3] }
 0x24a   :  { %2501 = vmatprep.mubr.bf16.mxu1 %v2208_v34 }
 0x24b   :  { %2502 = vmatmul.mubr.bf16.vlgmr.msra.gmra.mrb[0].mxu1 %v2207_v32  ;;  %v5175_v50 = vpop.permute.xlu1 %1487  ;;  %v5177_v40 = vpop.permute.xlu0 %1685 }
 0x24c   :  { %2519 = vmatpush1.bf16.msra.mxu1 %v4218_v61  ;;  %v1359_v61 = vld [vmem:[#allocation2 + $0x50] sm:$0x3] }
 0x24d   :  { %1812 = vrot.lane.b32.xlu1 %v1781_v48, %s4379_s13  ;;  %1998 = vrot.lane.b32.xlu0 %v1979_v42, %s4376_s1  ;;  %v1878_v48 = vld [vmem:[#allocation2 + $0xa4] sm:$0x3] }
 0x24e   :  { %2520 = vmatprep.subr.bf16.mxu1 %v4373_v1 }
 0x24f   :  { %v5181_v54 = vpop.permute.xlu1 %1594  ;;  %v5183_v52 = vpop.permute.xlu0 %1475 }
 0x250   :  { %2521 = vmatpush1.bf16.msra.mxu1 %v4219_v0  ;;  %v1435_v0 = vsel %vm483_vm1, %v1359_v61, %v5151_v9  ;;  %v958_v61 = vld [vmem:[#allocation2 + $0x6a] sm:$0x3] }
 0x251   :  { %1816 = vrot.lane.b32.xlu1 %v1782_v36, %s4380_s14  ;;  %1895 = vrot.lane.b32.xlu0 %v1873_v41, %s4378_s12 }
 0x252   :  { %2522 = vmatprep.subr.bf16.mxu1 %v4373_v1 }
 0x253   :  { %v5190_v58 = vpop.permute.xlu1 %1491  ;;  %v5192_v25 = vpop.permute.xlu0 %1582 }
 0x254   :  { %2523 = vmatpush1.bf16.msra.mxu1 %v4220_v23 }
 0x255   :  { %578 = vrot.lane.b32.xlu1 %v523_v62, %s4387_s26  ;;  %2002 = vrot.lane.b32.xlu0 %v1980_v49, %s4378_s12  ;;  %v519_v49 = vld [vmem:[#allocation2 + $0x2c] sm:$0x3] }
 0x256   :  { %2524 = vmatprep.subr.bf16.mxu1 %v4373_v1 }
 0x257   :  { %v5200_v7 = vpop.permute.xlu1 %1495  ;;  %v5202_v33 = vpop.permute.xlu0 %1479 }
 0x258   :  { %2525 = vmatpush1.bf16.msra.mxu1 %v4221_v60 }
 0x259   :  { %1012 = vrot.lane.b32.xlu1 %v957_v51, %s4387_s26  ;;  %1804 = vrot.lane.b32.xlu0 %v1779_v3, %s4377_s30  ;;  %v1436_v3 = vsel %vm586_vm2, %v1435_v0, %v5159_v63  ;;  %v4227_v63 = vld [vmem:[%s6132_s3 + $0xc8] sm:$0xff]  }
 0x25a   :  { %2526 = vmatprep.subr.bf16.mxu1 %v4373_v1 }
 0x25b   :  { %v5210_v38 = vpop.permute.xlu1 %1396  ;;  %v5212_v43 = vpop.permute.xlu0 %1586 }
 0x25c   :  { %2527 = vmatpush1.bf16.msra.mxu1 %v4222_v12  ;;  %v1985_v12 = vld [vmem:[#allocation2 + $0xa8] sm:$0x3] }
 0x25d   :  { %2117 = vrot.lane.b32.xlu1 %v2089_v37, %s4375_s29  ;;  %2105 = vrot.lane.b32.xlu0 %v2086_v35, %s4376_s1  ;;  %v1437_v37 = vsel %vm588_vm4, %v1436_v3, %v5165_v45  ;;  %v1466_v3 = vld [vmem:[#allocation2 + $0x90] sm:$0x3] }
 0x25e   :  { %2528 = vmatprep.subr.bf16.mxu1 %v4373_v1 }
 0x25f   :  { %v5220_v31 = vpop.permute.xlu1 %1400  ;;  %v1195_v13 = vpop.permute.xlu0 %1194 }
 0x260   :  { %2529 = vmatpush1.bf16.msra.mxu1 %v4223_v19  ;;  %v1229_v32 = vsel %vm600_vm10, %v5135_v8, %v1195_v13  ;;  %v4226_v8 = vld [vmem:[%s6132_s3 + $0xc0] sm:$0xff]  }
 0x261   :  { %2014 = vrot.lane.b32.xlu1 %v1983_v14, %s4379_s13  ;;  %2109 = vrot.lane.b32.xlu0 %v2087_v16, %s4378_s12  ;;  %v1783_v13 = vld [vmem:[#allocation2 + $0xa0] sm:$0x3]  ;;  %v953_v14 = vld [vmem:[#allocation2 + $0x54] sm:$0x3]  ;;  %s4395_s12 = smov 24  }
 0x262   :  { %2530 = vmatprep.subr.bf16.mxu1 %v4373_v1 }
 0x263   :  { %v5228_v17 = vpop.permute.xlu1 %1103  ;;  %v5230_v47 = vpop.permute.xlu0 %1091 }
 0x264   :  { %2531 = vmatpush1.bf16.msra.mxu1 %v4224_v24  ;;  %v4229_v24 = vld [vmem:[%s6132_s3 + $0xd8] sm:$0xff]  }
 0x265   :  { %2121 = vrot.lane.b32.xlu1 %v2090_v21, %s4379_s13  ;;  %1899 = vrot.lane.b32.xlu0 %v1874_v22, %s4377_s30  ;;  %v520_v21 = vld [vmem:[#allocation2 + $0x2e] sm:$0x3]  ;;  %v4228_v22 = vld [vmem:[%s6132_s3 + $0xd0] sm:$0xff]  }
 0x266   :  { %2532 = vmatprep.subr.bf16.mxu1 %v4373_v1 }
 0x267   :  { %v5238_v28 = vpop.permute.xlu1 %1206  ;;  %v1199_v27 = vpop.permute.xlu0 %1198 }
 0x268   :  { %v1230_v42 = vsel %vm602_vm9, %v1229_v32, %v1199_v27  ;;  %2533 = vmatpush1.bf16.msra.mxu1 %v4225_v4  ;;  %v524_v4 = vld [vmem:[#allocation2 + $0x42] sm:$0x3]  ;;  %v1463_v32 = vld [vmem:[#allocation2 + $0x7e] sm:$0x3] }
 0x269   :  { %2018 = vrot.lane.b32.xlu1 %v1984_v44, %s4380_s14  ;;  %2006 = vrot.lane.b32.xlu0 %v1981_v29, %s4377_s30  ;;  %v2092_v44 = vld [vmem:[#allocation2 + $0xac] sm:$0x3]  ;;  %v954_v29 = vld [vmem:[#allocation2 + $0x56] sm:$0x3] }
 0x26a   :  { %2534 = vmatprep.subr.bf16.mxu1 %v4373_v1 }
 0x26b   :  { %v5246_v59 = vpop.permute.xlu1 %1107  ;;  %v5248_v34 = vpop.permute.xlu0 %1095 }
 0x26c   :  { %2535 = vmatpush1.bf16.msra.mxu1 %v4226_v8  ;;  %v1454_v8 = vld [vmem:[#allocation2 + $0x54] sm:$0x3] }
 0x26d   :  { %2125 = vrot.lane.b32.xlu1 %v2091_v6, %s4380_s14  ;;  %2113 = vrot.lane.b32.xlu0 %v2088_v39, %s4377_s30 }
 0x26e   :  { %2536 = vmatprep.subr.bf16.mxu1 %v4373_v1 }
 0x26f   :  { %v5259_v36 = vpop.permute.xlu1 %1111  ;;  %v1203_v41 = vpop.permute.xlu0 %1202 }
 0x270   :  { %v1231_v62 = vsel %vm604_vm11, %v1230_v42, %v1203_v41  ;;  %2537 = vmatpush1.bf16.msra.mxu1 %v4227_v63  ;;  %v1561_v63 = vld [vmem:[#allocation2 + $0x58] sm:$0x3] }
 0x271   :  { %v1232_v51 = vsel %vm6144_vm12, %v1231_v62, %v5238_v28  ;;  %1915 = vrot.lane.b32.xlu1 %v1878_v48, %s4381_s0  ;;  %562 = vrot.lane.b32.xlu0 %v519_v49, %s4385_s24  ;;  %v4230_v48 = vld [vmem:[%s6132_s3 + $0xe0] sm:$0xff]   ;;  %v1467_v62 = vld [vmem:[#allocation2 + $0x92] sm:$0x3]  ;;  %v4231_v49 = vld [vmem:[%s6132_s3 + $0xe8] sm:$0xff]  }
 0x272   :  { %v1242_v23 = vrot.slane %v1232_v51, 4  ;;  %2538 = vmatprep.subr.bf16.mxu1 %v4373_v1 }
 0x273   :  { %v5276_v35 = vpop.permute.xlu1 %1701  ;;  %v5278_v9 = vpop.permute.xlu0 %1388 }
 0x274   :  { %1250 = vst [vmem:[#allocation3 + $0x30] sm:$0x30] %v1242_v23  ;;  %v1438_v60 = vsel %vm590_vm3, %v1437_v37, %v5278_v9  ;;  %2539 = vmatpush1.bf16.msra.mxu1 %v4228_v22  ;;  %v1573_v23 = vld [vmem:[#allocation2 + $0x94] sm:$0x3]  ;;  %v1530_v37 = vsel %vm483_vm1, %v1454_v8, %v5139_v18  ;;  %v1677_v22 = vld [vmem:[#allocation2 + $0x86] sm:$0x3]  ;;  %v1637_v18 = vsel %vm483_vm1, %v1561_v63, %v5171_v26 }
 0x275   :  { %1450 = vst [vmem:[#allocation3 + $0x40] sm:$0x3] %v1438_v60  ;;  %1820 = vrot.lane.b32.xlu1 %v1783_v13, %s4381_s0  ;;  %996 = vrot.lane.b32.xlu0 %v953_v14, %s4385_s24  ;;  %v1122_v26 = vsel %vm600_vm10, %v5091_v55, %v5112_v53  ;;  %v1680_v53 = vld [vmem:[#allocation2 + $0x98] sm:$0x3] }
 0x276   :  { %2540 = vmatprep.subr.bf16.mxu1 %v4373_v1 }
 0x277   :  { %v5288_v45 = vpop.permute.xlu1 %1598  ;;  %v5290_v16 = vpop.permute.xlu0 %1689 }
 0x278   :  { %2541 = vmatpush1.bf16.msra.mxu1 %v4229_v24 }
 0x279   :  { %2022 = vrot.lane.b32.xlu1 %v1985_v12, %s4381_s0  ;;  %566 = vrot.lane.b32.xlu0 %v520_v21, %s4383_s22  ;;  %v1570_v21 = vld [vmem:[#allocation2 + $0x82] sm:$0x3] }
 0x27a   :  { %2542 = vmatprep.subr.bf16.mxu1 %v4373_v1 }
 0x27b   :  { %v5298_v19 = vpop.permute.xlu1 %1705  ;;  %v5300_v27 = vpop.permute.xlu0 %1693 }
 0x27c   :  { %2543 = vmatpush1.bf16.msra.mxu1 %v4230_v48  ;;  %v1681_v48 = vld [vmem:[#allocation2 + $0x9a] sm:$0x3] }
 0x27d   :  { %2129 = vrot.lane.b32.xlu1 %v2092_v44, %s4381_s0  ;;  %1000 = vrot.lane.b32.xlu0 %v954_v29, %s4383_s22 }
 0x27e   :  { %2544 = vmatprep.subr.bf16.mxu1 %v4373_v1  ;;  %v1531_v1 = vsel %vm586_vm2, %v1530_v37, %v5183_v52  ;;  %v1638_v52 = vsel %vm586_vm2, %v1637_v18, %v5192_v25  ;;  %v1123_v25 = vsel %vm602_vm9, %v1122_v26, %v5230_v47  ;;  %v2096_v26 = vld [vmem:[#allocation2 + $0xc0] sm:$0x3] }
 0x27f   :  { %v5308_v6 = vpop.permute.xlu1 %1602  ;;  %v5310_v39 = vpop.permute.xlu0 %1305  ;;  %v1532_v60 = vsel %vm588_vm4, %v1531_v1, %v5202_v33  ;;  %v1639_v33 = vsel %vm588_vm4, %v1638_v52, %v5212_v43  ;;  %v1882_v43 = vld [vmem:[#allocation2 + $0xb8] sm:$0x3] }
 0x280   :  { %2545 = vmatpush1.bf16.msra.mxu1 %v4231_v49 }
 0x281   :  { %582 = vrot.lane.b32.xlu1 %v524_v4, %s4388_s15  ;;  %1503 = vrot.lane.b32.xlu0 %v1463_v32, %s4382_s21  ;;  %v1574_v32 = vld [vmem:[#allocation2 + $0x96] sm:$0x3] }
 0x283   :  { %v5318_v42 = vpop.permute.xlu1 %1709  ;;  %v5320_v41 = vpop.permute.xlu0 %1004 }
 0x285   :  { %1016 = vrot.lane.b32.xlu1 %v958_v61, %s4388_s15  ;;  %1519 = vrot.lane.b32.xlu0 %v1467_v62, %s4386_s25  ;;  %v1124_v62 = vsel %vm604_vm11, %v1123_v25, %v5248_v34 }
 0x287   :  { %v5328_v0 = vpop.permute.xlu1 %1317  ;;  %v5330_v51 = vpop.permute.xlu0 %1309 }
 0x289   :  { %1515 = vrot.lane.b32.xlu1 %v1466_v3, %s4384_s23  ;;  %1622 = vrot.lane.b32.xlu0 %v1573_v23, %s4384_s23 }
 0x28b   :  { %v1215_v13 = vpop.permute.xlu1 %1214  ;;  %v1484_v14 = vpop.permute.xlu0 %1483 }
 0x28c   :  { %v1533_v12 = vsel %vm590_vm3, %v1532_v60, %v1484_v14  ;;  %v1534_v23 = vsel %vm592_vm5, %v1484_v14, %v5175_v50  ;;  %v1986_v14 = vld [vmem:[#allocation2 + $0xaa] sm:$0x3] }
 0x28d   :  { %v1549_v44 = vrot.slane %v1533_v12, 6  ;;  %1610 = vrot.lane.b32.xlu1 %v1570_v21, %s4382_s21  ;;  %1717 = vrot.lane.b32.xlu0 %v1677_v22, %s4382_s21  ;;  %v1535_v12 = vsel %vm594_vm6, %v1534_v23, %v5190_v58  ;;  %v1464_v23 = vld [vmem:[#allocation2 + $0x80] sm:$0x3] }
 0x28f   :  { %1557 = vst [vmem:[#allocation3 + $0x40] sm:$0xc] %v1549_v44  ;;  %v5349_v29 = vpop.permute.xlu1 %1321  ;;  %v1591_v24 = vpop.permute.xlu0 %1590 }
 0x290   :  { %v1640_v4 = vsel %vm590_vm3, %v1639_v33, %v1591_v24  ;;  %v1883_v33 = vld [vmem:[#allocation2 + $0xba] sm:$0x3] }
 0x291   :  { %v1656_v61 = vrot.slane %v1640_v4, 4  ;;  %1626 = vrot.lane.b32.xlu1 %v1574_v32, %s4386_s25  ;;  %1733 = vrot.lane.b32.xlu0 %v1681_v48, %s4386_s25  ;;  %v1990_v4 = vld [vmem:[#allocation2 + $0xbe] sm:$0x3]  ;;  %v1641_v32 = vsel %vm592_vm5, %v1591_v24, %v5181_v54 }
 0x292   :  { %v1642_v24 = vsel %vm594_vm6, %v1641_v32, %v5288_v45 }
 0x293   :  { %1664 = vst [vmem:[#allocation3 + $0x40] sm:$0x30] %v1656_v61  ;;  %v1219_v49 = vpop.permute.xlu1 %1218  ;;  %v1100_v8 = vpop.permute.xlu0 %1099 }
 0x294   :  { %v1125_v3 = vsel %vm6144_vm12, %v1124_v62, %v1100_v8  ;;  %v1126_v55 = vsel %vm6145_vm13, %v1100_v8, %v5228_v17  ;;  %v1668_v17 = vld [vmem:[#allocation2 + $0x5c] sm:$0x3]  ;;  %vm6146_vm12 = vcmask 781314  }
 0x295   :  { %v1127_v37 = vsel %vm610_vm14, %v1126_v55, %v5246_v59  ;;  %v1135_v47 = vrot.slane %v1125_v3, 6  ;;  %1729 = vrot.lane.b32.xlu1 %v1680_v53, %s4384_s23  ;;  %1931 = vrot.lane.b32.xlu0 %v1882_v43, %s4384_s23  ;;  %v1879_v59 = vld [vmem:[#allocation2 + $0xa6] sm:$0x3]  ;;  %v1744_v21 = vsel %vm483_vm1, %v1668_v17, %v5177_v40  ;;  %v2093_v53 = vld [vmem:[#allocation2 + $0xae] sm:$0x3] }
 0x296   :  { %v1128_v34 = vsel %vm612_vm15, %v1127_v37, %v5259_v36  ;;  %v1439_v36 = vsel %vm592_vm5, %v5278_v9, %v5163_v11  ;;  %v1745_v58 = vsel %vm586_vm2, %v1744_v21, %v5290_v16  ;;  %v1536_v11 = vsel %vm596_vm7, %v1535_v12, %v5200_v7  ;;  %v1575_v21 = vld [vmem:[#allocation2 + $0x98] sm:$0x3] }
 0x297   :  { %v1136_v1 = vrot.slane %v1128_v34, 6  ;;  %1143 = vst [vmem:[#allocation3 + $0x30] sm:$0xc] %v1135_v47  ;;  %v1326_v60 = vpop.permute.xlu1 %1325  ;;  %v1211_v63 = vpop.permute.xlu0 %1210  ;;  %v1746_v40 = vsel %vm588_vm4, %v1745_v58, %v5300_v27  ;;  %v1336_v27 = vsel %vm600_vm10, %v5147_v10, %v5157_v57  ;;  %v2097_v47 = vld [vmem:[#allocation2 + $0xc2] sm:$0x3] }
 0x298   :  { %v1233_v50 = vsel %vm6145_vm13, %v5238_v28, %v1211_v63 }
 0x299   :  { %1144 = vst.msk [vmem:[#allocation3 + $0x38] sm:$0xc] %vm6146_vm12, %v1136_v1  ;;  %v1234_v22 = vsel %vm610_vm14, %v1233_v50, %v1215_v13  ;;  %1919 = vrot.lane.b32.xlu1 %v1879_v59, %s4382_s21  ;;  %2026 = vrot.lane.b32.xlu0 %v1986_v14, %s4382_s21  ;;  %v1440_v13 = vsel %vm594_vm6, %v1439_v36, %v5210_v38  ;;  %vm6147_vm12 = vcmask 850944   ;;  %v1468_v50 = vld [vmem:[#allocation2 + $0x94] sm:$0x3] }
 0x29a   :  { %v1235_v28 = vsel %vm612_vm15, %v1234_v22, %v1219_v49  ;;  %v1337_v38 = vsel %vm602_vm9, %v1336_v27, %v5310_v39  ;;  %v1441_v57 = vsel %vm596_vm7, %v1440_v13, %v5220_v31  ;;  %v1678_v59 = vld [vmem:[#allocation2 + $0x88] sm:$0x3]  ;;  %v2094_v13 = vld [vmem:[#allocation2 + $0xb0] sm:$0x3] }
 0x29b   :  { %v1243_v18 = vrot.slane %v1235_v28, 4  ;;  %v5390_v44 = vpop.permute.xlu1 %1499  ;;  %v1698_v9 = vpop.permute.xlu0 %1697  ;;  %v1338_v61 = vsel %vm604_vm11, %v1337_v38, %v5330_v51  ;;  %v1989_v51 = vld [vmem:[#allocation2 + $0xbc] sm:$0x3]  ;;  %v1880_v36 = vld [vmem:[#allocation2 + $0xa8] sm:$0x3] }
 0x29c   :  { %v1537_v52 = vsel %vm598_vm8, %v1536_v11, %v5390_v44  ;;  %v1747_v16 = vsel %vm590_vm3, %v1746_v40, %v1698_v9  ;;  %v1748_v62 = vsel %vm592_vm5, %v1698_v9, %v5276_v35  ;;  %v1682_v28 = vld [vmem:[#allocation2 + $0x9c] sm:$0x3]  ;;  %v1987_v40 = vld [vmem:[#allocation2 + $0xac] sm:$0x3] }
 0x29d   :  { %1251 = vst.msk [vmem:[#allocation3 + $0x38] sm:$0x30] %vm833_vm0, %v1243_v18  ;;  %v1550_v7 = vrot.slane %v1537_v52, 6  ;;  %v1763_v48 = vrot.slane %v1747_v16, 2  ;;  %1935 = vrot.lane.b32.xlu1 %v1883_v33, %s4386_s25  ;;  %2042 = vrot.lane.b32.xlu0 %v1990_v4, %s4386_s25  ;;  %v1749_v35 = vsel %vm594_vm6, %v1748_v62, %v5298_v19  ;;  %v1884_v9 = vld [vmem:[#allocation2 + $0xbc] sm:$0x3] }
 0x29e   :  { %v1750_v34 = vsel %vm596_vm7, %v1749_v35, %v5318_v42  ;;  %v1991_v33 = vld [vmem:[#allocation2 + $0xc0] sm:$0x3]  ;;  %v1368_v4 = vld [vmem:[#allocation2 + $0x7a] sm:$0x3]  ;;  %v1683_v35 = vld [vmem:[#allocation2 + $0x9e] sm:$0x3] }
 0x29f   :  { %1558 = vst [vmem:[#allocation3 + $0x48] sm:$0xc] %v1550_v7  ;;  %1771 = vst [vmem:[#allocation3 + $0x40] sm:$0xc0] %v1763_v48  ;;  %v5411_v10 = vpop.permute.xlu1 %1404  ;;  %v1314_v54 = vpop.permute.xlu0 %1313  ;;  %v2098_v7 = vld [vmem:[#allocation2 + $0xc4] sm:$0x3] }
 0x2a0   :  { %v1442_v25 = vsel %vm598_vm8, %v1441_v57, %v5411_v10  ;;  %v1339_v39 = vsel %vm6147_vm12, %v1338_v61, %v1314_v54  ;;  %v1340_v43 = vsel %vm6145_vm13, %v1314_v54, %v5328_v0  ;;  %v1643_v0 = vsel %vm596_vm7, %v1642_v24, %v5308_v6  ;;  %v1372_v48 = vld [vmem:[#allocation2 + $0x8e] sm:$0x3]  ;;  %v1371_v61 = vld [vmem:[#allocation2 + $0x8c] sm:$0x3]  ;;  %v1469_v57 = vld [vmem:[#allocation2 + $0x96] sm:$0x3] }
 0x2a1   :  { %1451 = vst [vmem:[#allocation3 + $0x48] sm:$0x3] %v1442_v25  ;;  %v1341_v31 = vsel %vm610_vm14, %v1340_v43, %v5349_v29  ;;  %v1349_v49 = vrot.slane %v1339_v39, 2  ;;  %2038 = vrot.lane.b32.xlu1 %v1989_v51, %s4384_s23  ;;  %2145 = vrot.lane.b32.xlu0 %v2096_v26, %s4384_s23  ;;  %vm6148_vm12 = vcmask 785414   ;;  %v1775_v25 = vld [vmem:[#allocation2 + $0x78] sm:$0x3] }
 0x2a2   :  { %v1342_v45 = vsel %vm612_vm15, %v1341_v31, %v1326_v60  ;;  %v1571_v60 = vld [vmem:[#allocation2 + $0x84] sm:$0x3]  ;;  %v1465_v39 = vld [vmem:[#allocation2 + $0x82] sm:$0x3]  ;;  %v1576_v43 = vld [vmem:[#allocation2 + $0x9a] sm:$0x3] }
 0x2a3   :  { %v1350_v8 = vrot.slane %v1342_v45, 2  ;;  %1357 = vst [vmem:[#allocation3 + $0x30] sm:$0xc0] %v1349_v49  ;;  %v5429_v3 = vpop.permute.xlu1 %1606  ;;  %v5433_v55 = vpop.permute.xlu0 %1887 }
 0x2a4   :  { %v1644_v29 = vsel %vm598_vm8, %v1643_v0, %v5429_v3  ;;  %v1572_v0 = vld [vmem:[#allocation2 + $0x86] sm:$0x3] }
 0x2a5   :  { %1358 = vst.msk [vmem:[#allocation3 + $0x38] sm:$0xc0] %vm6148_vm12, %v1350_v8  ;;  %v1657_v37 = vrot.slane %v1644_v29, 4  ;;  %2133 = vrot.lane.b32.xlu1 %v2093_v53, %s4382_s21  ;;  %1507 = vrot.lane.b32.xlu0 %v1464_v23, %s4385_s24  ;;  %v1679_v23 = vld [vmem:[#allocation2 + $0x8a] sm:$0x3] }
 0x2a7   :  { %1665 = vst [vmem:[#allocation3 + $0x48] sm:$0x30] %v1657_v37  ;;  %v5442_v6 = vpop.permute.xlu1 %1713  ;;  %v1793_v19 = vpop.permute.xlu0 %1792  ;;  %v1787_v37 = vld [vmem:[#allocation2 + $0xb4] sm:$0x3] }
 0x2a8   :  { %v1751_v1 = vsel %vm598_vm8, %v1750_v34, %v5442_v6  ;;  %v1851_v51 = vsel %vm483_vm1, %v1775_v25, %v1793_v19  ;;  %v1870_v19 = vld [vmem:[#allocation2 + $0x7c] sm:$0x3] }
 0x2a9   :  { %v1764_v63 = vrot.slane %v1751_v1, 2  ;;  %2149 = vrot.lane.b32.xlu1 %v2097_v47, %s4386_s25  ;;  %1614 = vrot.lane.b32.xlu0 %v1571_v60, %s4385_s24  ;;  %v1784_v1 = vld [vmem:[#allocation2 + $0xa2] sm:$0x3]  ;;  %v1881_v60 = vld [vmem:[#allocation2 + $0xaa] sm:$0x3] }
 0x2ab   :  { %1772 = vst [vmem:[#allocation3 + $0x48] sm:$0xc0] %v1764_v63  ;;  %v5450_v17 = vpop.permute.xlu1 %1808  ;;  %v1797_v12 = vpop.permute.xlu0 %1796  ;;  %v1946_v63 = vsel %vm483_vm1, %v1870_v19, %v5433_v55 }
 0x2ac   :  { %v1852_v62 = vsel %vm586_vm2, %v1851_v51, %v1797_v12 }
 0x2ad   :  { %1523 = vrot.lane.b32.xlu1 %v1468_v50, %s4387_s26  ;;  %1721 = vrot.lane.b32.xlu0 %v1678_v59, %s4385_s24 }
 0x2af   :  { %v5454_v42 = vpop.permute.xlu1 %1903  ;;  %v1801_v14 = vpop.permute.xlu0 %1800 }
 0x2b0   :  { %v1853_v31 = vsel %vm588_vm4, %v1852_v62, %v1801_v14  ;;  %v1992_v62 = vld [vmem:[#allocation2 + $0xc2] sm:$0x3] }
 0x2b1   :  { %1630 = vrot.lane.b32.xlu1 %v1575_v21, %s4387_s26  ;;  %1923 = vrot.lane.b32.xlu0 %v1880_v36, %s4385_s24  ;;  %v1977_v21 = vld [vmem:[#allocation2 + $0x80] sm:$0x3] }
 0x2b3   :  { %v5458_v22 = vpop.permute.xlu1 %2010  ;;  %v5460_v58 = vpop.permute.xlu0 %1994 }
 0x2b5   :  { %1737 = vrot.lane.b32.xlu1 %v1682_v28, %s4387_s26  ;;  %2030 = vrot.lane.b32.xlu0 %v1987_v40, %s4385_s24  ;;  %v1788_v28 = vld [vmem:[#allocation2 + $0xb6] sm:$0x3]  ;;  %v1988_v40 = vld [vmem:[#allocation2 + $0xae] sm:$0x3] }
 0x2b7   :  { %v5464_v18 = vpop.permute.xlu1 %1907  ;;  %v5466_v11 = vpop.permute.xlu0 %2101 }
 0x2b9   :  { %1939 = vrot.lane.b32.xlu1 %v1884_v9, %s4387_s26  ;;  %2137 = vrot.lane.b32.xlu0 %v2094_v13, %s4385_s24  ;;  %v2053_v9 = vsel %vm483_vm1, %v1977_v21, %v5460_v58 }
 0x2bb   :  { %v5470_v52 = vpop.permute.xlu1 %1911  ;;  %v1892_v16 = vpop.permute.xlu0 %1891 }
 0x2bc   :  { %v1947_v12 = vsel %vm586_vm2, %v1946_v63, %v1892_v16  ;;  %v1373_v63 = vld [vmem:[#allocation2 + $0x90] sm:$0x3] }
 0x2bd   :  { %2046 = vrot.lane.b32.xlu1 %v1991_v33, %s4387_s26  ;;  %1408 = vrot.lane.b32.xlu0 %v1368_v4, %s4382_s21 }
 0x2bf   :  { %v5474_v27 = vpop.permute.xlu1 %1812  ;;  %v1999_v32 = vpop.permute.xlu0 %1998 }
 0x2c0   :  { %v2054_v13 = vsel %vm586_vm2, %v2053_v9, %v1999_v32  ;;  %v1786_v9 = vld [vmem:[#allocation2 + $0xa6] sm:$0x3] }
 0x2c1   :  { %2153 = vrot.lane.b32.xlu1 %v2098_v7, %s4387_s26  ;;  %1424 = vrot.lane.b32.xlu0 %v1372_v48, %s4386_s25  ;;  %v2084_v7 = vld [vmem:[#allocation2 + $0x84] sm:$0x3] }
 0x2c2   :  { %v2160_v58 = vsel %vm483_vm1, %v2084_v7, %v5466_v11  ;;  %vm6149_vm1 = vcmask 850944  }
 0x2c3   :  { %v5478_v38 = vpop.permute.xlu1 %1816  ;;  %v1896_v26 = vpop.permute.xlu0 %1895 }
 0x2c4   :  { %v1948_v50 = vsel %vm588_vm4, %v1947_v12, %v1896_v26  ;;  %v1885_v26 = vld [vmem:[#allocation2 + $0xbe] sm:$0x3] }
 0x2c5   :  { %1420 = vrot.lane.b32.xlu1 %v1371_v61, %s4384_s23  ;;  %1527 = vrot.lane.b32.xlu0 %v1469_v57, %s4388_s15  ;;  %v2095_v61 = vld [vmem:[#allocation2 + $0xb2] sm:$0x3] }
 0x2c7   :  { %v5482_v54 = vpop.permute.xlu1 %578  ;;  %v2003_v24 = vpop.permute.xlu0 %2002 }
 0x2c8   :  { %v2055_v16 = vsel %vm588_vm4, %v2054_v13, %v2003_v24 }
 0x2c9   :  { %1511 = vrot.lane.b32.xlu1 %v1465_v39, %s4383_s22  ;;  %1634 = vrot.lane.b32.xlu0 %v1576_v43, %s4388_s15 }
 0x2cb   :  { %v5489_v49 = vpop.permute.xlu1 %1012  ;;  %v1805_v45 = vpop.permute.xlu0 %1804 }
 0x2cc   :  { %v1854_v8 = vsel %vm590_vm3, %v1853_v31, %v1805_v45  ;;  %v1369_v31 = vld [vmem:[#allocation2 + $0x7c] sm:$0x3] }
 0x2cd   :  { %1866 = vst [vmem:[#allocation3 + $0x60] sm:$0x3] %v1854_v8  ;;  %1618 = vrot.lane.b32.xlu1 %v1572_v0, %s4383_s22  ;;  %1741 = vrot.lane.b32.xlu0 %v1683_v35, %s4388_s15 }
 0x2cf   :  { %v5494_v29 = vpop.permute.xlu1 %2117  ;;  %v2106_v53 = vpop.permute.xlu0 %2105 }
 0x2d0   :  { %v2161_v32 = vsel %vm586_vm2, %v2160_v58, %v2106_v53  ;;  %vm6150_vm2 = vmmov %vm6149_vm1 }
 0x2d1   :  { %1725 = vrot.lane.b32.xlu1 %v1679_v23, %s4383_s22  ;;  %1836 = vrot.lane.b32.xlu0 %v1787_v37, %s4384_s23  ;;  %v2099_v37 = vld [vmem:[#allocation2 + $0xc6] sm:$0x3]  ;;  %s4391_s23 = smov 12  }
 0x2d3   :  { %v5498_v47 = vpop.permute.xlu1 %2014  ;;  %v2110_v34 = vpop.permute.xlu0 %2109 }
 0x2d4   :  { %v2162_v24 = vsel %vm588_vm4, %v2161_v32, %v2110_v34  ;;  %vm6151_vm4 = vmmov %vm6145_vm13  ;;  %v1790_v32 = vld [vmem:[#allocation2 + $0xba] sm:$0x3] }
 0x2d5   :  { %1824 = vrot.lane.b32.xlu1 %v1784_v1, %s4382_s21  ;;  %1927 = vrot.lane.b32.xlu0 %v1881_v60, %s4383_s22  ;;  %vm6153_vm13 = vmmov %vm6151_vm4  ;;  %s4394_s21 = smov 117  }
 0x2d6   :  { %vm6154_vm12 = vmmov %vm6151_vm4 }
 0x2d7   :  { %v5506_v59 = vpop.permute.xlu1 %2121  ;;  %v1900_v14 = vpop.permute.xlu0 %1899 }
 0x2d8   :  { %v1949_v36 = vsel %vm590_vm3, %v1948_v50, %v1900_v14  ;;  %v1950_v57 = vsel %vm592_vm5, %v1900_v14, %v5454_v42  ;;  %v1855_v42 = vsel %vm592_vm5, %v1805_v45, %v5450_v17  ;;  %v1785_v17 = vld [vmem:[#allocation2 + $0xa4] sm:$0x3] }
 0x2d9   :  { %v1965_v55 = vrot.slane %v1949_v36, 6  ;;  %1840 = vrot.lane.b32.xlu1 %v1788_v28, %s4386_s25  ;;  %2034 = vrot.lane.b32.xlu0 %v1988_v40, %s4383_s22  ;;  %v1951_v51 = vsel %vm594_vm6, %v1950_v57, %v5464_v18  ;;  %v1856_v18 = vsel %vm594_vm6, %v1855_v42, %v5474_v27  ;;  %v1789_v40 = vld [vmem:[#allocation2 + $0xb8] sm:$0x3]  ;;  %s4393_s25 = smov 47  }
 0x2da   :  { %v1952_v35 = vsel %vm596_vm7, %v1951_v51, %v5470_v52  ;;  %v1857_v52 = vsel %vm596_vm7, %v1856_v18, %v5478_v38  ;;  %v601_v38 = vsel %vm600_vm10, %v4836_v56, %v4913_v15  ;;  %v1027_v15 = vsel %vm600_vm10, %v5102_v46, %v5124_v2  ;;  %v2200_v51 = vld [vmem:[#allocation3 + $0x48] sm:$0xff] }
 0x2db   :  { %1973 = vst [vmem:[#allocation3 + $0x60] sm:$0xc] %v1965_v55  ;;  %v2019_v33 = vpop.permute.xlu1 %2018  ;;  %v2007_v4 = vpop.permute.xlu0 %2006  ;;  %v609_v46 = vsel %vm6151_vm4, %v4917_v20, %v5013_v30 }
 0x2dc   :  { %v2056_v48 = vsel %vm590_vm3, %v2055_v16, %v2007_v4  ;;  %v2057_v45 = vsel %vm592_vm5, %v2007_v4, %v5458_v22  ;;  %v1370_v22 = vld [vmem:[#allocation2 + $0x7e] sm:$0x3]  ;;  %v611_v2 = vsel %vm610_vm14, %v609_v46, %v5482_v54 }
 0x2dd   :  { %v2072_v25 = vrot.slane %v2056_v48, 4  ;;  %1943 = vrot.lane.b32.xlu1 %v1885_v26, %s4388_s15  ;;  %2141 = vrot.lane.b32.xlu0 %v2095_v61, %s4383_s22  ;;  %v2058_v1 = vsel %vm594_vm6, %v2057_v45, %v5498_v47  ;;  %v1374_v48 = vld [vmem:[#allocation2 + $0x92] sm:$0x3] }
 0x2de   :  { %v2059_v14 = vsel %vm596_vm7, %v2058_v1, %v2019_v33 }
 0x2df   :  { %2080 = vst [vmem:[#allocation3 + $0x60] sm:$0x30] %v2072_v25  ;;  %v2126_v39 = vpop.permute.xlu1 %2125  ;;  %v2114_v43 = vpop.permute.xlu0 %2113 }
 0x2e0   :  { %v2163_v11 = vsel %vm590_vm3, %v2162_v24, %v2114_v43  ;;  %v2164_v12 = vsel %vm592_vm5, %v2114_v43, %v5494_v29  ;;  %vm617_vm5 = vcmask 779264  }
 0x2e1   :  { %v2179_v8 = vrot.slane %v2163_v11, 2  ;;  %2050 = vrot.lane.b32.xlu1 %v1992_v62, %s4388_s15  ;;  %1412 = vrot.lane.b32.xlu0 %v1369_v31, %s4385_s24  ;;  %v2165_v36 = vsel %vm594_vm6, %v2164_v12, %v5506_v59  ;;  %vm6152_vm6 = vmmov %vm6151_vm4 }
 0x2e2   :  { %v2166_v16 = vsel %vm596_vm7, %v2165_v36, %v2126_v39 }
 0x2e3   :  { %2187 = vst [vmem:[#allocation3 + $0x60] sm:$0xc0] %v2179_v8  ;;  %v5531_v0 = vpop.permute.xlu1 %1915  ;;  %v563_v53 = vpop.permute.xlu0 %562  ;;  %v2199_v8 = vld [vmem:[#allocation3 + $0x40] sm:$0xff] }
 0x2e4   :  { %v1953_v23 = vsel %vm598_vm8, %v1952_v35, %v5531_v0  ;;  %v603_v50 = vsel %vm602_vm9, %v601_v38, %v563_v53 }
 0x2e5   :  { %v1966_v34 = vrot.slane %v1953_v23, 6  ;;  %2157 = vrot.lane.b32.xlu1 %v2099_v37, %s4388_s15  ;;  %1828 = vrot.lane.b32.xlu0 %v1785_v17, %s4385_s24  ;;  %s4392_s24 = smov 105  }
 0x2e7   :  { %1974 = vst [vmem:[#allocation3 + $0x68] sm:$0xc] %v1966_v34  ;;  %v5543_v19 = vpop.permute.xlu1 %1820  ;;  %v997_v27 = vpop.permute.xlu0 %996 }
 0x2e8   :  { %v1858_v60 = vsel %vm598_vm8, %v1857_v52, %v5543_v19  ;;  %v1028_v59 = vsel %vm602_vm9, %v1027_v15, %v997_v27 }
 0x2e9   :  { %1867 = vst [vmem:[#allocation3 + $0x68] sm:$0x3] %v1858_v60  ;;  %1428 = vrot.lane.b32.xlu1 %v1373_v63, %s4387_s26  ;;  %1416 = vrot.lane.b32.xlu0 %v1370_v22, %s4383_s22 }
 0x2ea   :  { %v2203_v43 = vld [vmem:[#allocation3 + $0x60] sm:$0xff] }
 0x2eb   :  { %v5559_v47 = vpop.permute.xlu1 %2022  ;;  %v567_v21 = vpop.permute.xlu0 %566  ;;  %v2211_v35 = vpack.c.bf16 %v2203_v43, %v2199_v8 }
 0x2ec   :  { %v2060_v29 = vsel %vm598_vm8, %v2059_v14, %v5559_v47  ;;  %v605_v28 = vsel %vm604_vm11, %v603_v50, %v567_v21 }
 0x2ed   :  { %v2073_v55 = vrot.slane %v2060_v29, 4  ;;  %v607_v56 = vsel %vm6149_vm1, %v605_v28, %v4917_v20  ;;  %1844 = vrot.lane.b32.xlu1 %v1789_v40, %s4387_s26  ;;  %1832 = vrot.lane.b32.xlu0 %v1786_v9, %s4383_s22  ;;  %v1031_v20 = vsel %vm6152_vm6, %v5320_v41, %v5169_v5  ;;  %vm6155_vm1 = vcmask 781314   ;;  %vm6156_vm6 = vmmov %vm6150_vm2  ;;  %s4390_s22 = smov 35  }
 0x2ee   :  { %616 = vst [vmem:[#allocation3 + $0x10] sm:$0x3] %v607_v56  ;;  %v1032_v30 = vsel %vm610_vm14, %v1031_v20, %v5489_v49 }
 0x2ef   :  { %2081 = vst [vmem:[#allocation3 + $0x68] sm:$0x30] %v2073_v55  ;;  %v5575_v13 = vpop.permute.xlu1 %2129  ;;  %v1001_v33 = vpop.permute.xlu0 %1000 }
 0x2f0   :  { %v2167_v4 = vsel %vm598_vm8, %v2166_v16, %v5575_v13  ;;  %v1029_v7 = vsel %vm604_vm11, %v1028_v59, %v1001_v33  ;;  %vm2462_vm8 = vcmask 785408  }
 0x2f1   :  { %v2180_v26 = vrot.slane %v2167_v4, 2  ;;  %v1030_v61 = vsel %vm6150_vm2, %v1029_v7, %v5320_v41  ;;  %1432 = vrot.lane.b32.xlu1 %v1374_v48, %s4388_s15 }
 0x2f2   :  { %1036 = vst [vmem:[#allocation3 + $0x30] sm:$0x3] %v1030_v61 }
 0x2f3   :  { %2188 = vst [vmem:[#allocation3 + $0x68] sm:$0xc0] %v2180_v26  ;;  %v583_v58 = vpop.permute.xlu1 %582  ;;  %v5589_v57 = vpop.permute.xlu0 %1503 }
 0x2f4   :  { %v613_v25 = vsel %vm612_vm15, %v611_v2, %v583_v58 }
 0x2f5   :  { %618 = vst.msk [vmem:[#allocation3 + $0x18] sm:$0x3] %vm617_vm5, %v613_v25  ;;  %1848 = vrot.lane.b32.xlu1 %v1790_v32, %s4388_s15  ;;  %v2193_v45 = vld [vmem:[#allocation3 + $0x10] sm:$0xff] }
 0x2f7   :  { %v1017_v24 = vpop.permute.xlu1 %1016  ;;  %v1520_v54 = vpop.permute.xlu0 %1519 }
 0x2f8   :  { %v1033_v39 = vsel %vm612_vm15, %v1032_v30, %v1017_v24 }
 0x2f9   :  { %1037 = vst.msk [vmem:[#allocation3 + $0x38] sm:$0x3] %vm617_vm5, %v1033_v39  ;;  %v2197_v23 = vld [vmem:[#allocation3 + $0x30] sm:$0xff]  ;;  %v1538_v39 = vsel %vm600_vm10, %v5390_v44, %v5589_v57 }
 0x2fa   :  { %v2204_v11 = vld [vmem:[#allocation3 + $0x68] sm:$0xff]  ;;  %v2209_v34 = vpack.c.bf16 %v2197_v23, %v2193_v45 }
 0x2fb   :  { %v5601_v62 = vpop.permute.xlu1 %1515  ;;  %v5603_v31 = vpop.permute.xlu0 %1622  ;;  %v2212_v42 = vpack.c.bf16 %v2204_v11, %v2200_v51 }
 0x2fc   :  { %v2194_v49 = vld [vmem:[#allocation3 + $0x18] sm:$0xff]  ;;  %v1542_v25 = vsel %vm6153_vm13, %v5601_v62, %v1520_v54  ;;  %vm6157_vm13 = vcmask 785414  }
 0x2fd   :  { %2509 = vmatprep.mubr.bf16.mxu1 %v2212_v42 }
 0x2fe   :  { %2510 = vmatmul.mubr.bf16.gmra.mrb[4].mxu1 %v2211_v35 }
 0x2ff   :  { %v1611_v5 = vpop.permute.xlu1 %1610  ;;  %v5605_v41 = vpop.permute.xlu0 %1717 }
 0x300   :  { %v2198_v53 = vld [vmem:[#allocation3 + $0x38] sm:$0xff]  ;;  %v1645_v44 = vsel %vm600_vm10, %v5429_v3, %v1611_v5  ;;  %v1752_v5 = vsel %vm600_vm10, %v5442_v6, %v5605_v41 }
 0x301   :  { %v2210_v18 = vpack.c.bf16 %v2198_v53, %v2194_v49 }
 0x303   :  { %v1627_v37 = vpop.permute.xlu1 %1626  ;;  %v1734_v17 = vpop.permute.xlu0 %1733  ;;  %3913 = vmatprep.mubr.msk.bf16.mxu1 %vm2462_vm8, %v2210_v18 }
 0x304   :  { %v1649_v51 = vsel %vm6154_vm12, %v5603_v31, %v1627_v37  ;;  %vm6158_vm12 = vmmov %vm6150_vm2 }
 0x306   :  { %2551 = vmatmul.mubr.bf16.vlgmr.msra.gmra.mrb[8].mxu1 %v2209_v34 }
 0x307   :  { %v5608_v52 = vpop.permute.xlu1 %1729  ;;  %v5610_v27 = vpop.permute.xlu0 %1931 }
 0x308   :  { %v1756_v23 = vsel %vm6151_vm4, %v5608_v52, %v1734_v17 }
 0x30b   :  { %v5612_v1 = vpop.permute.xlu1 %1919  ;;  %v5614_v60 = vpop.permute.xlu0 %2026 }
 0x30c   :  { %v1954_v6 = vsel %vm600_vm10, %v5531_v0, %v5612_v1 }
 0x30f   :  { %v5616_v63 = vpop.permute.xlu1 %1935  ;;  %v5618_v22 = vpop.permute.xlu0 %2042 }
 0x313   :  { %v5620_v12 = vpop.permute.xlu1 %2038  ;;  %v5622_v38 = vpop.permute.xlu0 %2145 }
 0x317   :  { %v5624_v50 = vpop.permute.xlu1 %2133  ;;  %v1508_v14 = vpop.permute.xlu0 %1507 }
 0x318   :  { %v1539_v11 = vsel %vm602_vm9, %v1538_v39, %v1508_v14 }
 0x31b   :  { %v5626_v21 = vpop.permute.xlu1 %2149  ;;  %v1615_v36 = vpop.permute.xlu0 %1614 }
 0x31c   :  { %v1646_v37 = vsel %vm602_vm9, %v1645_v44, %v1615_v36 }
 0x31e   :  { %v4029_v29 = vpop.f32.mrb[0].mxu1 }
 0x31f   :  { %v4030_v28 = vpop.f32.mrb[1].mxu1  ;;  %v1524_v40 = vpop.permute.xlu1 %1523 }
 0x320   :  { %v5628_v9 = vadd.f32 %v4030_v28, %v4029_v29  ;;  %v1722_v55 = vpop.permute.xlu0 %1721  ;;  %v4032_v56 = vpop.f32.mrb[2].mxu1  ;;  %v1543_v20 = vsel %vm610_vm14, %v1542_v25, %v1524_v40 }
 0x321   :  { %v4033_v15 = vpop.f32.mrb[3].mxu1  ;;  %v1753_v28 = vsel %vm602_vm9, %v1752_v5, %v1722_v55 }
 0x322   :  { %v5630_v59 = vadd.f32 %v4033_v15, %v4032_v56 }
 0x323   :  { %v1631_v16 = vpop.permute.xlu1 %1630 }
 0x324   :  { %v1924_v33 = vpop.permute.xlu0 %1923  ;;  %v1650_v54 = vsel %vm610_vm14, %v1649_v51, %v1631_v16  ;;  %v2168_v51 = vsel %vm600_vm10, %v5575_v13, %v5624_v50 }
 0x327   :  { %v1738_v4 = vpop.permute.xlu1 %1737 }
 0x328   :  { %v2031_v7 = vpop.permute.xlu0 %2030  ;;  %v1757_v34 = vsel %vm610_vm14, %v1756_v23, %v1738_v4  ;;  %v1955_v4 = vsel %vm602_vm9, %v1954_v6, %v1924_v33 }
 0x32b   :  { %v5632_v48 = vpop.permute.xlu1 %1939 }
 0x32c   :  { %v5634_v26 = vpop.permute.xlu0 %2137 }
 0x32f   :  { %v5636_v61 = vpop.permute.xlu1 %2046 }
 0x330   :  { %v5638_v46 = vpop.permute.xlu0 %1408 }
 0x331   :  { %v1443_v23 = vsel %vm600_vm10, %v5411_v10, %v5638_v46 }
 0x333   :  { %v5640_v2 = vpop.permute.xlu1 %2153 }
 0x334   :  { %v5642_v58 = vpop.permute.xlu0 %1424 }
 0x337   :  { %v5646_v32 = vpop.permute.xlu1 %1420 }
 0x338   :  { %v1528_v30 = vpop.permute.xlu0 %1527 }
 0x339   :  { %v1544_v24 = vsel %vm612_vm15, %v1543_v20, %v1528_v30  ;;  %v2061_v30 = vsel %vm600_vm10, %v5559_v47, %v5614_v60 }
 0x33a   :  { %v1552_v43 = vrot.slane %v1544_v24, 6  ;;  %v2062_v39 = vsel %vm602_vm9, %v2061_v30, %v2031_v7 }
 0x33b   :  { %v1512_v42 = vpop.permute.xlu1 %1511 }
 0x33c   :  { %1560 = vst.msk [vmem:[#allocation3 + $0x58] sm:$0xc] %vm6155_vm1, %v1552_v43  ;;  %v1540_v8 = vsel %vm604_vm11, %v1539_v11, %v1512_v42  ;;  %v1635_v35 = vpop.permute.xlu0 %1634  ;;  %vm6159_vm1 = vmmov %vm6150_vm2  ;;  %v2169_v11 = vsel %vm602_vm9, %v2168_v51, %v5634_v26 }
 0x33d   :  { %v1541_v49 = vsel %vm6150_vm2, %v1540_v8, %v5601_v62  ;;  %v1651_v53 = vsel %vm612_vm15, %v1650_v54, %v1635_v35  ;;  %vm6160_vm2 = vmmov %vm6151_vm4 }
 0x33e   :  { %v1551_v57 = vrot.slane %v1541_v49, 6  ;;  %v1659_v18 = vrot.slane %v1651_v53, 4  ;;  %v1958_v1 = vsel %vm6160_vm2, %v5610_v27, %v5616_v63  ;;  %vm6161_vm4 = vmmov %vm6159_vm1 }
 0x33f   :  { %v1619_v45 = vpop.permute.xlu1 %1618  ;;  %v1959_v47 = vsel %vm610_vm14, %v1958_v1, %v5632_v48 }
 0x340   :  { %1559 = vst [vmem:[#allocation3 + $0x50] sm:$0xc] %v1551_v57  ;;  %1667 = vst.msk [vmem:[#allocation3 + $0x58] sm:$0x30] %vm833_vm0, %v1659_v18  ;;  %v1647_v62 = vsel %vm604_vm11, %v1646_v37, %v1619_v45  ;;  %v1742_v14 = vpop.permute.xlu0 %1741 }
 0x341   :  { %v1648_v29 = vsel %vm6156_vm6, %v1647_v62, %v5603_v31  ;;  %v1758_v3 = vsel %vm612_vm15, %v1757_v34, %v1742_v14  ;;  %vm6162_vm6 = vmmov %vm6160_vm2 }
 0x342   :  { %v1658_v17 = vrot.slane %v1648_v29, 4  ;;  %v1766_v36 = vrot.slane %v1758_v3, 2  ;;  %v2065_v8 = vsel %vm6162_vm6, %v5620_v12, %v5618_v22  ;;  %vm6168_vm6 = vmmov %vm6161_vm4 }
 0x343   :  { %v1726_v40 = vpop.permute.xlu1 %1725  ;;  %v2066_v50 = vsel %vm610_vm14, %v2065_v8, %v5636_v61 }
 0x344   :  { %1666 = vst [vmem:[#allocation3 + $0x50] sm:$0x30] %v1658_v17  ;;  %1774 = vst.msk [vmem:[#allocation3 + $0x58] sm:$0xc0] %vm6157_vm13, %v1766_v36  ;;  %v1754_v56 = vsel %vm604_vm11, %v1753_v28, %v1726_v40  ;;  %v5679_v15 = vpop.permute.xlu0 %1836 }
 0x345   :  { %v1755_v31 = vsel %vm6158_vm12, %v1754_v56, %v5608_v52  ;;  %vm6163_vm13 = vmmov %vm6159_vm1  ;;  %vm6164_vm12 = vcmask 781314  }
 0x346   :  { %v1765_v16 = vrot.slane %v1755_v31, 2 }
 0x347   :  { %v1825_v41 = vpop.permute.xlu1 %1824 }
 0x348   :  { %1773 = vst [vmem:[#allocation3 + $0x50] sm:$0xc0] %v1765_v16  ;;  %v1928_v55 = vpop.permute.xlu0 %1927  ;;  %v1859_v34 = vsel %vm600_vm10, %v5543_v19, %v1825_v41  ;;  %vm2571_vm10 = vcmask 285696  }
 0x349   :  { %v1956_v25 = vsel %vm604_vm11, %v1955_v4, %v1928_v55 }
 0x34a   :  { %v1957_v20 = vsel %vm6159_vm1, %v1956_v25, %v5610_v27  ;;  %vm6165_vm1 = vmmov %vm6160_vm2  ;;  %vm6166_vm2 = vcmask 785414  }
 0x34b   :  { %v1967_v52 = vrot.slane %v1957_v20, 6  ;;  %v1841_v24 = vpop.permute.xlu1 %1840  ;;  %v2172_v44 = vsel %vm6165_vm1, %v5622_v38, %v5626_v21 }
 0x34c   :  { %v2035_v43 = vpop.permute.xlu0 %2034  ;;  %v2173_v22 = vsel %vm610_vm14, %v2172_v44, %v5640_v2 }
 0x34d   :  { %1975 = vst [vmem:[#allocation3 + $0x70] sm:$0xc] %v1967_v52  ;;  %v2063_v0 = vsel %vm604_vm11, %v2062_v39, %v2035_v43  ;;  %v3882_v52 = vld [vmem:[%s6133_s4] ss:$0 sm:$0xff]  ;;  %s4389_s4 = smov 70  }
 0x34e   :  { %v2064_v33 = vsel %vm6161_vm4, %v2063_v0, %v5620_v12  ;;  %v2507_v1 = vadd.f32 %v5630_v59, %v3882_v52 }
 0x34f   :  { %v2074_v60 = vrot.slane %v2064_v33, 4  ;;  %v1944_v7 = vpop.permute.xlu1 %1943 }
 0x350   :  { %v1960_v42 = vsel %vm612_vm15, %v1959_v47, %v1944_v7  ;;  %v2142_v54 = vpop.permute.xlu0 %2141 }
 0x351   :  { %2082 = vst [vmem:[#allocation3 + $0x70] sm:$0x30] %v2074_v60  ;;  %v1968_v27 = vrot.slane %v1960_v42, 6  ;;  %v2170_v63 = vsel %vm604_vm11, %v2169_v11, %v2142_v54 }
 0x352   :  { %v2171_v13 = vsel %vm6163_vm13, %v2170_v63, %v5622_v38  ;;  %vm2629_vm13 = vcmask 195584  }
 0x353   :  { %1976 = vst.msk [vmem:[#allocation3 + $0x78] sm:$0xc] %vm6164_vm12, %v1968_v27  ;;  %v2181_v48 = vrot.slane %v2171_v13, 2  ;;  %v2051_v26 = vpop.permute.xlu1 %2050  ;;  %vm2695_vm12 = vcmask 478210  }
 0x354   :  { %v2067_v35 = vsel %vm612_vm15, %v2066_v50, %v2051_v26  ;;  %v1413_v49 = vpop.permute.xlu0 %1412 }
 0x355   :  { %2189 = vst [vmem:[#allocation3 + $0x70] sm:$0xc0] %v2181_v48  ;;  %v2075_v53 = vrot.slane %v2067_v35, 4  ;;  %v1444_v45 = vsel %vm602_vm9, %v1443_v23, %v1413_v49 }
 0x357   :  { %2083 = vst.msk [vmem:[#allocation3 + $0x78] sm:$0x30] %vm833_vm0, %v2075_v53  ;;  %v2158_v12 = vpop.permute.xlu1 %2157  ;;  %vm6167_vm0 = vmmov %vm6165_vm1  ;;  %vm2757_vm1 = vcmask 480260  }
 0x358   :  { %v2174_v61 = vsel %vm612_vm15, %v2173_v22, %v2158_v12  ;;  %v1829_v57 = vpop.permute.xlu0 %1828  ;;  %v1447_v46 = vsel %vm6167_vm0, %v5646_v32, %v5642_v58 }
 0x359   :  { %v2182_v18 = vrot.slane %v2174_v61, 2  ;;  %v1860_v14 = vsel %vm602_vm9, %v1859_v34, %v1829_v57  ;;  %vm6169_vm9 = vmmov %vm6167_vm0  ;;  %vm4397_vm0 = vmmov 0  }
 0x35a   :  { %v1863_v36 = vsel %vm6169_vm9, %v5679_v15, %v1841_v24  ;;  %v2504_v24 = vadd.f32 %v5628_v9, %v3882_v52  ;;  %vm2993_vm9 = vcmask 482304  }
 0x35b   :  { %2190 = vst.msk [vmem:[#allocation3 + $0x78] sm:$0xc0] %vm6166_vm2, %v2182_v18  ;;  %v1429_v37 = vpop.permute.xlu1 %1428  ;;  %vm2819_vm2 = vcmask 482310  }
 0x35c   :  { %v1417_v38 = vpop.permute.xlu0 %1416  ;;  %v1448_v5 = vsel %vm610_vm14, %v1447_v46, %v1429_v37  ;;  %v4236_v46 = vld [vmem:[%s6134_s5 + $0x50] sm:$0xff]  }
 0x35d   :  { %v1445_v21 = vsel %vm604_vm11, %v1444_v45, %v1417_v38  ;;  %v4232_v45 = vld [vmem:[%s6134_s5 + $0x40] sm:$0xff]  }
 0x35e   :  { %v1446_v2 = vsel %vm6161_vm4, %v1445_v21, %v5646_v32  ;;  %v4233_v38 = vld [vmem:[%s6134_s5] sm:$0xff]   ;;  %v4234_v21 = vld [vmem:[%s6134_s5 + $0x48] sm:$0xff]   ;;  %4041 = vmatprep.subr.bf16.mxu1 %v4232_v45  ;;  %vm2997_vm4 = vcmask 1044480  }
 0x35f   :  { %1452 = vst [vmem:[#allocation3 + $0x50] sm:$0x3] %v1446_v2  ;;  %v1845_v62 = vpop.permute.xlu1 %1844  ;;  %4042 = vmatpush3.bf16.msra.mxu1 %v4233_v38 }
 0x360   :  { %v1833_v29 = vpop.permute.xlu0 %1832  ;;  %v1864_v28 = vsel %vm610_vm14, %v1863_v36, %v1845_v62  ;;  %4043 = vmatprep.subr.bf16.mxu1 %v4234_v21  ;;  %vm2620_vm14 = vcmask 859136  }
 0x361   :  { %v1861_v10 = vsel %vm604_vm11, %v1860_v14, %v1833_v29  ;;  %vm2618_vm11 = vcmask 572416  }
 0x362   :  { %v1862_v3 = vsel %vm6168_vm6, %v1861_v10, %v5679_v15  ;;  %v4235_v10 = vld [vmem:[%s6134_s5 + $0x8] sm:$0xff]   ;;  %vm2998_vm6 = vcmask 1045504  }
 0x363   :  { %1868 = vst [vmem:[#allocation3 + $0x70] sm:$0x3] %v1862_v3  ;;  %v1433_v17 = vpop.permute.xlu1 %1432  ;;  %4044 = vmatpush3.bf16.msra.mxu1 %v4235_v10 }
 0x364   :  { %v1449_v19 = vsel %vm612_vm15, %v1448_v5, %v1433_v17  ;;  %4045 = vmatprep.subr.bf16.mxu1 %v4236_v46 }
 0x365   :  { %1453 = vst.msk [vmem:[#allocation3 + $0x58] sm:$0x3] %vm617_vm5, %v1449_v19  ;;  %v4237_v19 = vld [vmem:[%s6134_s5 + $0x10] sm:$0xff]  }
 0x366   :  { %v2201_v6 = vld [vmem:[#allocation3 + $0x50] sm:$0xff] }
 0x367   :  { %v1849_v40 = vpop.permute.xlu1 %1848  ;;  %4046 = vmatpush3.bf16.msra.mxu1 %v4237_v19 }
 0x368   :  { %v1865_v56 = vsel %vm612_vm15, %v1864_v28, %v1849_v40  ;;  %vm2622_vm15 = vcmask 97280  }
 0x369   :  { %1869 = vst.msk [vmem:[#allocation3 + $0x78] sm:$0x3] %vm617_vm5, %v1865_v56  ;;  %v4238_v56 = vld [vmem:[%s6134_s5 + $0x58] sm:$0xff]   ;;  %vm2624_vm5 = vcmask 384000  }
 0x36a   :  { %v2205_v58 = vld [vmem:[#allocation3 + $0x70] sm:$0xff]  ;;  %4047 = vmatprep.subr.bf16.mxu1 %v4238_v56 }
 0x36b   :  { %v2213_v41 = vpack.c.bf16 %v2205_v58, %v2201_v6 }
 0x36c   :  { %v2202_v32 = vld [vmem:[#allocation3 + $0x58] sm:$0xff] }
 0x370   :  { %v2206_v31 = vld [vmem:[#allocation3 + $0x78] sm:$0xff] }
 0x371   :  { %v2214_v16 = vpack.c.bf16 %v2206_v31, %v2202_v32  ;;  %v4239_v31 = vld [vmem:[%s6134_s5 + $0x18] sm:$0xff]  }
 0x372   :  { %4048 = vmatpush3.bf16.msra.mxu1 %v4239_v31 }
 0x373   :  { %3914 = vmatprep.mubr.msk.bf16.mxu1 %vm2462_vm8, %v2214_v16  ;;  %vm2627_vm8 = vcmask 957440  }
 0x374   :  { %2559 = vmatmul.mubr.bf16.gmra.mrb[12].mxu1 %v2213_v41 }
 0x3d1   :  { %v4035_v4 = vpop.f32.mrb[4].mxu1 }
 0x3d2   :  { %v4036_v55 = vpop.f32.mrb[5].mxu1 }
 0x3d3   :  { %v4037_v25 = vadd.f32 %v4036_v55, %v4035_v4  ;;  %v4038_v15 = vpop.f32.mrb[6].mxu1  ;;  %v4240_v4 = vld [vmem:[%s6134_s5 + $0x60] sm:$0xff]  }
 0x3d4   :  { %v4039_v20 = vpop.f32.mrb[7].mxu1  ;;  %4049 = vmatprep.subr.bf16.mxu1 %v4240_v4 }
 0x3d5   :  { %v4040_v30 = vadd.f32 %v4039_v20, %v4038_v15  ;;  %v2512_v49 = vadd.f32 %v4037_v25, %v3882_v52  ;;  %v4241_v20 = vld [vmem:[%s6134_s5 + $0x20] sm:$0xff]  }
 0x3d6   :  { %4050 = vmatpush3.bf16.msra.mxu1 %v4241_v20 }
 0x3d7   :  { %v2515_v12 = vadd.f32 %v4040_v30, %v3882_v52  ;;  %v4242_v30 = vld [vmem:[%s6134_s5 + $0x68] sm:$0xff]  }
 0x3d8   :  { %4051 = vmatprep.subr.bf16.mxu1 %v4242_v30 }
 0x3d9   :  { %v2552_v39 = vpop.f32.mrb[8].mxu1 }
 0x3da   :  { %v2553_v43 = vadd.f32 %v2552_v39, %v2504_v24  ;;  %v2554_v0 = vpop.f32.mrb[9].mxu1  ;;  %v4243_v39 = vld [vmem:[%s6134_s5 + $0x28] sm:$0xff]  }
 0x3db   :  { %v2555_v33 = vpop.f32.mrb[10].mxu1  ;;  %4052 = vmatpush3.bf16.msra.mxu1 %v4243_v39 }
 0x3dc   :  { %v2567_v51 = vmax.f32 %v2553_v43, 0.0  ;;  %v2556_v47 = vadd.f32 %v2555_v33, %v2507_v1  ;;  %v2557_v60 = vpop.f32.mrb[11].mxu1  ;;  %v4244_v43 = vld [vmem:[%s6134_s5 + $0x70] sm:$0xff]  }
 0x3dd   :  { %v4245_v33 = vld [vmem:[%s6134_s5 + $0x30] sm:$0xff]   ;;  %4053 = vmatprep.subr.bf16.mxu1 %v4244_v43 }
 0x3de   :  { %2572 = vst.msk [vmem:[#allocation4] sm:$0xff] %vm2571_vm10, %v2567_v51  ;;  %v2568_v7 = vmax.f32 %v2556_v47, 0.0  ;;  %v4246_v51 = vld [vmem:[%s6134_s5 + $0x78] sm:$0xff]  }
 0x3df   :  { %4054 = vmatpush3.bf16.msra.mxu1 %v4245_v33 }
 0x3e0   :  { %2573 = vst.msk [vmem:[#allocation4 + $0x8] sm:$0xff] %vm2571_vm10, %v2568_v7  ;;  %v4247_v7 = vld [vmem:[%s6134_s5 + $0x38] sm:$0xff]   ;;  %4055 = vmatprep.subr.bf16.mxu1 %v4246_v51 }
 0x3e3   :  { %4056 = vmatpush3.bf16.msra.mxu1 %v4247_v7 }
 0x3e5   :  { %v2637_v11 = vld [vmem:[#allocation4 + $0x6] sm:$0x3]  ;;  %v2636_v42 = vld [vmem:[#allocation4 + $0x4] sm:$0x3]  ;;  %v2577_v54 = vld [vmem:[#allocation4 + $0x2] sm:$0x3] }
 0x3e6   :  { %2649 = vrot.lane.b32.xlu0 %v2637_v11, %s4389_s4  ;;  %2645 = vrot.lane.b32.xlu1 %v2636_v42, %s4390_s22  ;;  %v2635_v36 = vld [vmem:[#allocation4 + $0x2] sm:$0x3]  ;;  %v2578_v1 = vld [vmem:[#allocation4 + $0x4] sm:$0x3]  ;;  %v2576_v4 = vld [vmem:[#allocation4] sm:$0x3] }
 0x3e7   :  { %v2639_v9 = vld [vmem:[#allocation4 + $0xc] sm:$0x3]  ;;  %v2579_v59 = vld [vmem:[#allocation4 + $0x8] sm:$0x3]  ;;  %v2638_v27 = vld [vmem:[#allocation4 + $0xa] sm:$0x3] }
 0x3e8   :  { %v2698_v63 = vld [vmem:[#allocation4 + $0xa] sm:$0x3]  ;;  %v2640_v8 = vld [vmem:[#allocation4 + $0xe] sm:$0x3]  ;;  %v2760_v13 = vld [vmem:[#allocation4 + $0xc] sm:$0x3] }
 0x3e9   :  { %v2580_v50 = vld [vmem:[#allocation4 + $0xa] sm:$0x3]  ;;  %v2581_v48 = vld [vmem:[#allocation4 + $0xc] sm:$0x3]  ;;  %v2761_v35 = vld [vmem:[#allocation4 + $0xe] sm:$0x3] }
 0x3ea   :  { %2657 = vrot.lane.b32.xlu1 %v2639_v9, %s4391_s23  ;;  %2586 = vrot.lane.b32.xlu0 %v2577_v54, %s4390_s22  ;;  %v2699_v26 = vld [vmem:[#allocation4 + $0xc] sm:$0x3]  ;;  %v4396_v9 = vmov 0.0  }
 0x3eb   :  { %4112 = vmatprep.subr.bf16.mxu1 %v4396_v9 }
 0x3ee   :  { %2594 = vrot.lane.b32.xlu1 %v2579_v59, %s4392_s24  ;;  %2653 = vrot.lane.b32.xlu0 %v2638_v27, %s4392_s24 }
 0x3f2   :  { %2707 = vrot.lane.b32.xlu1 %v2698_v63, %s4390_s22  ;;  %2661 = vrot.lane.b32.xlu0 %v2640_v8, %s4393_s25 }
 0x3f6   :  { %2769 = vrot.lane.b32.xlu1 %v2760_v13, %s4390_s22  ;;  %2598 = vrot.lane.b32.xlu0 %v2580_v50, %s4391_s23 }
 0x3fa   :  { %2602 = vrot.lane.b32.xlu1 %v2581_v48, %s4393_s25  ;;  %2711 = vrot.lane.b32.xlu0 %v2699_v26, %s4389_s4 }
 0x3fe   :  { %2773 = vrot.lane.b32.xlu0 %v2761_v35, %s4389_s4 }
 0x447   :  { %v2560_v53 = vpop.f32.mrb[12].mxu1 }
 0x448   :  { %v2561_v44 = vadd.f32 %v2560_v53, %v2512_v49  ;;  %v2562_v22 = vpop.f32.mrb[13].mxu1  ;;  %v2697_v49 = vld [vmem:[#allocation4 + $0x8] sm:$0x3] }
 0x449   :  { %v2563_v61 = vpop.f32.mrb[14].mxu1 }
 0x44a   :  { %v2569_v57 = vmax.f32 %v2561_v44, 0.0  ;;  %v2564_v18 = vadd.f32 %v2563_v61, %v2515_v12  ;;  %v2565_v23 = vpop.f32.mrb[15].mxu1 }
 0x44c   :  { %2574 = vst.msk [vmem:[#allocation4 + $0x10] sm:$0xff] %vm2571_vm10, %v2569_v57  ;;  %v2570_v37 = vmax.f32 %v2564_v18, 0.0  ;;  %v2759_v57 = vld [vmem:[#allocation4 + $0xa] sm:$0x3] }
 0x44e   :  { %2575 = vst.msk [vmem:[#allocation4 + $0x18] sm:$0xff] %vm2571_vm10, %v2570_v37 }
 0x453   :  { %v2701_v2 = vld [vmem:[#allocation4 + $0x12] sm:$0x3]  ;;  %v2700_v34 = vld [vmem:[#allocation4 + $0x10] sm:$0x3]  ;;  %v2763_v62 = vld [vmem:[#allocation4 + $0x14] sm:$0x3] }
 0x454   :  { %2719 = vrot.lane.b32.xlu1 %v2701_v2, %s4391_s23  ;;  %2715 = vrot.lane.b32.xlu0 %v2700_v34, %s4392_s24  ;;  %v2762_v14 = vld [vmem:[#allocation4 + $0x12] sm:$0x3]  ;;  %v2702_v5 = vld [vmem:[#allocation4 + $0x14] sm:$0x3]  ;;  %v2764_v17 = vld [vmem:[#allocation4 + $0x16] sm:$0x3] }
 0x455   :  { %v2642_v58 = vld [vmem:[#allocation4 + $0x14] sm:$0x3]  ;;  %v2641_v32 = vld [vmem:[#allocation4 + $0x12] sm:$0x3]  ;;  %v2582_v25 = vld [vmem:[#allocation4 + $0x10] sm:$0x3] }
 0x456   :  { %v2703_v15 = vld [vmem:[#allocation4 + $0x18] sm:$0x3]  ;;  %v2704_v52 = vld [vmem:[#allocation4 + $0x1a] sm:$0x3]  ;;  %v2766_v0 = vld [vmem:[#allocation4 + $0x1c] sm:$0x3] }
 0x457   :  { %v2765_v24 = vld [vmem:[#allocation4 + $0x1a] sm:$0x3]  ;;  %v2583_v47 = vld [vmem:[#allocation4 + $0x12] sm:$0x3]  ;;  %v2643_v60 = vld [vmem:[#allocation4 + $0x16] sm:$0x3] }
 0x458   :  { %v2650_v29 = vpop.permute.xlu0 %2649  ;;  %2781 = vrot.lane.b32.xlu1 %v2763_v62, %s4391_s23  ;;  %2777 = vrot.lane.b32.xlu0 %v2762_v14, %s4392_s24  ;;  %v2646_v3 = vpop.permute.xlu1 %2645  ;;  %v2705_v11 = vld [vmem:[#allocation4 + $0x1c] sm:$0x3]  ;;  %v2767_v42 = vld [vmem:[#allocation4 + $0x1e] sm:$0x3]  ;;  %v2584_v54 = vld [vmem:[#allocation4 + $0x14] sm:$0x3] }
 0x459   :  { %v2676_v40 = vsel %vm2571_vm10, %v2635_v36, %v2646_v3 }
 0x45a   :  { %v2677_v16 = vsel %vm2618_vm11, %v2676_v40, %v2650_v29 }
 0x45c   :  { %2723 = vrot.lane.b32.xlu1 %v2702_v5, %s4393_s25  ;;  %2785 = vrot.lane.b32.xlu0 %v2764_v17, %s4393_s25  ;;  %v5793_v28 = vpop.permute.xlu0 %2586  ;;  %v2658_v59 = vpop.permute.xlu1 %2657 }
 0x460   :  { %2669 = vrot.lane.b32.xlu1 %v2642_v58, %s4394_s21  ;;  %2665 = vrot.lane.b32.xlu0 %v2641_v32, %s4380_s14  ;;  %v5805_v6 = vpop.permute.xlu0 %2653  ;;  %v2595_v27 = vpop.permute.xlu1 %2594 }
 0x461   :  { %v2678_v41 = vsel %vm2620_vm14, %v2677_v16, %v5805_v6  ;;  %v2679_v14 = vsel %vm2622_vm15, %v5805_v6, %v2658_v59 }
 0x462   :  { %v2687_v55 = vrot.slane %v2678_v41, 6 }
 0x464   :  { %2693 = vst [vmem:[#allocation5] sm:$0xc] %v2687_v55  ;;  %2606 = vrot.lane.b32.xlu1 %v2582_v25, %s4380_s14  ;;  %2727 = vrot.lane.b32.xlu0 %v2703_v15, %s4380_s14  ;;  %v2662_v63 = vpop.permute.xlu0 %2661  ;;  %v2708_v8 = vpop.permute.xlu1 %2707  ;;  %v2617_v25 = vsel %vm2571_vm10, %v2576_v4, %v5793_v28  ;;  %v4270_v4 = vld [vmem:[%s6136_s7 + $0xc0] ss:$16 sps:$4 sm:$0xff]  }
 0x465   :  { %v2738_v53 = vsel %vm2571_vm10, %v2697_v49, %v2708_v8  ;;  %v2680_v29 = vsel %vm2624_vm5, %v2679_v14, %v2662_v63  ;;  %v4278_v14 = vld [vmem:[%s6136_s7 + $0x2c] ss:$16 sps:$4 sm:$0xff]  }
 0x468   :  { %2731 = vrot.lane.b32.xlu1 %v2704_v52, %s4394_s21  ;;  %2789 = vrot.lane.b32.xlu0 %v2765_v24, %s4380_s14  ;;  %v2599_v13 = vpop.permute.xlu0 %2598  ;;  %v2770_v50 = vpop.permute.xlu1 %2769  ;;  %s4400_s14 = smov 40  }
 0x469   :  { %v2800_v23 = vsel %vm2571_vm10, %v2759_v57, %v2770_v50  ;;  %v2623_v39 = vsel %vm2622_vm15, %v2595_v27, %v2599_v13  ;;  %vm3085_vm10 = vcmask 326656  }
 0x46c   :  { %2793 = vrot.lane.b32.xlu1 %v2766_v0, %s4394_s21  ;;  %2590 = vrot.lane.b32.xlu0 %v2578_v1, %s4389_s4  ;;  %v2712_v48 = vpop.permute.xlu0 %2711  ;;  %v2603_v26 = vpop.permute.xlu1 %2602 }
 0x46d   :  { %v2739_v44 = vsel %vm2618_vm11, %v2738_v53, %v2712_v48  ;;  %v2625_v1 = vsel %vm2624_vm5, %v2623_v39, %v2603_v26  ;;  %v4249_v53 = vld [vmem:[%s6134_s5 + $0x88] sm:$0xff]   ;;  %v4291_v39 = vld [vmem:[%s6136_s7 + $0x100] ss:$16 sps:$4 sm:$0xff]  }
 0x470   :  { %2610 = vrot.lane.b32.xlu1 %v2583_v47, %s4394_s21  ;;  %2673 = vrot.lane.b32.xlu0 %v2643_v60, %s4395_s12  ;;  %v2774_v35 = vpop.permute.xlu0 %2773  ;;  %s4401_s21 = smov [#allocation7]  }
 0x471   :  { %v2801_v37 = vsel %vm2618_vm11, %v2800_v23, %v2774_v35  ;;  %v4248_v35 = vld [vmem:[%s6134_s5 + $0x80] sm:$0xff]   ;;  %s3822_s22 = sshll.u32 %s4401_s21, 4  ;;  %s3823_s22 = int_to_ptr.vmem [resolvable:$true] %s3822_s22 }
 0x472   :  { %p4354_p1 = scmp.lt.s32.totalorder %s3823_s22, %s3823_s22 }
 0x474   :  { %2735 = vrot.lane.b32.xlu1 %v2705_v11, %s4395_s12  ;;  %2797 = vrot.lane.b32.xlu0 %v2767_v42, %s4395_s12 }
 0x478   :  { %2614 = vrot.lane.b32.xlu1 %v2584_v54, %s4395_s12 }
 0x4c6   :  { %v2720_v22 = vpop.permute.xlu1 %2719  ;;  %v2716_v12 = vpop.permute.xlu0 %2715 }
 0x4c7   :  { %v2740_v61 = vsel %vm2620_vm14, %v2739_v44, %v2716_v12  ;;  %v2741_v40 = vsel %vm2622_vm15, %v2716_v12, %v2720_v22  ;;  %v4398_v44 = vmov 65535   ;;  %v4250_v12 = vld [vmem:[%s6134_s5 + $0x90] sm:$0xff]  }
 0x4c8   :  { %v2749_v18 = vrot.slane %v2740_v61, 4  ;;  %v2999_v22 = vsel %vm2997_vm4, 4294967295, %v4398_v44  ;;  %v4251_v61 = vld [vmem:[%s6134_s5 + $0x98] sm:$0x3f]  }
 0x4c9   :  { %v3000_v57 = vsel %vm2998_vm6, %v2999_v22, 0 }
 0x4ca   :  { %2755 = vst [vmem:[#allocation5] sm:$0x30] %v2749_v18  ;;  %v2782_v45 = vpop.permute.xlu1 %2781  ;;  %v2778_v38 = vpop.permute.xlu0 %2777  ;;  %v3002_v18 = vand.u32 %v4251_v61, %v3000_v57 }
 0x4cb   :  { %v2802_v21 = vsel %vm2620_vm14, %v2801_v37, %v2778_v38  ;;  %v2803_v6 = vsel %vm2622_vm15, %v2778_v38, %v2782_v45  ;;  %v4252_v45 = vld [vmem:[%s6136_s7] ss:$16 sps:$4 sm:$0xff]   ;;  %v4254_v38 = vld [vmem:[%s6136_s7 + $0x4] ss:$16 sps:$4 sm:$0xff]  }
 0x4cc   :  { %v2811_v2 = vrot.slane %v2802_v21, 2  ;;  %v4257_v21 = vld [vmem:[%s6136_s7 + $0x24] ss:$16 sps:$4 sm:$0xff]   ;;  %3375 = vmatprep.subr.bf16.mxu0 %v4254_v38 }
 0x4cd   :  { %3376 = vmatpush1.bf16.msra.mxu0 %v4252_v45 }
 0x4ce   :  { %2817 = vst [vmem:[#allocation5] sm:$0xc0] %v2811_v2  ;;  %v2724_v34 = vpop.permute.xlu1 %2723  ;;  %v2786_v62 = vpop.permute.xlu0 %2785  ;;  %3377 = vmatprep.subr.bf16.mxu0 %v4257_v21  ;;  %v4260_v2 = vld [vmem:[%s6136_s7 + $0x44] ss:$16 sps:$4 sm:$0xff]  }
 0x4cf   :  { %v2742_v56 = vsel %vm2624_vm5, %v2741_v40, %v2724_v34  ;;  %v2804_v55 = vsel %vm2624_vm5, %v2803_v6, %v2786_v62  ;;  %v4273_v34 = vld [vmem:[%s6136_s7 + $0x8] ss:$16 sps:$4 sm:$0xff]   ;;  %v4275_v62 = vld [vmem:[%s6136_s7 + $0xc] ss:$16 sps:$4 sm:$0xff]   ;;  %v4264_v40 = vld [vmem:[%s6136_s7 + $0x80] ss:$16 sps:$4 sm:$0xff]  }
 0x4d0   :  { %v4288_v6 = vld [vmem:[%s6136_s7 + $0x88] ss:$16 sps:$4 sm:$0xff]   ;;  %v4314_v21 = vld [vmem:[%s6138_s9] sm:$0xff]  }
 0x4d2   :  { %v2670_v10 = vpop.permute.xlu1 %2669  ;;  %v2666_v46 = vpop.permute.xlu0 %2665 }
 0x4d3   :  { %v2681_v3 = vsel %vm596_vm7, %v2680_v29, %v2666_v46  ;;  %v4258_v29 = vld [vmem:[%s6136_s7 + $0x40] ss:$16 sps:$4 sm:$0xff]   ;;  %v4276_v46 = vld [vmem:[%s6136_s7 + $0x28] ss:$16 sps:$4 sm:$0xff]  }
 0x4d4   :  { %v2682_v5 = vsel %vm2627_vm8, %v2681_v3, %v2670_v10  ;;  %v4284_v3 = vld [vmem:[%s6136_s7 + $0x4c] ss:$16 sps:$4 sm:$0xff]  }
 0x4d5   :  { %v2688_v17 = vrot.slane %v2682_v5, 6  ;;  %v4261_v5 = vld [vmem:[%s6136_s7 + $0x60] ss:$16 sps:$4 sm:$0xff]  }
 0x4d6   :  { %v2607_v19 = vpop.permute.xlu1 %2606  ;;  %v2728_v36 = vpop.permute.xlu0 %2727 }
 0x4d7   :  { %2694 = vst [vmem:[#allocation5 + $0x8] sm:$0xc] %v2688_v17  ;;  %v2743_v58 = vsel %vm596_vm7, %v2742_v56, %v2728_v36  ;;  %v2626_v28 = vsel %vm596_vm7, %v2625_v1, %v2607_v19  ;;  %v4266_v17 = vld [vmem:[%s6136_s7 + $0x84] ss:$16 sps:$4 sm:$0xff]   ;;  %v4282_v19 = vld [vmem:[%s6136_s7 + $0x48] ss:$16 sps:$4 sm:$0xff]  }
 0x4d8   :  { %v4287_v36 = vld [vmem:[%s6136_s7 + $0x6c] ss:$16 sps:$4 sm:$0xff]   ;;  %v4269_v56 = vld [vmem:[%s6136_s7 + $0xa4] ss:$16 sps:$4 sm:$0xff]  }
 0x4d9   :  { %v4308_v1 = vld [vmem:[%s6136_s7 + $0x10c] ss:$16 sps:$4 sm:$0xff]  }
 0x4da   :  { %v2732_v32 = vpop.permute.xlu1 %2731  ;;  %v2790_v31 = vpop.permute.xlu0 %2789 }
 0x4db   :  { %v2744_v16 = vsel %vm2627_vm8, %v2743_v58, %v2732_v32  ;;  %v2805_v15 = vsel %vm596_vm7, %v2804_v55, %v2790_v31  ;;  %vm2633_vm7 = vcmask 476160   ;;  %v4285_v58 = vld [vmem:[%s6136_s7 + $0x68] ss:$16 sps:$4 sm:$0xff]   ;;  %v4267_v31 = vld [vmem:[%s6136_s7 + $0xa0] ss:$16 sps:$4 sm:$0xff]  }
 0x4dc   :  { %v2750_v41 = vrot.slane %v2744_v16, 4  ;;  %v4272_v16 = vld [vmem:[%s6136_s7 + $0xc4] ss:$16 sps:$4 sm:$0xff]  }
 0x4dd   :  { %v4281_v55 = vld [vmem:[%s6136_s7 + $0xe4] ss:$16 sps:$4 sm:$0xff]  }
 0x4de   :  { %2756 = vst [vmem:[#allocation5 + $0x8] sm:$0x30] %v2750_v41  ;;  %v2794_v20 = vpop.permute.xlu1 %2793  ;;  %v2591_v30 = vpop.permute.xlu0 %2590  ;;  %v4296_v41 = vld [vmem:[%s6136_s7 + $0xac] ss:$16 sps:$4 sm:$0xff]  }
 0x4df   :  { %v2806_v52 = vsel %vm2627_vm8, %v2805_v15, %v2794_v20  ;;  %v2619_v24 = vsel %vm2618_vm11, %v2617_v25, %v2591_v30  ;;  %v4294_v25 = vld [vmem:[%s6136_s7 + $0xa8] ss:$16 sps:$4 sm:$0xff]   ;;  %v4299_v15 = vld [vmem:[%s6136_s7 + $0xcc] ss:$16 sps:$4 sm:$0xff]   ;;  %v4293_v30 = vld [vmem:[%s6136_s7 + $0x104] ss:$16 sps:$4 sm:$0xff]  }
 0x4e0   :  { %v2812_v43 = vrot.slane %v2806_v52, 2  ;;  %v2621_v0 = vsel %vm2620_vm14, %v2619_v24, %v2595_v27  ;;  %v4297_v52 = vld [vmem:[%s6136_s7 + $0xc8] ss:$16 sps:$4 sm:$0xff]   ;;  %v4302_v24 = vld [vmem:[%s6136_s7 + $0xec] ss:$16 sps:$4 sm:$0xff]   ;;  %vm3104_vm11 = vcmask 654336  }
 0x4e1   :  { %2631 = vst [vmem:[#allocation5] sm:$0x3] %v2621_v0  ;;  %v4305_v0 = vld [vmem:[%s6136_s7 + $0x124] ss:$16 sps:$4 sm:$0xff]   ;;  %vm3371_vm14 = vcmask 261120  }
 0x4e2   :  { %2818 = vst [vmem:[#allocation5 + $0x8] sm:$0xc0] %v2812_v43  ;;  %v2611_v33 = vpop.permute.xlu1 %2610  ;;  %v2674_v51 = vpop.permute.xlu0 %2673  ;;  %v4300_v43 = vld [vmem:[%s6136_s7 + $0xe8] ss:$16 sps:$4 sm:$0xff]  }
 0x4e3   :  { %v2628_v47 = vsel %vm2627_vm8, %v2626_v28, %v2611_v33  ;;  %v2683_v60 = vsel %vm2629_vm13, %v2670_v10, %v2674_v51  ;;  %v4263_v10 = vld [vmem:[%s6136_s7 + $0x64] ss:$16 sps:$4 sm:$0xff]   ;;  %v4303_v28 = vld [vmem:[%s6136_s7 + $0x120] ss:$16 sps:$4 sm:$0xff]  }
 0x4e4   :  { %2632 = vst [vmem:[#allocation5 + $0x8] sm:$0x3] %v2628_v47  ;;  %v2689_v7 = vrot.slane %v2683_v60, 6 }
 0x4e6   :  { %2696 = vst.msk [vmem:[#allocation5 + $0x10] sm:$0xc] %vm2695_vm12, %v2689_v7  ;;  %v2736_v11 = vpop.permute.xlu1 %2735  ;;  %v2798_v42 = vpop.permute.xlu0 %2797 }
 0x4e7   :  { %v2745_v54 = vsel %vm2629_vm13, %v2732_v32, %v2736_v11  ;;  %v2807_v59 = vsel %vm2629_vm13, %v2794_v20, %v2798_v42  ;;  %v4290_v32 = vld [vmem:[%s6136_s7 + $0x8c] ss:$16 sps:$4 sm:$0xff]   ;;  %v4279_v20 = vld [vmem:[%s6136_s7 + $0xe0] ss:$16 sps:$4 sm:$0xff]  }
 0x4e8   :  { %v2751_v27 = vrot.slane %v2745_v54, 4  ;;  %v2813_v63 = vrot.slane %v2807_v59, 2  ;;  %v2821_v13 = vld [vmem:[#allocation5] sm:$0xff]  ;;  %v3915_v42 = vld [vmem:[%s6135_s6] ss:$0 sm:$0xff] }
 0x4e9   :  { %v2824_v49 = vpack.c.bf16 %v2821_v13, %v2821_v13 }
 0x4ea   :  { %2758 = vst.msk [vmem:[#allocation5 + $0x10] sm:$0x30] %vm2757_vm1, %v2751_v27  ;;  %v2615_v8 = vpop.permute.xlu1 %2614  ;;  %v4309_v27 = vld [vmem:[%s6136_s7 + $0x128] ss:$16 sps:$4 sm:$0xff]  }
 0x4eb   :  { %2820 = vst.msk [vmem:[#allocation5 + $0x10] sm:$0xc0] %vm2819_vm2, %v2813_v63  ;;  %v2630_v50 = vsel %vm2629_vm13, %v2611_v33, %v2615_v8  ;;  %v2822_v48 = vld [vmem:[#allocation5 + $0x8] sm:$0xff]  ;;  %v4306_v33 = vld [vmem:[%s6136_s7 + $0x108] ss:$16 sps:$4 sm:$0xff]  }
 0x4ec   :  { %2634 = vst.msk [vmem:[#allocation5 + $0x10] sm:$0x3] %vm2633_vm7, %v2630_v50  ;;  %v2825_v26 = vpack.c.bf16 %v2822_v48, %v2822_v48  ;;  %v4311_v63 = vld [vmem:[%s6136_s7 + $0x12c] ss:$16 sps:$4 sm:$0xff]  }
 0x4ee   :  { %3036 = vmatprep.mubr.bf16.mxu1 %v2825_v26 }
 0x4ef   :  { %3037 = vmatmul.mubr.bf16.vlgmr.msra.gmra.mrb[16].mxu1 %v2824_v49  ;;  %v4313_v49 = vld [vmem:[%s6138_s9 + $0xc0] sm:$0xff]  }
 0x4f0   :  { %4113 = vmatpush3.bf16.msra.mxu1 %v4248_v35  ;;  %4120 = vmatprep.mubr.msk.bf16.mxu1 %vm4397_vm0, %v4396_v9  ;;  %v4312_v35 = vld [vmem:[%s6138_s9 + $0x40] sm:$0xff]  }
 0x4f1   :  { %4114 = vmatprep.subr.bf16.mxu1 %v4396_v9 }
 0x4f3   :  { %v2823_v23 = vld [vmem:[#allocation5 + $0x10] sm:$0xff] }
 0x4f4   :  { %4115 = vmatpush3.bf16.msra.mxu1 %v4249_v53  ;;  %v2826_v37 = vpack.c.bf16 %v2823_v23, %v2823_v23 }
 0x4f5   :  { %4116 = vmatprep.subr.bf16.mxu1 %v4396_v9 }
 0x4f8   :  { %4117 = vmatpush3.bf16.msra.mxu1 %v4250_v12 }
 0x4f9   :  { %4118 = vmatprep.subr.bf16.mxu1 %v4396_v9  ;;  %v4255_v9 = vld [vmem:[%s6136_s7 + $0x20] ss:$16 sps:$4 sm:$0xff]   ;;  %s4399_s7 = smov 80  }
 0x4fa   :  { %3378 = vmatpush1.bf16.msra.mxu0 %v4255_v9  ;;  %v4315_v9 = vld [vmem:[%s6138_s9 + $0x80] sm:$0xff]  }
 0x4fb   :  { %3379 = vmatprep.subr.bf16.mxu0 %v4260_v2 }
 0x4fc   :  { %4119 = vmatpush3.bf16.msra.mxu1 %v3002_v18 }
 0x4fd   :  { %3416 = vmatprep.subr.bf16.mxu1 %v4275_v62  ;;  %v4317_v62 = vld [vmem:[%s6138_s9 + $0xc8] sm:$0xff]  }
 0x4fe   :  { %3380 = vmatpush1.bf16.msra.mxu0 %v4258_v29  ;;  %v4319_v29 = vld [vmem:[%s6138_s9 + $0x88] sm:$0xff]  }
 0x4ff   :  { %4121 = vmatmul.mubr.msk.bf16.vlgmr.msra.gmra.mrb[20].mxu1 %vm2993_vm9, %v2826_v37  ;;  %3381 = vmatprep.subr.bf16.mxu0 %v4263_v10  ;;  %v4320_v10 = vld [vmem:[%s6138_s9 + $0x50] sm:$0xff]  }
 0x500   :  { %3417 = vmatpush1.bf16.msra.mxu1 %v4273_v34  ;;  %v4316_v34 = vld [vmem:[%s6138_s9 + $0x48] sm:$0xff]  }
 0x501   :  { %3418 = vmatprep.subr.bf16.mxu1 %v4278_v14  ;;  %v4318_v14 = vld [vmem:[%s6138_s9 + $0x8] sm:$0xff]  }
 0x502   :  { %3382 = vmatpush1.bf16.msra.mxu0 %v4261_v5  ;;  %v4323_v5 = vld [vmem:[%s6138_s9 + $0x90] sm:$0xff]  }
 0x503   :  { %3383 = vmatprep.subr.bf16.mxu0 %v4266_v17  ;;  %v4324_v17 = vld [vmem:[%s6138_s9 + $0x58] sm:$0xff]  }
 0x504   :  { %3419 = vmatpush1.bf16.msra.mxu1 %v4276_v46  ;;  %v4321_v46 = vld [vmem:[%s6138_s9 + $0xd0] sm:$0xff]  }
 0x505   :  { %3420 = vmatprep.subr.bf16.mxu1 %v4284_v3  ;;  %v4322_v3 = vld [vmem:[%s6138_s9 + $0x10] sm:$0xff]  }
 0x506   :  { %3384 = vmatpush1.bf16.msra.mxu0 %v4264_v40  ;;  %v4327_v40 = vld [vmem:[%s6138_s9 + $0x98] sm:$0xff]  }
 0x507   :  { %3385 = vmatprep.subr.bf16.mxu0 %v4269_v56  ;;  %v4328_v56 = vld [vmem:[%s6138_s9 + $0x60] sm:$0xff]  }
 0x508   :  { %3421 = vmatpush1.bf16.msra.mxu1 %v4282_v19  ;;  %v4325_v19 = vld [vmem:[%s6138_s9 + $0xd8] sm:$0xff]  }
 0x509   :  { %3422 = vmatprep.subr.bf16.mxu1 %v4287_v36  ;;  %v4326_v36 = vld [vmem:[%s6138_s9 + $0x18] sm:$0xff]  }
 0x50a   :  { %3386 = vmatpush1.bf16.msra.mxu0 %v4267_v31  ;;  %v4331_v31 = vld [vmem:[%s6138_s9 + $0xa0] sm:$0xff]  }
 0x50b   :  { %3387 = vmatprep.subr.bf16.mxu0 %v4272_v16  ;;  %v4332_v16 = vld [vmem:[%s6138_s9 + $0x68] sm:$0xff]  }
 0x50c   :  { %3423 = vmatpush1.bf16.msra.mxu1 %v4285_v58  ;;  %v4329_v58 = vld [vmem:[%s6138_s9 + $0xe0] sm:$0xff]  }
 0x50d   :  { %3424 = vmatprep.subr.bf16.mxu1 %v4290_v32  ;;  %v4330_v32 = vld [vmem:[%s6138_s9 + $0x20] sm:$0xff]  }
 0x50e   :  { %3388 = vmatpush1.bf16.msra.mxu0 %v4270_v4  ;;  %v4335_v4 = vld [vmem:[%s6138_s9 + $0xa8] sm:$0xff]  }
 0x50f   :  { %3389 = vmatprep.subr.bf16.mxu0 %v4281_v55  ;;  %v4336_v55 = vld [vmem:[%s6138_s9 + $0x70] sm:$0xff]  }
 0x510   :  { %3425 = vmatpush1.bf16.msra.mxu1 %v4288_v6  ;;  %v4333_v6 = vld [vmem:[%s6138_s9 + $0xe8] sm:$0xff]  }
 0x511   :  { %3426 = vmatprep.subr.bf16.mxu1 %v4296_v41  ;;  %v4334_v41 = vld [vmem:[%s6138_s9 + $0x28] sm:$0xff]  }
 0x512   :  { %3390 = vmatpush1.bf16.msra.mxu0 %v4279_v20  ;;  %v4339_v20 = vld [vmem:[%s6138_s9 + $0xb0] sm:$0xff]  }
 0x513   :  { %3391 = vmatprep.subr.bf16.mxu0 %v4293_v30  ;;  %v4340_v30 = vld [vmem:[%s6138_s9 + $0x78] sm:$0xff]  }
 0x514   :  { %3427 = vmatpush1.bf16.msra.mxu1 %v4294_v25  ;;  %v4337_v25 = vld [vmem:[%s6138_s9 + $0xf0] sm:$0xff]  }
 0x515   :  { %3428 = vmatprep.subr.bf16.mxu1 %v4299_v15  ;;  %v4338_v15 = vld [vmem:[%s6138_s9 + $0x30] sm:$0xff]  }
 0x516   :  { %3392 = vmatpush1.bf16.msra.mxu0 %v4291_v39  ;;  %v4343_v39 = vld [vmem:[%s6138_s9 + $0xb8] sm:$0xff]  }
 0x517   :  { %3393 = vmatprep.subr.bf16.mxu0 %v4305_v0 }
 0x518   :  { %3429 = vmatpush1.bf16.msra.mxu1 %v4297_v52  ;;  %v4341_v52 = vld [vmem:[%s6138_s9 + $0xf8] sm:$0xff]  }
 0x519   :  { %3430 = vmatprep.subr.bf16.mxu1 %v4302_v24  ;;  %v4342_v24 = vld [vmem:[%s6138_s9 + $0x38] sm:$0xff]  }
 0x51a   :  { %3394 = vmatpush1.bf16.msra.mxu0 %v4303_v28 }
 0x51b   :  { %4068 = vmatprep.subr.bf16.mxu0 %v4312_v35 }
 0x51c   :  { %3431 = vmatpush1.bf16.msra.mxu1 %v4300_v43  ;;  %v3151_v43 = vlaneseq }
 0x51d   :  { %3432 = vmatprep.subr.bf16.mxu1 %v4308_v1 }
 0x51e   :  { %v3152_v0 = vshrl.u32 %v3151_v43, 7 }
 0x520   :  { %3433 = vmatpush1.bf16.msra.mxu1 %v4306_v33  ;;  %v3153_v1 = vsub.s32 0, %v3152_v0  ;;  %v3161_v28 = vsub.s32 2, %v3152_v0  ;;  %v3149_v33 = vld [vmem:[%s6137_s8] sm:$0xf] }
 0x521   :  { %3434 = vmatprep.subr.bf16.mxu1 %v4311_v63 }
 0x524   :  { %3435 = vmatpush1.bf16.msra.mxu1 %v4309_v27 }
 0x525   :  { %4090 = vmatprep.subr.bf16.mxu1 %v4313_v49 }
 0x5c2   :  { %v4057_v51 = vpop.f32.mrb[16].mxu1 }
 0x5c3   :  { %v4058_v47 = vpop.f32.mrb[17].mxu1 }
 0x5c4   :  { %v4059_v60 = vadd.f32 %v4058_v47, %v4057_v51  ;;  %v4060_v7 = vpop.f32.mrb[18].mxu1  ;;  %v3157_v51 = vsub.s32 1, %v3152_v0  ;;  %v3165_v47 = vsub.s32 3, %v3152_v0 }
 0x5c5   :  { %v4061_v11 = vpop.f32.mrb[19].mxu1  ;;  %v3162_v7 = vrot.slane %v3149_v33, %v3161_v28 }
 0x5c6   :  { %v3039_v54 = vadd.f32 %v4059_v60, %v3915_v42  ;;  %v3154_v60 = vrot.slane %v3149_v33, %v3153_v1  ;;  %v3158_v11 = vrot.slane %v3149_v33, %v3157_v51  ;;  %v3166_v42 = vrot.slane %v3149_v33, %v3165_v47 }
 0x5d2   :  { %v3078_v59 = vpop.f32.mrb[20].mxu1 }
 0x5d3   :  { %v3079_v8 = vadd.f32 %v3078_v59, %v3039_v54  ;;  %v4122_v13 = vpop.f32.mrb[21].mxu1 }
 0x5d4   :  { %v3081_v50 = vpop.f32.mrb[22].mxu1 }
 0x5d5   :  { %v3084_v48 = vmax.f32 %v3079_v8, 0.0  ;;  %v4123_v26 = vpop.f32.mrb[23].mxu1 }
 0x5d7   :  { %3086 = vst.msk [vmem:[#allocation6] sm:$0xff] %vm3085_vm10, %v3084_v48 }
 0x5de   :  { %v3089_v53 = vld [vmem:[#allocation6 + $0x4] sm:$0x3]  ;;  %v3088_v44 = vld [vmem:[#allocation6 + $0x2] sm:$0x3]  ;;  %v3090_v22 = vld [vmem:[#allocation6 + $0x6] sm:$0x3] }
 0x5df   :  { %3096 = vrot.lane.b32.xlu1 %v3089_v53, %s4399_s7  ;;  %3092 = vrot.lane.b32.xlu0 %v3088_v44, %s4400_s14  ;;  %v3087_v61 = vld [vmem:[#allocation6] sm:$0x3] }
 0x5e3   :  { %3100 = vrot.lane.b32.xlu0 %v3090_v22, %s4377_s30 }
 0x651   :  { %v3093_v12 = vpop.permute.xlu0 %3092  ;;  %v3097_v57 = vpop.permute.xlu1 %3096 }
 0x652   :  { %v3103_v18 = vsel %vm3085_vm10, %v3087_v61, %v3093_v12 }
 0x653   :  { %v3105_v37 = vsel %vm3104_vm11, %v3103_v18, %v3097_v57 }
 0x655   :  { %v3101_v23 = vpop.permute.xlu0 %3100 }
 0x656   :  { %v3106_v45 = vsel %vm590_vm3, %v3105_v37, %v3101_v23  ;;  %v3108_v38 = vpack.c.bf16 %v3101_v23, %v3101_v23  ;;  %vm3814_vm3 = vcmask 74752  }
 0x657   :  { %v3107_v2 = vpack.c.bf16 %v3106_v45, %v3106_v45 }
 0x658   :  { %3977 = vmatprep.mubr.msk.bf16.mxu0 %vm3371_vm14, %v3108_v38  ;;  %3978 = vmatprep.mubr.msk.bf16.mxu1 %vm3371_vm14, %v3108_v38 }
 0x659   :  { %3408 = vmatmul.mubr.bf16.vlgmr.msra.gmra.mrb[52].mxu0 %v3107_v2  ;;  %3449 = vmatmul.mubr.bf16.vlgmr.msra.gmra.mrb[24].mxu1 %v3107_v2 }
 0x65a   :  { %4069 = vmatpush3.bf16.msra.mxu0 %v4314_v21  ;;  %4091 = vmatpush3.bf16.msra.mxu1 %v4315_v9  ;;  %v3979_v21 = vld [vmem:[%s6139_s10] ss:$0 sm:$0xff]  ;;  %s4349_s10 = scalar_lea.vmem %s3823_s22, 32 }
 0x65b   :  { %4070 = vmatprep.subr.bf16.mxu0 %v4316_v34  ;;  %4092 = vmatprep.subr.bf16.mxu1 %v4317_v62  ;;  %p4350_p0 = scmp.ne.s32.totalorder %s3823_s22, %s4349_s10  ;;  %p4355_p2 = scmp.lt.s32.totalorder %s4349_s10, %s4349_s10 }
 0x65d   :  { %p4356_p3 = por %p4355_p2, %p4354_p1 }
 0x65e   :  { %4071 = vmatpush3.bf16.msra.mxu0 %v4318_v14  ;;  %4093 = vmatpush3.bf16.msra.mxu1 %v4319_v29 }
 0x65f   :  { %4072 = vmatprep.subr.bf16.mxu0 %v4320_v10  ;;  %4094 = vmatprep.subr.bf16.mxu1 %v4321_v46  ;;  %p4357_p4 = pnand %p4356_p3, %p4350_p0 }
 0x662   :  { %4073 = vmatpush3.bf16.msra.mxu0 %v4322_v3  ;;  %4095 = vmatpush3.bf16.msra.mxu1 %v4323_v5 }
 0x663   :  { %4074 = vmatprep.subr.bf16.mxu0 %v4324_v17  ;;  %4096 = vmatprep.subr.bf16.mxu1 %v4325_v19 }
 0x666   :  { %4075 = vmatpush3.bf16.msra.mxu0 %v4326_v36  ;;  %4097 = vmatpush3.bf16.msra.mxu1 %v4327_v40 }
 0x667   :  { %4076 = vmatprep.subr.bf16.mxu0 %v4328_v56  ;;  %4098 = vmatprep.subr.bf16.mxu1 %v4329_v58 }
 0x66a   :  { %4077 = vmatpush3.bf16.msra.mxu0 %v4330_v32  ;;  %4099 = vmatpush3.bf16.msra.mxu1 %v4331_v31 }
 0x66b   :  { %4078 = vmatprep.subr.bf16.mxu0 %v4332_v16  ;;  %4100 = vmatprep.subr.bf16.mxu1 %v4333_v6 }
 0x66e   :  { %4079 = vmatpush3.bf16.msra.mxu0 %v4334_v41  ;;  %4101 = vmatpush3.bf16.msra.mxu1 %v4335_v4 }
 0x66f   :  { %4080 = vmatprep.subr.bf16.mxu0 %v4336_v55  ;;  %4102 = vmatprep.subr.bf16.mxu1 %v4337_v25 }
 0x672   :  { %4081 = vmatpush3.bf16.msra.mxu0 %v4338_v15  ;;  %4103 = vmatpush3.bf16.msra.mxu1 %v4339_v20 }
 0x673   :  { %4082 = vmatprep.subr.bf16.mxu0 %v4340_v30  ;;  %4104 = vmatprep.subr.bf16.mxu1 %v4341_v52 }
 0x676   :  { %4083 = vmatpush3.bf16.msra.mxu0 %v4342_v24  ;;  %4105 = vmatpush3.bf16.msra.mxu1 %v4343_v39 }
 0x72c   :  { %v3409_v54 = vpop.f32.mrb[52].mxu0  ;;  %v3450_v59 = vpop.f32.mrb[24].mxu1 }
 0x72d   :  { %v3410_v27 = vadd.f32 %v3409_v54, %v3154_v60  ;;  %v3451_v63 = vadd.f32 %v3450_v59, %v3162_v7  ;;  %v3411_v8 = vpop.f32.mrb[53].mxu0  ;;  %v3452_v13 = vpop.f32.mrb[25].mxu1 }
 0x72e   :  { %v3412_v50 = vadd.f32 %v3411_v8, %v3158_v11  ;;  %v3453_v48 = vadd.f32 %v3452_v13, %v3166_v42  ;;  %v3413_v26 = vpop.f32.mrb[54].mxu0  ;;  %v3454_v35 = vpop.f32.mrb[26].mxu1 }
 0x72f   :  { %v3457_v49 = vmax.f32 %v3410_v27, 0.0  ;;  %v3459_v53 = vmax.f32 %v3451_v63, 0.0  ;;  %v3414_v44 = vpop.f32.mrb[55].mxu0  ;;  %v3455_v22 = vpop.f32.mrb[27].mxu1 }
 0x730   :  { %v3458_v12 = vmax.f32 %v3412_v50, 0.0  ;;  %v3460_v61 = vmax.f32 %v3453_v48, 0.0 }
 0x731   :  { %v3461_v23 = vpack.c.bf16 %v3457_v49, %v3457_v49  ;;  %v3463_v37 = vpack.c.bf16 %v3459_v53, %v3459_v53 }
 0x732   :  { %v3462_v57 = vpack.c.bf16 %v3458_v12, %v3458_v12  ;;  %v3464_v18 = vpack.c.bf16 %v3460_v61, %v3460_v61 }
 0x734   :  { %3760 = vmatprep.mubr.bf16.mxu0 %v3462_v57  ;;  %3800 = vmatprep.mubr.bf16.mxu1 %v3464_v18 }
 0x735   :  { %3761 = vmatmul.mubr.bf16.vlgmr.msra.gmra.mrb[56].mxu0 %v3461_v23  ;;  %3801 = vmatmul.mubr.bf16.vlgmr.msra.gmra.mrb[28].mxu1 %v3463_v37 }
 0x808   :  { %v4084_v45 = vpop.f32.mrb[56].mxu0  ;;  %v4106_v38 = vpop.f32.mrb[28].mxu1 }
 0x809   :  { %v4085_v9 = vpop.f32.mrb[57].mxu0  ;;  %v4107_v2 = vpop.f32.mrb[29].mxu1 }
 0x80a   :  { %v4086_v34 = vadd.f32 %v4085_v9, %v4084_v45  ;;  %v4108_v62 = vadd.f32 %v4107_v2, %v4106_v38  ;;  %v4087_v14 = vpop.f32.mrb[58].mxu0  ;;  %v4109_v29 = vpop.f32.mrb[30].mxu1 }
 0x80b   :  { %v4088_v10 = vpop.f32.mrb[59].mxu0  ;;  %v4110_v46 = vpop.f32.mrb[31].mxu1 }
 0x80c   :  { %v3763_v3 = vadd.f32 %v4086_v34, %v3979_v21 }
 0x80e   :  { %v3803_v5 = vadd.f32 %v4108_v62, %v3763_v3 }
 0x810   :  { %v4012_v17 = vmul.f32 -1.442695, %v3803_v5 }
 0x812   :  { %4344 = vpow2.f32 %v4012_v17 }
 0x81c   :  { %v4345_v19 = vpop.eup %4344 }
 0x81d   :  { %v3811_v36 = vadd.f32 1.0, %v4345_v19 }
 0x81f   :  { %4346 = vrcp.f32 %v3811_v36 }
 0x829   :  { %v4347_v40 = vpop.eup %4346 }
 0x82a   :  { %3815 = vst.msk [vmem:[#allocation7] sm:$0x3] %vm3814_vm3, %v4347_v40 }
 0x82b   :  { %4360 = shalt.err (!%p4357_p4)
}
 0x82c   :  { %s4361_s25 = scalar_lea.hbm %s6140_s11, 32 }
 0x82d   :  { %p4362_p5 = scmp.ne.s32.totalorder %s6140_s11, %s4361_s25  ;;  %p4365_p6 = scmp.lt.u32.totalorder %s4361_s25, %s6140_s11 }
 0x82f   :  { %p4367_p7 = pnand %p4365_p6, %p4362_p5 }
 0x831   :  { %4370 = shalt.err (!%p4367_p7)
}
 0x832   :  { %3825 = dma.vmem_to_hbm [thread:$0]  %s3823_s22, 32, %s6140_s11, [#allocation8]  }
 0x833   :  { %4371 = dma.done.wait [#allocation8], 32  }
 0x834   :  { %4372 = vsyncadd [#allocation8], 4294967264 }
 0x835   :  { %3829 = vsyncpa [#allocation8], 1 }

</bundles_post_ra>
